<compile_context>
chip_gen: v6e
topology: v6e:2x2x1
jax: 0.10.0
libtpu: 0.0.40
codegen_flags: <defaults>
</compile_context>

<pallas_src>
import functools

import jax
import jax.numpy as jnp
from jax.experimental import pallas as pl
from jax.experimental.pallas import tpu as pltpu


# ---------------------------------------------------------------------------
# Fused Pallas kernel: all GCN layers + SiLU + final log_softmax in one call.
# A_hat is streamed from HBM block-by-block; activations stay resident in VMEM.
# ---------------------------------------------------------------------------
def gcn_fused_kernel(*refs, f_pads, num_classes, tm, tk, compute_dtype):
    num_layers = len(f_pads) - 1
    x_ref = refs[0]                                   # (n_pad, f_pads[0])   bf16
    wb_refs = refs[1:1 + 2 * num_layers]              # W_l (fi, fo) bf16, b_l (1, fo) f32
    a_hbm = refs[1 + 2 * num_layers]                  # raw HBM ref (n_pad, n_pad) bf16
    o_ref = refs[2 + 2 * num_layers]                  # (n_pad, c_pad) f32
    h_ref, xw_ref, acc_ref, abuf_ref, sem_ref = refs[3 + 2 * num_layers:]

    cd = compute_dtype
    n_pad = h_ref.shape[0]
    n_rt = n_pad // tm                                # A row tiles
    n_kt = n_pad // tk                                # A contract tiles
    blocks = [(r, k) for r in range(n_rt) for k in range(n_kt)]

    def a_block_copy(idx, slot):
        r, k = blocks[idx]
        return pltpu.make_async_copy(
            a_hbm.at[pl.ds(r * tm, tm), pl.ds(k * tk, tk)],
            abuf_ref.at[slot],
            sem_ref.at[slot])

    # Layer-0 input activations -> bf16 VMEM scratch (once).
    h_ref[:, :f_pads[0]] = x_ref[...]

    for l in range(num_layers):
        f_in, f_out = f_pads[l], f_pads[l + 1]
        last = l == num_layers - 1
        w = wb_refs[2 * l][...]                       # (f_in, f_out)  bf16
        b = wb_refs[2 * l + 1][...]                   # (1, f_out)     f32

        # Prefetch the first A block; its DMA overlaps the X@W matmul below.
        a_block_copy(0, 0).start()

        # ---- Stage 1: XW = H @ W, computed ONCE per layer (bf16 MXU, f32 acc). ----
        # TODO(synk): keep XW in f32 for the A@XW operand if accuracy at depth matters
        #             (MXU accepts mixed precision with f32 accumulation).
        xw = jnp.dot(h_ref[:, :f_in], w, preferred_element_type=jnp.float32)
        xw_ref[:, :f_out] = xw.astype(cd)

        # ---- Stage 2: Z = A_hat @ XW + b, streaming (TM, TK) A blocks from HBM. ----
        for idx, (r, k) in enumerate(blocks):
            slot = idx % 2
            a_block_copy(idx, slot).wait()
            if idx + 1 < len(blocks):
                a_block_copy(idx + 1, 1 - slot).start()

            partial = jnp.dot(abuf_ref[slot], xw_ref[pl.ds(k * tk, tk), :f_out],
                              preferred_element_type=jnp.float32)
            if k == 0:
                acc_ref[:, :f_out] = partial
            else:
                acc_ref[:, :f_out] += partial

            if k == n_kt - 1:                         # row tile r is complete
                rows = pl.ds(r * tm, tm)
                z = acc_ref[:, :f_out] + b            # f32
                if not last:
                    # SiLU in f32 (VPU/EUP); stored bf16 for the next layer's MXU.
                    h_ref[rows, :f_out] = (z * jax.nn.sigmoid(z)).astype(cd)
                else:
                    # log_softmax over the class lanes; padded lanes -> 0.0 (finite).
                    lane = jax.lax.broadcasted_iota(jnp.int32, z.shape, 1)
                    valid = lane < num_classes
                    zm = jnp.where(valid, z, -jnp.inf)
                    m = jnp.max(zm, axis=-1, keepdims=True)
                    e = jnp.where(valid, jnp.exp(zm - m), 0.0)
                    lse = jnp.log(jnp.sum(e, axis=-1, keepdims=True))
                    o_ref[rows, :] = jnp.where(valid, (zm - m) - lse, 0.0)


# ---------------------------------------------------------------------------
# Wrapper: per-layer lane padding, one pallas_call for the whole forward pass.
# ---------------------------------------------------------------------------
def _round_up(x, m):
    return ((x + m - 1) // m) * m


def _pad2d(x, rows, cols):
    return jnp.pad(x, ((0, rows - x.shape[0]), (0, cols - x.shape[1])))


def gcn_forward(params, x, a_hat, *, compute_dtype=jnp.bfloat16, tm=256, tk=256):
    n = x.shape[0]
    num_layers = len(params)
    num_classes = params[-1][0].shape[1]

    # Per-layer lane padding: each feature dim rounded to its own multiple of 128.
    dims = [x.shape[1]] + [w.shape[1] for w, _ in params]
    f_pads = tuple(_round_up(d, 128) for d in dims)
    c_pad = f_pads[-1]
    max_fpad = max(f_pads)
    max_out_pad = max(f_pads[1:])

    # Node dim padded to the MXU-native row tile (also covers bf16 (16,128) tiling).
    n_pad = _round_up(n, max(tm, tk))

    a_in = _pad2d(a_hat.astype(jnp.float32), n_pad, n_pad).astype(compute_dtype)
    x_in = _pad2d(x.astype(jnp.float32), n_pad, f_pads[0]).astype(compute_dtype)

    flat_wb = []
    in_specs = [pl.BlockSpec((n_pad, f_pads[0]), lambda i: (0, 0))]   # X (VMEM resident)
    for l, (w, b) in enumerate(params):
        fi, fo = f_pads[l], f_pads[l + 1]
        flat_wb.append(_pad2d(w.astype(jnp.float32), fi, fo).astype(compute_dtype))
        flat_wb.append(_pad2d(b.astype(jnp.float32), 1, fo))
        in_specs.append(pl.BlockSpec((fi, fo), lambda i: (0, 0)))     # W_l
        in_specs.append(pl.BlockSpec((1, fo), lambda i: (0, 0)))      # b_l
    in_specs.append(pl.BlockSpec(memory_space=pl.ANY))                # A_hat stays in HBM

    # Cost estimate (padded shapes == actual MXU work).
    flops = 0
    transcendentals = 0
    for l in range(num_layers):
        fi, fo = f_pads[l], f_pads[l + 1]
        flops += 2 * n_pad * fi * fo + 2 * n_pad * n_pad * fo
        transcendentals += n_pad * fo if l < num_layers - 1 else 2 * n_pad * c_pad
    in_bytes = (a_in.size * a_in.dtype.itemsize + x_in.size * x_in.dtype.itemsize
                + sum(t.size * t.dtype.itemsize for t in flat_wb))
    bytes_accessed = int(in_bytes + n_pad * c_pad * 4)

    # VMEM budget: resident inputs (double-buffered by the pipeline) + output + scratch.
    resident = (x_in.size * x_in.dtype.itemsize
                + sum(t.size * t.dtype.itemsize for t in flat_wb))
    scratch_bytes = ((n_pad * max_fpad + n_pad * max_out_pad + 2 * tm * tk) * 2
                     + tm * max_out_pad * 4)
    needed = 2 * resident + 2 * n_pad * c_pad * 4 + scratch_bytes
    vmem_limit = int(min(64 * 1024 * 1024, max(32 * 1024 * 1024, 2 * needed)))

    kern = functools.partial(
        gcn_fused_kernel,
        f_pads=f_pads,
        num_classes=num_classes,
        tm=tm,
        tk=tk,
        compute_dtype=compute_dtype,
    )

    out = pl.pallas_call(
        kern,
        out_shape=jax.ShapeDtypeStruct((n_pad, c_pad), jnp.float32),
        grid=(1,),
        in_specs=in_specs,
        out_specs=pl.BlockSpec((n_pad, c_pad), lambda i: (0, 0)),
        scratch_shapes=[
            pltpu.VMEM((n_pad, max_fpad), compute_dtype),      # h: resident activations
            pltpu.VMEM((n_pad, max_out_pad), compute_dtype),   # xw: X @ W (once / layer)
            pltpu.VMEM((tm, max_out_pad), jnp.float32),        # acc: f32 row-tile accum
            pltpu.VMEM((2, tm, tk), compute_dtype),            # A block double buffer
            pltpu.SemaphoreType.DMA((2,)),                     # DMA semaphores
        ],
        compiler_params=pltpu.CompilerParams(
            dimension_semantics=("arbitrary",),
            vmem_limit_bytes=vmem_limit),
        cost_estimate=pl.CostEstimate(
            flops=flops, transcendentals=transcendentals,
            bytes_accessed=bytes_accessed),
    )(x_in, *flat_wb, a_in)

    return out[:n, :num_classes]


# ---------------------------------------------------------------------------
# Glue: parameter init, dense normalized adjacency, pure-JAX reference
# ---------------------------------------------------------------------------
def glorot(key, fan_in, fan_out):
    limit = jnp.sqrt(6.0 / (fan_in + fan_out))
    return jax.random.uniform(key, (fan_in, fan_out), jnp.float32, -limit, limit)


def init_gcn_params(key, num_features, num_classes, width):
    # GCN.__init__: GCNConv(num_features, width[0]), GCNConv(width[i], width[i+1]),
    # GCNConv(width[-1], num_classes); xavier-uniform weights, zero bias.
    dims = [num_features] + list(width) + [num_classes]
    params = []
    for i in range(len(dims) - 1):
        key, wk = jax.random.split(key)
        w = glorot(wk, dims[i], dims[i + 1])
        b = jnp.zeros((1, dims[i + 1]), jnp.float32)
        params.append((w, b))
    return params


def normalized_adjacency(edge_index, num_nodes):
    # Dense equivalent of PyG gcn_norm: A[dst, src] += 1, add self-loops,
    # deg = row sums, A_hat = D^{-1/2} A D^{-1/2}.
    src, dst = edge_index[0], edge_index[1]
    a = jnp.zeros((num_nodes, num_nodes), jnp.float32)
    a = a.at[dst, src].add(1.0)
    a = a + jnp.eye(num_nodes, dtype=jnp.float32)
    deg = jnp.sum(a, axis=1)
    d_inv_sqrt = jnp.where(deg > 0, 1.0 / jnp.sqrt(deg), 0.0)
    return d_inv_sqrt[:, None] * a * d_inv_sqrt[None, :]


def gcn_forward_ref(params, x, a_hat, compute_dtype=jnp.float32):
    # Pure-JAX reference with the same operand dtypes as the kernel (f32 accumulation).
    cd = compute_dtype
    a = a_hat.astype(cd)
    h = x
    for i, (w, b) in enumerate(params):
        xw = jnp.dot(h.astype(cd), w.astype(cd), preferred_element_type=jnp.float32)
        z = jnp.dot(a, xw.astype(cd), preferred_element_type=jnp.float32) + b
        if i < len(params) - 1:
            h = z * jax.nn.sigmoid(z)
        else:
            h = jax.nn.log_softmax(z, axis=1)
    return h


if __name__ == "__main__":
    N = 16            # number of graph nodes
    NUM_FEATURES = 8
    WIDTH = [32, 16]
    NUM_CLASSES = 4
    NUM_EDGES = 40

    key = jax.random.PRNGKey(0)
    key, xk, ek, pk = jax.random.split(key, 4)

    x = jax.random.normal(xk, (N, NUM_FEATURES), dtype=jnp.float32)
    edge_index = jax.random.randint(ek, (2, NUM_EDGES), 0, N, dtype=jnp.int32)

    a_hat = normalized_adjacency(edge_index, N)
    params = init_gcn_params(pk, NUM_FEATURES, NUM_CLASSES, WIDTH)

    out = gcn_forward(params, x, a_hat)          # one fused pallas_call
    out = jax.block_until_ready(out)

    assert out.shape == (N, NUM_CLASSES)

    # Tight check vs a reference using identical operand dtypes (bf16 MXU, f32 accum).
    ref_matched = gcn_forward_ref(params, x, a_hat, compute_dtype=jnp.bfloat16)
    assert jnp.allclose(out, ref_matched, atol=2e-3, rtol=2e-3), \
        "Pallas kernel mismatch vs dtype-matched JAX reference"

    # Loose sanity check vs full-f32 reference (bf16 operand rounding only).
    ref_f32 = gcn_forward_ref(params, x, a_hat, compute_dtype=jnp.float32)
    assert jnp.allclose(out, ref_f32, atol=1e-1, rtol=1e-1), \
        "Pallas kernel drifted too far from f32 reference"

    print("KERNEL_OK")
</pallas_src>

<mosaic_0001>
module attributes {stable_mosaic.version = 11 : i64} {
  func.func @gcn_fused_kernel(%arg0: i32, %arg1: memref<256x128xbf16, #tpu.memory_space<vmem>>, %arg2: memref<128x128xbf16, #tpu.memory_space<vmem>>, %arg3: memref<1x128xf32, #tpu.memory_space<vmem>>, %arg4: memref<128x128xbf16, #tpu.memory_space<vmem>>, %arg5: memref<1x128xf32, #tpu.memory_space<vmem>>, %arg6: memref<128x128xbf16, #tpu.memory_space<vmem>>, %arg7: memref<1x128xf32, #tpu.memory_space<vmem>>, %arg8: memref<256x256xbf16, #tpu.memory_space<any>>, %arg9: memref<256x128xf32, #tpu.memory_space<vmem>>, %arg10: memref<256x128xbf16, #tpu.memory_space<vmem>>, %arg11: memref<256x128xbf16, #tpu.memory_space<vmem>>, %arg12: memref<256x128xf32, #tpu.memory_space<vmem>>, %arg13: memref<2x256x256xbf16, #tpu.memory_space<vmem>>, %arg14: memref<2x!tpu.dma_semaphore, #tpu.memory_space<semaphore_mem>>) attributes {dimension_semantics = [#tpu.dimension_semantics<arbitrary>], iteration_bounds = array<i64: 1>, scalar_prefetch = 0 : i64, scratch_operands = 5 : i64, tpu.core_type = #tpu.core_type<tc>, window_params = [{pipeline_mode = #tpu.pipeline_mode<synchronous>, transform_indices = @transform_0, window_bounds = array<i64: 256, 128>}, {pipeline_mode = #tpu.pipeline_mode<synchronous>, transform_indices = @transform_1, window_bounds = array<i64: 128, 128>}, {pipeline_mode = #tpu.pipeline_mode<synchronous>, transform_indices = @transform_2, window_bounds = array<i64: 1, 128>}, {pipeline_mode = #tpu.pipeline_mode<synchronous>, transform_indices = @transform_3, window_bounds = array<i64: 128, 128>}, {pipeline_mode = #tpu.pipeline_mode<synchronous>, transform_indices = @transform_4, window_bounds = array<i64: 1, 128>}, {pipeline_mode = #tpu.pipeline_mode<synchronous>, transform_indices = @transform_5, window_bounds = array<i64: 128, 128>}, {pipeline_mode = #tpu.pipeline_mode<synchronous>, transform_indices = @transform_6, window_bounds = array<i64: 1, 128>}, {}, {pipeline_mode = #tpu.pipeline_mode<synchronous>, transform_indices = @transform_8, window_bounds = array<i64: 256, 128>}]} {
    %c0 = arith.constant 0 : index
    %c0_0 = arith.constant 0 : index
    %0 = vector.load %arg1[%c0, %c0_0] : memref<256x128xbf16, #tpu.memory_space<vmem>>, vector<256x128xbf16>
    %c0_1 = arith.constant 0 : index
    %c0_2 = arith.constant 0 : index
    %1 = vector.load %arg10[%c0_1, %c0_2] : memref<256x128xbf16, #tpu.memory_space<vmem>>, vector<256x128xbf16>
    tpu.vector_store %arg10[%c0_1, %c0_2], %0 {strides = array<i32>} : memref<256x128xbf16, #tpu.memory_space<vmem>>, vector<256x128xbf16>,
    %c0_3 = arith.constant 0 : index
    %c0_4 = arith.constant 0 : index
    %2 = vector.load %arg2[%c0_3, %c0_4] : memref<128x128xbf16, #tpu.memory_space<vmem>>, vector<128x128xbf16>
    %c0_5 = arith.constant 0 : index
    %c0_6 = arith.constant 0 : index
    %3 = vector.load %arg3[%c0_5, %c0_6] : memref<1x128xf32, #tpu.memory_space<vmem>>, vector<1x128xf32>
    %c0_i32 = arith.constant 0 : i32
    %c0_i32_7 = arith.constant 0 : i32
    %c0_i32_8 = arith.constant 0 : i32
    %c0_i32_9 = arith.constant 0 : i32
    %4 = tpu.memref_slice %arg8[%c0_i32_8, %c0_i32_9] : memref<256x256xbf16, #tpu.memory_space<any>> -> memref<256x256xbf16, #tpu.memory_space<any>>
    %c0_i32_10 = arith.constant 0 : i32
    %c0_i32_11 = arith.constant 0 : i32
    %5 = tpu.memref_slice %arg13[%c0_i32, %c0_i32_10, %c0_i32_11] : memref<2x256x256xbf16, #tpu.memory_space<vmem>> -> memref<1x256x256xbf16, #tpu.memory_space<vmem>>
    %6 = tpu.memref_squeeze %5 : memref<1x256x256xbf16, #tpu.memory_space<vmem>> -> memref<256x256xbf16, #tpu.memory_space<vmem>>
    %7 = tpu.memref_slice %arg14[%c0_i32_7] : memref<2x!tpu.dma_semaphore, #tpu.memory_space<semaphore_mem>> -> memref<1x!tpu.dma_semaphore, #tpu.memory_space<semaphore_mem>>
    %8 = tpu.memref_squeeze %7 : memref<1x!tpu.dma_semaphore, #tpu.memory_space<semaphore_mem>> -> memref<!tpu.dma_semaphore, #tpu.memory_space<semaphore_mem>>
    tpu.enqueue_dma source(%4 : memref<256x256xbf16, #tpu.memory_space<any>>) target(%6 : memref<256x256xbf16, #tpu.memory_space<vmem>>) target_semaphore(%8 : memref<!tpu.dma_semaphore, #tpu.memory_space<semaphore_mem>>)
    %c0_12 = arith.constant 0 : index
    %c0_13 = arith.constant 0 : index
    %9 = vector.load %arg10[%c0_12, %c0_13] : memref<256x128xbf16, #tpu.memory_space<vmem>>, vector<256x128xbf16>
    %cst = arith.constant dense<0.000000e+00> : vector<256x128xf32>
    %10 = tpu.matmul %9, %2, %cst {dimension_numbers = #tpu.dot_dimension_numbers<[1], [0], [0], [1], [0, 0, 1, 1], [], []>} : vector<256x128xbf16>, vector<128x128xbf16>, vector<256x128xf32> -> vector<256x128xf32>
    %11 = arith.truncf %10 : vector<256x128xf32> to vector<256x128xbf16>
    %c0_14 = arith.constant 0 : index
    %c0_15 = arith.constant 0 : index
    %12 = vector.load %arg11[%c0_14, %c0_15] : memref<256x128xbf16, #tpu.memory_space<vmem>>, vector<256x128xbf16>
    tpu.vector_store %arg11[%c0_14, %c0_15], %11 {strides = array<i32>} : memref<256x128xbf16, #tpu.memory_space<vmem>>, vector<256x128xbf16>,
    %c0_i32_16 = arith.constant 0 : i32
    %c0_i32_17 = arith.constant 0 : i32
    %c0_i32_18 = arith.constant 0 : i32
    %c0_i32_19 = arith.constant 0 : i32
    %13 = tpu.memref_slice %arg8[%c0_i32_18, %c0_i32_19] : memref<256x256xbf16, #tpu.memory_space<any>> -> memref<256x256xbf16, #tpu.memory_space<any>>
    %c0_i32_20 = arith.constant 0 : i32
    %c0_i32_21 = arith.constant 0 : i32
    %14 = tpu.memref_slice %arg13[%c0_i32_16, %c0_i32_20, %c0_i32_21] : memref<2x256x256xbf16, #tpu.memory_space<vmem>> -> memref<1x256x256xbf16, #tpu.memory_space<vmem>>
    %15 = tpu.memref_squeeze %14 : memref<1x256x256xbf16, #tpu.memory_space<vmem>> -> memref<256x256xbf16, #tpu.memory_space<vmem>>
    %16 = tpu.memref_slice %arg14[%c0_i32_17] : memref<2x!tpu.dma_semaphore, #tpu.memory_space<semaphore_mem>> -> memref<1x!tpu.dma_semaphore, #tpu.memory_space<semaphore_mem>>
    %17 = tpu.memref_squeeze %16 : memref<1x!tpu.dma_semaphore, #tpu.memory_space<semaphore_mem>> -> memref<!tpu.dma_semaphore, #tpu.memory_space<semaphore_mem>>
    tpu.wait_dma2 semaphore(%17 : memref<!tpu.dma_semaphore, #tpu.memory_space<semaphore_mem>>) src(%13 : memref<256x256xbf16, #tpu.memory_space<any>>) dst(%15 : memref<256x256xbf16, #tpu.memory_space<vmem>>)
    %c0_22 = arith.constant 0 : index
    %c0_23 = arith.constant 0 : index
    %c0_24 = arith.constant 0 : index
    %18 = vector.load %arg13[%c0_22, %c0_23, %c0_24] : memref<2x256x256xbf16, #tpu.memory_space<vmem>>, vector<1x256x256xbf16>
    %19 = vector.shape_cast %18 : vector<1x256x256xbf16> to vector<256x256xbf16>
    %c0_25 = arith.constant 0 : index
    %c0_26 = arith.constant 0 : index
    %20 = vector.load %arg11[%c0_25, %c0_26] : memref<256x128xbf16, #tpu.memory_space<vmem>>, vector<256x128xbf16>
    %cst_27 = arith.constant dense<0.000000e+00> : vector<256x128xf32>
    %21 = tpu.matmul %19, %20, %cst_27 {dimension_numbers = #tpu.dot_dimension_numbers<[1], [0], [0], [1], [0, 0, 1, 1], [], []>} : vector<256x256xbf16>, vector<256x128xbf16>, vector<256x128xf32> -> vector<256x128xf32>
    %c0_28 = arith.constant 0 : index
    %c0_29 = arith.constant 0 : index
    %22 = vector.load %arg12[%c0_28, %c0_29] : memref<256x128xf32, #tpu.memory_space<vmem>>, vector<256x128xf32>
    tpu.vector_store %arg12[%c0_28, %c0_29], %21 {strides = array<i32>} : memref<256x128xf32, #tpu.memory_space<vmem>>, vector<256x128xf32>,
    %c0_30 = arith.constant 0 : index
    %c0_31 = arith.constant 0 : index
    %23 = vector.load %arg12[%c0_30, %c0_31] : memref<256x128xf32, #tpu.memory_space<vmem>>, vector<256x128xf32>
    %24 = vector.broadcast %3 : vector<1x128xf32> to vector<256x128xf32>
    %25 = arith.addf %23, %24 : vector<256x128xf32>
    %26 = arith.negf %25 : vector<256x128xf32>
    %27 = math.exp %26 : vector<256x128xf32>
    %cst_32 = arith.constant 1.000000e+00 : f32
    %28 = vector.broadcast %cst_32 : f32 to vector<256x128xf32>
    %29 = arith.addf %28, %27 : vector<256x128xf32>
    %30 = arith.divf %28, %29 : vector<256x128xf32>
    %31 = arith.mulf %25, %30 : vector<256x128xf32>
    %32 = arith.truncf %31 : vector<256x128xf32> to vector<256x128xbf16>
    %c0_33 = arith.constant 0 : index
    %c0_34 = arith.constant 0 : index
    %33 = vector.load %arg10[%c0_33, %c0_34] : memref<256x128xbf16, #tpu.memory_space<vmem>>, vector<256x128xbf16>
    tpu.vector_store %arg10[%c0_33, %c0_34], %32 {strides = array<i32>} : memref<256x128xbf16, #tpu.memory_space<vmem>>, vector<256x128xbf16>,
    %c0_35 = arith.constant 0 : index
    %c0_36 = arith.constant 0 : index
    %34 = vector.load %arg4[%c0_35, %c0_36] : memref<128x128xbf16, #tpu.memory_space<vmem>>, vector<128x128xbf16>
    %c0_37 = arith.constant 0 : index
    %c0_38 = arith.constant 0 : index
    %35 = vector.load %arg5[%c0_37, %c0_38] : memref<1x128xf32, #tpu.memory_space<vmem>>, vector<1x128xf32>
    %c0_i32_39 = arith.constant 0 : i32
    %c0_i32_40 = arith.constant 0 : i32
    %c0_i32_41 = arith.constant 0 : i32
    %c0_i32_42 = arith.constant 0 : i32
    %36 = tpu.memref_slice %arg8[%c0_i32_41, %c0_i32_42] : memref<256x256xbf16, #tpu.memory_space<any>> -> memref<256x256xbf16, #tpu.memory_space<any>>
    %c0_i32_43 = arith.constant 0 : i32
    %c0_i32_44 = arith.constant 0 : i32
    %37 = tpu.memref_slice %arg13[%c0_i32_39, %c0_i32_43, %c0_i32_44] : memref<2x256x256xbf16, #tpu.memory_space<vmem>> -> memref<1x256x256xbf16, #tpu.memory_space<vmem>>
    %38 = tpu.memref_squeeze %37 : memref<1x256x256xbf16, #tpu.memory_space<vmem>> -> memref<256x256xbf16, #tpu.memory_space<vmem>>
    %39 = tpu.memref_slice %arg14[%c0_i32_40] : memref<2x!tpu.dma_semaphore, #tpu.memory_space<semaphore_mem>> -> memref<1x!tpu.dma_semaphore, #tpu.memory_space<semaphore_mem>>
    %40 = tpu.memref_squeeze %39 : memref<1x!tpu.dma_semaphore, #tpu.memory_space<semaphore_mem>> -> memref<!tpu.dma_semaphore, #tpu.memory_space<semaphore_mem>>
    tpu.enqueue_dma source(%36 : memref<256x256xbf16, #tpu.memory_space<any>>) target(%38 : memref<256x256xbf16, #tpu.memory_space<vmem>>) target_semaphore(%40 : memref<!tpu.dma_semaphore, #tpu.memory_space<semaphore_mem>>)
    %c0_45 = arith.constant 0 : index
    %c0_46 = arith.constant 0 : index
    %41 = vector.load %arg10[%c0_45, %c0_46] : memref<256x128xbf16, #tpu.memory_space<vmem>>, vector<256x128xbf16>
    %cst_47 = arith.constant dense<0.000000e+00> : vector<256x128xf32>
    %42 = tpu.matmul %41, %34, %cst_47 {dimension_numbers = #tpu.dot_dimension_numbers<[1], [0], [0], [1], [0, 0, 1, 1], [], []>} : vector<256x128xbf16>, vector<128x128xbf16>, vector<256x128xf32> -> vector<256x128xf32>
    %43 = arith.truncf %42 : vector<256x128xf32> to vector<256x128xbf16>
    %c0_48 = arith.constant 0 : index
    %c0_49 = arith.constant 0 : index
    %44 = vector.load %arg11[%c0_48, %c0_49] : memref<256x128xbf16, #tpu.memory_space<vmem>>, vector<256x128xbf16>
    tpu.vector_store %arg11[%c0_48, %c0_49], %43 {strides = array<i32>} : memref<256x128xbf16, #tpu.memory_space<vmem>>, vector<256x128xbf16>,
    %c0_i32_50 = arith.constant 0 : i32
    %c0_i32_51 = arith.constant 0 : i32
    %c0_i32_52 = arith.constant 0 : i32
    %c0_i32_53 = arith.constant 0 : i32
    %45 = tpu.memref_slice %arg8[%c0_i32_52, %c0_i32_53] : memref<256x256xbf16, #tpu.memory_space<any>> -> memref<256x256xbf16, #tpu.memory_space<any>>
    %c0_i32_54 = arith.constant 0 : i32
    %c0_i32_55 = arith.constant 0 : i32
    %46 = tpu.memref_slice %arg13[%c0_i32_50, %c0_i32_54, %c0_i32_55] : memref<2x256x256xbf16, #tpu.memory_space<vmem>> -> memref<1x256x256xbf16, #tpu.memory_space<vmem>>
    %47 = tpu.memref_squeeze %46 : memref<1x256x256xbf16, #tpu.memory_space<vmem>> -> memref<256x256xbf16, #tpu.memory_space<vmem>>
    %48 = tpu.memref_slice %arg14[%c0_i32_51] : memref<2x!tpu.dma_semaphore, #tpu.memory_space<semaphore_mem>> -> memref<1x!tpu.dma_semaphore, #tpu.memory_space<semaphore_mem>>
    %49 = tpu.memref_squeeze %48 : memref<1x!tpu.dma_semaphore, #tpu.memory_space<semaphore_mem>> -> memref<!tpu.dma_semaphore, #tpu.memory_space<semaphore_mem>>
    tpu.wait_dma2 semaphore(%49 : memref<!tpu.dma_semaphore, #tpu.memory_space<semaphore_mem>>) src(%45 : memref<256x256xbf16, #tpu.memory_space<any>>) dst(%47 : memref<256x256xbf16, #tpu.memory_space<vmem>>)
    %c0_56 = arith.constant 0 : index
    %c0_57 = arith.constant 0 : index
    %c0_58 = arith.constant 0 : index
    %50 = vector.load %arg13[%c0_56, %c0_57, %c0_58] : memref<2x256x256xbf16, #tpu.memory_space<vmem>>, vector<1x256x256xbf16>
    %51 = vector.shape_cast %50 : vector<1x256x256xbf16> to vector<256x256xbf16>
    %c0_59 = arith.constant 0 : index
    %c0_60 = arith.constant 0 : index
    %52 = vector.load %arg11[%c0_59, %c0_60] : memref<256x128xbf16, #tpu.memory_space<vmem>>, vector<256x128xbf16>
    %cst_61 = arith.constant dense<0.000000e+00> : vector<256x128xf32>
    %53 = tpu.matmul %51, %52, %cst_61 {dimension_numbers = #tpu.dot_dimension_numbers<[1], [0], [0], [1], [0, 0, 1, 1], [], []>} : vector<256x256xbf16>, vector<256x128xbf16>, vector<256x128xf32> -> vector<256x128xf32>
    %c0_62 = arith.constant 0 : index
    %c0_63 = arith.constant 0 : index
    %54 = vector.load %arg12[%c0_62, %c0_63] : memref<256x128xf32, #tpu.memory_space<vmem>>, vector<256x128xf32>
    tpu.vector_store %arg12[%c0_62, %c0_63], %53 {strides = array<i32>} : memref<256x128xf32, #tpu.memory_space<vmem>>, vector<256x128xf32>,
    %c0_64 = arith.constant 0 : index
    %c0_65 = arith.constant 0 : index
    %55 = vector.load %arg12[%c0_64, %c0_65] : memref<256x128xf32, #tpu.memory_space<vmem>>, vector<256x128xf32>
    %56 = vector.broadcast %35 : vector<1x128xf32> to vector<256x128xf32>
    %57 = arith.addf %55, %56 : vector<256x128xf32>
    %58 = arith.negf %57 : vector<256x128xf32>
    %59 = math.exp %58 : vector<256x128xf32>
    %cst_66 = arith.constant 1.000000e+00 : f32
    %60 = vector.broadcast %cst_66 : f32 to vector<256x128xf32>
    %61 = arith.addf %60, %59 : vector<256x128xf32>
    %62 = arith.divf %60, %61 : vector<256x128xf32>
    %63 = arith.mulf %57, %62 : vector<256x128xf32>
    %64 = arith.truncf %63 : vector<256x128xf32> to vector<256x128xbf16>
    %c0_67 = arith.constant 0 : index
    %c0_68 = arith.constant 0 : index
    %65 = vector.load %arg10[%c0_67, %c0_68] : memref<256x128xbf16, #tpu.memory_space<vmem>>, vector<256x128xbf16>
    tpu.vector_store %arg10[%c0_67, %c0_68], %64 {strides = array<i32>} : memref<256x128xbf16, #tpu.memory_space<vmem>>, vector<256x128xbf16>,
    %c0_69 = arith.constant 0 : index
    %c0_70 = arith.constant 0 : index
    %66 = vector.load %arg6[%c0_69, %c0_70] : memref<128x128xbf16, #tpu.memory_space<vmem>>, vector<128x128xbf16>
    %c0_71 = arith.constant 0 : index
    %c0_72 = arith.constant 0 : index
    %67 = vector.load %arg7[%c0_71, %c0_72] : memref<1x128xf32, #tpu.memory_space<vmem>>, vector<1x128xf32>
    %c0_i32_73 = arith.constant 0 : i32
    %c0_i32_74 = arith.constant 0 : i32
    %c0_i32_75 = arith.constant 0 : i32
    %c0_i32_76 = arith.constant 0 : i32
    %68 = tpu.memref_slice %arg8[%c0_i32_75, %c0_i32_76] : memref<256x256xbf16, #tpu.memory_space<any>> -> memref<256x256xbf16, #tpu.memory_space<any>>
    %c0_i32_77 = arith.constant 0 : i32
    %c0_i32_78 = arith.constant 0 : i32
    %69 = tpu.memref_slice %arg13[%c0_i32_73, %c0_i32_77, %c0_i32_78] : memref<2x256x256xbf16, #tpu.memory_space<vmem>> -> memref<1x256x256xbf16, #tpu.memory_space<vmem>>
    %70 = tpu.memref_squeeze %69 : memref<1x256x256xbf16, #tpu.memory_space<vmem>> -> memref<256x256xbf16, #tpu.memory_space<vmem>>
    %71 = tpu.memref_slice %arg14[%c0_i32_74] : memref<2x!tpu.dma_semaphore, #tpu.memory_space<semaphore_mem>> -> memref<1x!tpu.dma_semaphore, #tpu.memory_space<semaphore_mem>>
    %72 = tpu.memref_squeeze %71 : memref<1x!tpu.dma_semaphore, #tpu.memory_space<semaphore_mem>> -> memref<!tpu.dma_semaphore, #tpu.memory_space<semaphore_mem>>
    tpu.enqueue_dma source(%68 : memref<256x256xbf16, #tpu.memory_space<any>>) target(%70 : memref<256x256xbf16, #tpu.memory_space<vmem>>) target_semaphore(%72 : memref<!tpu.dma_semaphore, #tpu.memory_space<semaphore_mem>>)
    %c0_79 = arith.constant 0 : index
    %c0_80 = arith.constant 0 : index
    %73 = vector.load %arg10[%c0_79, %c0_80] : memref<256x128xbf16, #tpu.memory_space<vmem>>, vector<256x128xbf16>
    %cst_81 = arith.constant dense<0.000000e+00> : vector<256x128xf32>
    %74 = tpu.matmul %73, %66, %cst_81 {dimension_numbers = #tpu.dot_dimension_numbers<[1], [0], [0], [1], [0, 0, 1, 1], [], []>} : vector<256x128xbf16>, vector<128x128xbf16>, vector<256x128xf32> -> vector<256x128xf32>
    %75 = arith.truncf %74 : vector<256x128xf32> to vector<256x128xbf16>
    %c0_82 = arith.constant 0 : index
    %c0_83 = arith.constant 0 : index
    %76 = vector.load %arg11[%c0_82, %c0_83] : memref<256x128xbf16, #tpu.memory_space<vmem>>, vector<256x128xbf16>
    tpu.vector_store %arg11[%c0_82, %c0_83], %75 {strides = array<i32>} : memref<256x128xbf16, #tpu.memory_space<vmem>>, vector<256x128xbf16>,
    %c0_i32_84 = arith.constant 0 : i32
    %c0_i32_85 = arith.constant 0 : i32
    %c0_i32_86 = arith.constant 0 : i32
    %c0_i32_87 = arith.constant 0 : i32
    %77 = tpu.memref_slice %arg8[%c0_i32_86, %c0_i32_87] : memref<256x256xbf16, #tpu.memory_space<any>> -> memref<256x256xbf16, #tpu.memory_space<any>>
    %c0_i32_88 = arith.constant 0 : i32
    %c0_i32_89 = arith.constant 0 : i32
    %78 = tpu.memref_slice %arg13[%c0_i32_84, %c0_i32_88, %c0_i32_89] : memref<2x256x256xbf16, #tpu.memory_space<vmem>> -> memref<1x256x256xbf16, #tpu.memory_space<vmem>>
    %79 = tpu.memref_squeeze %78 : memref<1x256x256xbf16, #tpu.memory_space<vmem>> -> memref<256x256xbf16, #tpu.memory_space<vmem>>
    %80 = tpu.memref_slice %arg14[%c0_i32_85] : memref<2x!tpu.dma_semaphore, #tpu.memory_space<semaphore_mem>> -> memref<1x!tpu.dma_semaphore, #tpu.memory_space<semaphore_mem>>
    %81 = tpu.memref_squeeze %80 : memref<1x!tpu.dma_semaphore, #tpu.memory_space<semaphore_mem>> -> memref<!tpu.dma_semaphore, #tpu.memory_space<semaphore_mem>>
    tpu.wait_dma2 semaphore(%81 : memref<!tpu.dma_semaphore, #tpu.memory_space<semaphore_mem>>) src(%77 : memref<256x256xbf16, #tpu.memory_space<any>>) dst(%79 : memref<256x256xbf16, #tpu.memory_space<vmem>>)
    %c0_90 = arith.constant 0 : index
    %c0_91 = arith.constant 0 : index
    %c0_92 = arith.constant 0 : index
    %82 = vector.load %arg13[%c0_90, %c0_91, %c0_92] : memref<2x256x256xbf16, #tpu.memory_space<vmem>>, vector<1x256x256xbf16>
    %83 = vector.shape_cast %82 : vector<1x256x256xbf16> to vector<256x256xbf16>
    %c0_93 = arith.constant 0 : index
    %c0_94 = arith.constant 0 : index
    %84 = vector.load %arg11[%c0_93, %c0_94] : memref<256x128xbf16, #tpu.memory_space<vmem>>, vector<256x128xbf16>
    %cst_95 = arith.constant dense<0.000000e+00> : vector<256x128xf32>
    %85 = tpu.matmul %83, %84, %cst_95 {dimension_numbers = #tpu.dot_dimension_numbers<[1], [0], [0], [1], [0, 0, 1, 1], [], []>} : vector<256x256xbf16>, vector<256x128xbf16>, vector<256x128xf32> -> vector<256x128xf32>
    %c0_96 = arith.constant 0 : index
    %c0_97 = arith.constant 0 : index
    %86 = vector.load %arg12[%c0_96, %c0_97] : memref<256x128xf32, #tpu.memory_space<vmem>>, vector<256x128xf32>
    tpu.vector_store %arg12[%c0_96, %c0_97], %85 {strides = array<i32>} : memref<256x128xf32, #tpu.memory_space<vmem>>, vector<256x128xf32>,
    %c0_98 = arith.constant 0 : index
    %c0_99 = arith.constant 0 : index
    %87 = vector.load %arg12[%c0_98, %c0_99] : memref<256x128xf32, #tpu.memory_space<vmem>>, vector<256x128xf32>
    %88 = vector.broadcast %67 : vector<1x128xf32> to vector<256x128xf32>
    %89 = arith.addf %87, %88 : vector<256x128xf32>
    %90 = tpu.iota {dimensions = array<i32: 1>} : vector<256x128xi32>
    %c4_i32 = arith.constant 4 : i32
    %91 = vector.broadcast %c4_i32 : i32 to vector<256x128xi32>
    %92 = arith.cmpi slt, %90, %91 : vector<256x128xi32>
    %cst_100 = arith.constant 0xFF800000 : f32
    %93 = vector.broadcast %cst_100 : f32 to vector<256x128xf32>
    %94 = arith.select %92, %89, %93 : vector<256x128xi1>, vector<256x128xf32>
    %cst_101 = arith.constant dense<0xFF800000> : vector<256xf32>
    %95 = vector.multi_reduction <maximumf>, %94, %cst_101 [1] : vector<256x128xf32> to vector<256xf32>
    %96 = vector.shape_cast %95 : vector<256xf32> to vector<256x1xf32>
    %97 = vector.broadcast %96 : vector<256x1xf32> to vector<256x128xf32>
    %98 = arith.subf %94, %97 : vector<256x128xf32>
    %99 = math.exp %98 : vector<256x128xf32>
    %cst_102 = arith.constant 0.000000e+00 : f32
    %100 = vector.broadcast %cst_102 : f32 to vector<256x128xf32>
    %101 = arith.select %92, %99, %100 : vector<256x128xi1>, vector<256x128xf32>
    %cst_103 = arith.constant dense<0.000000e+00> : vector<256xf32>
    %102 = vector.multi_reduction <add>, %101, %cst_103 [1] : vector<256x128xf32> to vector<256xf32>
    %103 = vector.shape_cast %102 : vector<256xf32> to vector<256x1xf32>
    %104 = math.log %103 : vector<256x1xf32>
    %105 = vector.broadcast %96 : vector<256x1xf32> to vector<256x128xf32>
    %106 = arith.subf %94, %105 : vector<256x128xf32>
    %107 = vector.broadcast %104 : vector<256x1xf32> to vector<256x128xf32>
    %108 = arith.subf %106, %107 : vector<256x128xf32>
    %cst_104 = arith.constant 0.000000e+00 : f32
    %109 = vector.broadcast %cst_104 : f32 to vector<256x128xf32>
    %110 = arith.select %92, %108, %109 : vector<256x128xi1>, vector<256x128xf32>
    %c0_105 = arith.constant 0 : index
    %c0_106 = arith.constant 0 : index
    %111 = vector.load %arg9[%c0_105, %c0_106] : memref<256x128xf32, #tpu.memory_space<vmem>>, vector<256x128xf32>
    tpu.vector_store %arg9[%c0_105, %c0_106], %110 {strides = array<i32>} : memref<256x128xf32, #tpu.memory_space<vmem>>, vector<256x128xf32>,
    return
  }
  func.func @transform_0(%arg0: i32) -> (i32, i32) {
    %c0_i32 = arith.constant 0 : i32
    %c0_i32_0 = arith.constant 0 : i32
    %c0_i32_1 = arith.constant 0 : i32
    return %c0_i32, %c0_i32_0 : i32, i32
  }
  func.func @transform_1(%arg0: i32) -> (i32, i32) {
    %c0_i32 = arith.constant 0 : i32
    %c0_i32_0 = arith.constant 0 : i32
    %c0_i32_1 = arith.constant 0 : i32
    return %c0_i32, %c0_i32_0 : i32, i32
  }
  func.func @transform_2(%arg0: i32) -> (i32, i32) {
    %c0_i32 = arith.constant 0 : i32
    %c0_i32_0 = arith.constant 0 : i32
    %c0_i32_1 = arith.constant 0 : i32
    return %c0_i32, %c0_i32_0 : i32, i32
  }
  func.func @transform_3(%arg0: i32) -> (i32, i32) {
    %c0_i32 = arith.constant 0 : i32
    %c0_i32_0 = arith.constant 0 : i32
    %c0_i32_1 = arith.constant 0 : i32
    return %c0_i32, %c0_i32_0 : i32, i32
  }
  func.func @transform_4(%arg0: i32) -> (i32, i32) {
    %c0_i32 = arith.constant 0 : i32
    %c0_i32_0 = arith.constant 0 : i32
    %c0_i32_1 = arith.constant 0 : i32
    return %c0_i32, %c0_i32_0 : i32, i32
  }
  func.func @transform_5(%arg0: i32) -> (i32, i32) {
    %c0_i32 = arith.constant 0 : i32
    %c0_i32_0 = arith.constant 0 : i32
    %c0_i32_1 = arith.constant 0 : i32
    return %c0_i32, %c0_i32_0 : i32, i32
  }
  func.func @transform_6(%arg0: i32) -> (i32, i32) {
    %c0_i32 = arith.constant 0 : i32
    %c0_i32_0 = arith.constant 0 : i32
    %c0_i32_1 = arith.constant 0 : i32
    return %c0_i32, %c0_i32_0 : i32, i32
  }
  func.func @transform_8(%arg0: i32) -> (i32, i32) {
    %c0_i32 = arith.constant 0 : i32
    %c0_i32_0 = arith.constant 0 : i32
    %c0_i32_1 = arith.constant 0 : i32
    return %c0_i32, %c0_i32_0 : i32, i32
  }
}

</mosaic_0001>

<bundles_post_ra>
// kernel: tpu_custom_call.1
= control target key start
LH: loop header
LB: loop body
LE: loop exit
PB: predicated region body
PF: predicated region fallthrough
CT: control target
= control target key end

     0   :  { %13 = vsyncpa [#allocation8], 0  ;;  %s8132_s0 = inlined_call_operand.hbm [shape: bf16[256,128], index: 0, kind: input, shape index: {}]   ;;  %s8133_s1 = inlined_call_operand.hbm [shape: bf16[128,128], index: 1, kind: input, shape index: {}]   ;;  %s8134_s2 = inlined_call_operand.vmem [shape: f32[1,128], index: 2, kind: input, shape index: {}]   ;;  %s8135_s3 = inlined_call_operand.hbm [shape: bf16[128,128], index: 3, kind: input, shape index: {}]   ;;  %s8136_s4 = inlined_call_operand.vmem [shape: f32[1,128], index: 4, kind: input, shape index: {}]   ;;  %s8137_s5 = inlined_call_operand.hbm [shape: bf16[128,128], index: 5, kind: input, shape index: {}]   ;;  %s8138_s6 = inlined_call_operand.vmem [shape: f32[1,128], index: 6, kind: input, shape index: {}]   ;;  %s8139_s7 = inlined_call_operand.hbm [shape: bf16[256,256], index: 7, kind: input, shape index: {}]   ;;  %s8140_s8 = inlined_call_operand.hbm [shape: f32[256,128], index: 8, kind: output, shape index: {}]  }
   0x1   :  { %14 = vsyncpa [#allocation11], 0 }
   0x2   :  { %15 = vsyncpa [#allocation14], 0 }
   0x3   :  { %16 = vsyncpa [#allocation9], 0  ;;  %s7211_s27 = smov [#allocation10]   ;;  %s7212_s29 = smov [#allocation7]  }
   0x4   :  { %s34_s28 = sshll.u32 %s7211_s27, 4  ;;  %s22_s30 = sshll.u32 %s7212_s29, 4  ;;  %s35_s28 = int_to_ptr.vmem [resolvable:$true] %s34_s28  ;;  %s23_s30 = int_to_ptr.vmem [resolvable:$true] %s22_s30 }
   0x5   :  { %s7045_s9 = scalar_lea.vmem %s35_s28, 1024  ;;  %p7050_p1 = scmp.lt.s32.totalorder %s35_s28, %s35_s28 }
   0x6   :  { %p7046_p0 = scmp.ne.s32.totalorder %s35_s28, %s7045_s9  ;;  %p7051_p2 = scmp.lt.s32.totalorder %s7045_s9, %s7045_s9 }
   0x8   :  { %p7052_p3 = por %p7051_p2, %p7050_p1 }
   0xa   :  { %p7053_p4 = pnand %p7052_p3, %p7046_p0 }
   0xc   :  { %7056 = shalt.err (!%p7053_p4)
}
   0xd   :  { %s7213_s10 = smov 64   ;;  %s7214_s11 = smov 4  }
   0xe   :  { %40 = dma.hbm_to_vmem [thread:$0]  %s8133_s1, 1024, %s35_s28, [#allocation11], %s7213_s10, %s7213_s10, %s7214_s11  }
   0xf   :  { %s7065_s14 = scalar_lea.vmem %s23_s30, 2048  ;;  %p7070_p6 = scmp.lt.s32.totalorder %s23_s30, %s23_s30 }
  0x10   :  { %p7066_p5 = scmp.ne.s32.totalorder %s23_s30, %s7065_s14  ;;  %p7071_p7 = scmp.lt.s32.totalorder %s7065_s14, %s7065_s14 }
  0x12   :  { %p7072_p8 = por %p7071_p7, %p7070_p6 }
  0x14   :  { %p7073_p9 = pnand %p7072_p8, %p7066_p5 }
  0x16   :  { %7076 = shalt.err (!%p7073_p9)
}
  0x17   :  { %28 = dma.hbm_to_vmem [thread:$0]  %s8132_s0, 2048, %s23_s30, [#allocation8], %s7213_s10, %s7213_s10, %s7214_s11  }
  0x18   :  { %s7215_s17 = smov [#allocation12]   ;;  %s7216_s19 = smov [#allocation13]  }
  0x19   :  { %s48_s18 = sshll.u32 %s7215_s17, 4  ;;  %s62_s20 = sshll.u32 %s7216_s19, 4  ;;  %s49_s18 = int_to_ptr.vmem [resolvable:$true] %s48_s18  ;;  %s63_s20 = int_to_ptr.vmem [resolvable:$true] %s62_s20 }
  0x1a   :  { %s7085_s1 = scalar_lea.vmem %s49_s18, 1024  ;;  %p7090_p11 = scmp.lt.s32.totalorder %s49_s18, %s49_s18 }
  0x1b   :  { %p7086_p10 = scmp.ne.s32.totalorder %s49_s18, %s7085_s1  ;;  %p7091_p12 = scmp.lt.s32.totalorder %s7085_s1, %s7085_s1 }
  0x1d   :  { %p7092_p13 = por %p7091_p12, %p7090_p11 }
  0x1f   :  { %p7093_p0 = pnand %p7092_p13, %p7086_p10 }
  0x21   :  { %7096 = shalt.err (!%p7093_p0)
}
  0x22   :  { %54 = dma.hbm_to_vmem [thread:$0]  %s8135_s3, 1024, %s49_s18, [#allocation11], %s7213_s10, %s7213_s10, %s7214_s11  }
  0x23   :  { %s7105_s0 = scalar_lea.vmem %s63_s20, 1024  ;;  %p7110_p2 = scmp.lt.s32.totalorder %s63_s20, %s63_s20 }
  0x24   :  { %p7106_p1 = scmp.ne.s32.totalorder %s63_s20, %s7105_s0  ;;  %p7111_p3 = scmp.lt.s32.totalorder %s7105_s0, %s7105_s0 }
  0x26   :  { %p7112_p4 = por %p7111_p3, %p7110_p2 }
  0x28   :  { %p7113_p5 = pnand %p7112_p4, %p7106_p1 }
  0x2a   :  { %7116 = shalt.err (!%p7113_p5)
}
  0x2b   :  { %68 = dma.hbm_to_vmem [thread:$0]  %s8137_s5, 1024, %s63_s20, [#allocation14], %s7213_s10, %s7213_s10, %s7214_s11  }
  0x2c   :  { %7197 = dma.done.wait [#allocation8], 2048  }
  0x2d   :  { %7198 = vsyncadd [#allocation8], 4294965248 }
  0x2e   :  { %7199 = dma.done.wait [#allocation11], 2048  }
  0x2f   :  { %7200 = vsyncadd [#allocation11], 4294965248 }
  0x30   :  { %7201 = dma.done.wait [#allocation14], 1024  }
  0x31   :  { %7202 = vsyncadd [#allocation14], 4294966272  ;;  %v7293_v0 = vld [vmem:[%s8134_s2] ss:$0 sm:$0xff]  ;;  %v6389_v1 = vld [vmem:[#allocation10 + $0x38] sm:$0xff]   ;;  %s7217_s2 = smov [#allocation5]  }
  0x32   :  { %v6390_v2 = vld [vmem:[#allocation10 + $0x30] sm:$0xff]   ;;  %6219 = vmatprep.subr.bf16.mxu0 %v6389_v1  ;;  %v6391_v3 = vld [vmem:[#allocation10 + $0x28] sm:$0xff]   ;;  %v6392_v4 = vld [vmem:[#allocation10 + $0x20] sm:$0xff]   ;;  %s172_s5 = sshll.u32 %s7217_s2, 4  ;;  %s7295_s5 = int_to_ptr.vmem [resolvable:$true] %s172_s5 }
  0x33   :  { %6220 = vmatpush3.bf16.msra.mxu0 %v6389_v1  ;;  %v84_v5 = vld [vmem:[#allocation7] sm:$0xff]   ;;  %v86_v6 = vld [vmem:[#allocation7 + $0x8] sm:$0xff]   ;;  %v88_v7 = vld [vmem:[#allocation7 + $0x10] sm:$0xff]   ;;  %s7125_s26 = scalar_lea.vmem %s7295_s5, 4096  ;;  %s7129_s27 = scalar_lea.vmem %s7295_s5, 8192 }
  0x34   :  { %6221 = vmatprep.subr.bf16.mxu0 %v6390_v2  ;;  %116 = vst [vmem:[#allocation2] sm:$0xff] %v84_v5   ;;  %118 = vst [vmem:[#allocation2 + $0x8] sm:$0xff] %v86_v6   ;;  %v90_v8 = vld [vmem:[#allocation7 + $0x18] sm:$0xff]   ;;  %v92_v9 = vld [vmem:[#allocation7 + $0x20] sm:$0xff]   ;;  %p7126_p6 = scmp.ne.s32.totalorder %s7295_s5, %s7125_s26  ;;  %p7130_p7 = scmp.lt.s32.totalorder %s7295_s5, %s7295_s5 }
  0x35   :  { %120 = vst [vmem:[#allocation2 + $0x10] sm:$0xff] %v88_v7   ;;  %122 = vst [vmem:[#allocation2 + $0x18] sm:$0xff] %v90_v8   ;;  %v94_v10 = vld [vmem:[#allocation7 + $0x28] sm:$0xff]   ;;  %v96_v11 = vld [vmem:[#allocation7 + $0x30] sm:$0xff]   ;;  %p7131_p8 = scmp.lt.s32.totalorder %s7129_s27, %s7125_s26 }
  0x36   :  { %124 = vst [vmem:[#allocation2 + $0x20] sm:$0xff] %v92_v9   ;;  %v98_v12 = vld [vmem:[#allocation7 + $0x38] sm:$0xff]   ;;  %126 = vst [vmem:[#allocation2 + $0x28] sm:$0xff] %v94_v10   ;;  %v100_v13 = vld [vmem:[#allocation7 + $0x40] sm:$0xff]  }
  0x37   :  { %6222 = vmatpush3.bf16.msra.mxu0 %v6390_v2  ;;  %128 = vst [vmem:[#allocation2 + $0x30] sm:$0xff] %v96_v11   ;;  %130 = vst [vmem:[#allocation2 + $0x38] sm:$0xff] %v98_v12   ;;  %v102_v14 = vld [vmem:[#allocation7 + $0x48] sm:$0xff]   ;;  %v104_v15 = vld [vmem:[#allocation7 + $0x50] sm:$0xff]   ;;  %p7132_p9 = por %p7131_p8, %p7130_p7 }
  0x38   :  { %6223 = vmatprep.subr.bf16.mxu0 %v6391_v3  ;;  %132 = vst [vmem:[#allocation2 + $0x40] sm:$0xff] %v100_v13   ;;  %134 = vst [vmem:[#allocation2 + $0x48] sm:$0xff] %v102_v14   ;;  %v106_v16 = vld [vmem:[#allocation7 + $0x58] sm:$0xff]   ;;  %v108_v17 = vld [vmem:[#allocation7 + $0x60] sm:$0xff]  }
  0x39   :  { %136 = vst [vmem:[#allocation2 + $0x50] sm:$0xff] %v104_v15   ;;  %v110_v18 = vld [vmem:[#allocation7 + $0x68] sm:$0xff]   ;;  %v6393_v19 = vld [vmem:[#allocation10 + $0x18] sm:$0xff]   ;;  %138 = vst [vmem:[#allocation2 + $0x58] sm:$0xff] %v106_v16   ;;  %p7302_p10 = pnand %p7132_p9, %p7126_p6 }
  0x3a   :  { %140 = vst [vmem:[#allocation2 + $0x60] sm:$0xff] %v108_v17   ;;  %142 = vst [vmem:[#allocation2 + $0x68] sm:$0xff] %v110_v18   ;;  %v112_v20 = vld [vmem:[#allocation7 + $0x70] sm:$0xff]   ;;  %v114_v21 = vld [vmem:[#allocation7 + $0x78] sm:$0xff]  }
  0x3b   :  { %6224 = vmatpush3.bf16.msra.mxu0 %v6391_v3  ;;  %144 = vst [vmem:[#allocation2 + $0x70] sm:$0xff] %v112_v20   ;;  %146 = vst [vmem:[#allocation2 + $0x78] sm:$0xff] %v114_v21   ;;  %v6397_v22 = vld [vmem:[#allocation2] sm:$0xff]   ;;  %v6394_v23 = vld [vmem:[#allocation10 + $0x10] sm:$0xff]  }
  0x3c   :  { %6225 = vmatprep.subr.bf16.mxu0 %v6392_v4  ;;  %6235 = vmatprep.mubr.bf16.mxu0 %v6397_v22  ;;  %v6395_v24 = vld [vmem:[#allocation10 + $0x8] sm:$0xff]   ;;  %v6396_v25 = vld [vmem:[#allocation10] sm:$0xff]   ;;  %v6399_v27 = vld [vmem:[#allocation2 + $0x10] sm:$0xff]  }
  0x3d   :  { %v6398_v26 = vld [vmem:[#allocation2 + $0x8] sm:$0xff]   ;;  %v6400_v28 = vld [vmem:[#allocation2 + $0x18] sm:$0xff]   ;;  %v6401_v29 = vld [vmem:[#allocation2 + $0x20] sm:$0xff]  }
  0x3e   :  { %v6402_v30 = vld [vmem:[#allocation2 + $0x28] sm:$0xff]   ;;  %v6403_v31 = vld [vmem:[#allocation2 + $0x30] sm:$0xff]   ;;  %v6404_v32 = vld [vmem:[#allocation2 + $0x38] sm:$0xff]  }
  0x3f   :  { %6226 = vmatpush3.bf16.msra.mxu0 %v6392_v4  ;;  %v6405_v33 = vld [vmem:[#allocation2 + $0x40] sm:$0xff]   ;;  %v6406_v34 = vld [vmem:[#allocation2 + $0x48] sm:$0xff]  }
  0x40   :  { %6227 = vmatprep.subr.bf16.mxu0 %v6393_v19  ;;  %v6407_v35 = vld [vmem:[#allocation2 + $0x50] sm:$0xff]   ;;  %v6408_v36 = vld [vmem:[#allocation2 + $0x58] sm:$0xff]  }
  0x41   :  { %v6409_v37 = vld [vmem:[#allocation2 + $0x60] sm:$0xff]   ;;  %v6410_v38 = vld [vmem:[#allocation2 + $0x68] sm:$0xff]  }
  0x42   :  { %v6411_v39 = vld [vmem:[#allocation2 + $0x70] sm:$0xff]   ;;  %v6412_v40 = vld [vmem:[#allocation2 + $0x78] sm:$0xff]  }
  0x43   :  { %6228 = vmatpush3.bf16.msra.mxu0 %v6393_v19 }
  0x44   :  { %6229 = vmatprep.subr.bf16.mxu0 %v6394_v23 }
  0x47   :  { %6230 = vmatpush3.bf16.msra.mxu0 %v6394_v23 }
  0x48   :  { %6231 = vmatprep.subr.bf16.mxu0 %v6395_v24 }
  0x4b   :  { %6232 = vmatpush3.bf16.msra.mxu0 %v6395_v24 }
  0x4c   :  { %6233 = vmatprep.subr.bf16.mxu0 %v6396_v25 }
  0x4f   :  { %6234 = vmatpush3.bf16.msra.mxu0 %v6396_v25 }
  0x52   :  { %6236 = vmatmul.mubr.bf16.vlgmr.msra.gmra.mxu0 %v6398_v26 }
  0x53   :  { %6239 = vmatprep.mubr.bf16.mxu0 %v6399_v27 }
  0x5a   :  { %6240 = vmatmul.mubr.bf16.gmra.mxu0 %v6400_v28 }
  0x5b   :  { %6243 = vmatprep.mubr.bf16.mxu0 %v6401_v29 }
  0x62   :  { %6244 = vmatmul.mubr.bf16.gmra.mxu0 %v6402_v30 }
  0x63   :  { %6247 = vmatprep.mubr.bf16.mxu0 %v6403_v31 }
  0x6a   :  { %6248 = vmatmul.mubr.bf16.gmra.mxu0 %v6404_v32 }
  0x6b   :  { %6251 = vmatprep.mubr.bf16.mxu0 %v6405_v33 }
  0x72   :  { %6252 = vmatmul.mubr.bf16.gmra.mxu0 %v6406_v34 }
  0x73   :  { %6255 = vmatprep.mubr.bf16.mxu0 %v6407_v35 }
  0x7a   :  { %6256 = vmatmul.mubr.bf16.gmra.mxu0 %v6408_v36 }
  0x7b   :  { %6259 = vmatprep.mubr.bf16.mxu0 %v6409_v37 }
  0x82   :  { %6260 = vmatmul.mubr.bf16.gmra.mxu0 %v6410_v38 }
  0x83   :  { %6263 = vmatprep.mubr.bf16.mxu0 %v6411_v39 }
  0x8a   :  { %6264 = vmatmul.mubr.bf16.gmra.mxu0 %v6412_v40 }
  0x8b   :  { %7136 = shalt.err (!%p7302_p10)  }
  0x8c   :  { %175 = dma.hbm_to_vmem [thread:$0]  %s8139_s7, 4096, %s7295_s5, [#allocation6] }
 0x112   :  { %v6237_v41 = vpop.f32.mrf.mxu0 }
 0x114   :  { %v386_v42 = vpop.f32.mrf.mxu0 }
 0x116   :  { %v6238_v43 = vpop.f32.mrf.mxu0 }
 0x117   :  { %v5344_v44 = vpack.c.bf16 %v6238_v43, %v6237_v41 }
 0x118   :  { %v389_v45 = vpop.f32.mrf.mxu0 }
 0x119   :  { %5736 = vst [vmem:[#allocation3 + $0x8] sm:$0xff] %v5344_v44   ;;  %v5339_v46 = vpack.c.bf16 %v389_v45, %v386_v42 }
 0x11a   :  { %v6241_v47 = vpop.f32.mrf.mxu0 }
 0x11b   :  { %5340 = vst [vmem:[#allocation3] sm:$0xff] %v5339_v46  }
 0x11c   :  { %v402_v48 = vpop.f32.mrf.mxu0 }
 0x11e   :  { %v6242_v49 = vpop.f32.mrf.mxu0 }
 0x11f   :  { %v5354_v50 = vpack.c.bf16 %v6242_v49, %v6241_v47 }
 0x120   :  { %v405_v51 = vpop.f32.mrf.mxu0 }
 0x121   :  { %5738 = vst [vmem:[#allocation3 + $0x18] sm:$0xff] %v5354_v50   ;;  %v5349_v52 = vpack.c.bf16 %v405_v51, %v402_v48 }
 0x122   :  { %v6245_v53 = vpop.f32.mrf.mxu0 }
 0x123   :  { %5737 = vst [vmem:[#allocation3 + $0x10] sm:$0xff] %v5349_v52  }
 0x124   :  { %v418_v54 = vpop.f32.mrf.mxu0 }
 0x126   :  { %v6246_v55 = vpop.f32.mrf.mxu0 }
 0x127   :  { %v5364_v56 = vpack.c.bf16 %v6246_v55, %v6245_v53 }
 0x128   :  { %v421_v57 = vpop.f32.mrf.mxu0 }
 0x129   :  { %5740 = vst [vmem:[#allocation3 + $0x28] sm:$0xff] %v5364_v56   ;;  %v5359_v58 = vpack.c.bf16 %v421_v57, %v418_v54 }
 0x12a   :  { %v6249_v59 = vpop.f32.mrf.mxu0 }
 0x12b   :  { %5739 = vst [vmem:[#allocation3 + $0x20] sm:$0xff] %v5359_v58  }
 0x12c   :  { %v434_v60 = vpop.f32.mrf.mxu0 }
 0x12e   :  { %v6250_v61 = vpop.f32.mrf.mxu0 }
 0x12f   :  { %v5374_v62 = vpack.c.bf16 %v6250_v61, %v6249_v59 }
 0x130   :  { %v437_v63 = vpop.f32.mrf.mxu0 }
 0x131   :  { %5742 = vst [vmem:[#allocation3 + $0x38] sm:$0xff] %v5374_v62   ;;  %v5369_v1 = vpack.c.bf16 %v437_v63, %v434_v60 }
 0x132   :  { %v6253_v2 = vpop.f32.mrf.mxu0 }
 0x133   :  { %5741 = vst [vmem:[#allocation3 + $0x30] sm:$0xff] %v5369_v1  }
 0x134   :  { %v450_v3 = vpop.f32.mrf.mxu0 }
 0x136   :  { %v6254_v4 = vpop.f32.mrf.mxu0 }
 0x137   :  { %v5384_v5 = vpack.c.bf16 %v6254_v4, %v6253_v2 }
 0x138   :  { %v453_v6 = vpop.f32.mrf.mxu0 }
 0x139   :  { %5744 = vst [vmem:[#allocation3 + $0x48] sm:$0xff] %v5384_v5   ;;  %v5379_v7 = vpack.c.bf16 %v453_v6, %v450_v3 }
 0x13a   :  { %v6257_v8 = vpop.f32.mrf.mxu0 }
 0x13b   :  { %5743 = vst [vmem:[#allocation3 + $0x40] sm:$0xff] %v5379_v7  }
 0x13c   :  { %v466_v9 = vpop.f32.mrf.mxu0 }
 0x13e   :  { %v6258_v10 = vpop.f32.mrf.mxu0 }
 0x13f   :  { %v5394_v11 = vpack.c.bf16 %v6258_v10, %v6257_v8 }
 0x140   :  { %v469_v12 = vpop.f32.mrf.mxu0 }
 0x141   :  { %5746 = vst [vmem:[#allocation3 + $0x58] sm:$0xff] %v5394_v11   ;;  %v5389_v13 = vpack.c.bf16 %v469_v12, %v466_v9 }
 0x142   :  { %v6261_v14 = vpop.f32.mrf.mxu0 }
 0x143   :  { %5745 = vst [vmem:[#allocation3 + $0x50] sm:$0xff] %v5389_v13  }
 0x144   :  { %v482_v15 = vpop.f32.mrf.mxu0 }
 0x146   :  { %v6262_v16 = vpop.f32.mrf.mxu0 }
 0x147   :  { %v5404_v17 = vpack.c.bf16 %v6262_v16, %v6261_v14 }
 0x148   :  { %v485_v18 = vpop.f32.mrf.mxu0 }
 0x149   :  { %5748 = vst [vmem:[#allocation3 + $0x68] sm:$0xff] %v5404_v17   ;;  %v5399_v19 = vpack.c.bf16 %v485_v18, %v482_v15 }
 0x14a   :  { %v6265_v20 = vpop.f32.mrf.mxu0 }
 0x14b   :  { %5747 = vst [vmem:[#allocation3 + $0x60] sm:$0xff] %v5399_v19  }
 0x14c   :  { %v498_v21 = vpop.f32.mrf.mxu0 }
 0x14e   :  { %v6266_v22 = vpop.f32.mrf.mxu0 }
 0x14f   :  { %v5414_v23 = vpack.c.bf16 %v6266_v22, %v6265_v20 }
 0x150   :  { %v501_v24 = vpop.f32.mrf.mxu0 }
 0x151   :  { %5750 = vst [vmem:[#allocation3 + $0x78] sm:$0xff] %v5414_v23   ;;  %v5409_v25 = vpack.c.bf16 %v501_v24, %v498_v21 }
 0x153   :  { %5749 = vst [vmem:[#allocation3 + $0x70] sm:$0xff] %v5409_v25  }
 0x154   :  { %7203 = dma.done.wait [#allocation6], 4096 }
 0x155   :  { %7204 = vsyncadd [#allocation6], 4294963200  ;;  %v7315_v26 = vld [vmem:[%s8136_s4] ss:$0 sm:$0xff]  ;;  %v6414_v28 = vld [vmem:[#allocation3 + $0x38] sm:$0xff]  }
 0x156   :  { %v6416_v30 = vld [vmem:[#allocation3 + $0x30] sm:$0xff]   ;;  %v6417_v31 = vld [vmem:[#allocation3 + $0x68] sm:$0xff]   ;;  %v6419_v33 = vld [vmem:[#allocation3 + $0x60] sm:$0xff]  }
 0x157   :  { %v6418_v32 = vld [vmem:[#allocation3 + $0x28] sm:$0xff]   ;;  %v6420_v34 = vld [vmem:[#allocation3 + $0x20] sm:$0xff]   ;;  %v6421_v35 = vld [vmem:[#allocation3 + $0x58] sm:$0xff]  }
 0x158   :  { %v6413_v27 = vld [vmem:[#allocation3 + $0x78] sm:$0xff]   ;;  %v6423_v37 = vld [vmem:[#allocation3 + $0x50] sm:$0xff]   ;;  %v6429_v38 = vld [vmem:[#allocation5 + $0x4] ss:$8 sps:$4 sm:$0xff]  }
 0x159   :  { %5835 = vmatprep.subr.bf16.mxu0 %v6413_v27  ;;  %6363 = vmatprep.subr.bf16.mxu1 %v6413_v27  ;;  %v6422_v36 = vld [vmem:[#allocation3 + $0x18] sm:$0xff]   ;;  %v6431_v39 = vld [vmem:[#allocation5 + $0x44] ss:$8 sps:$4 sm:$0xff]   ;;  %v6424_v40 = vld [vmem:[#allocation3 + $0x10] sm:$0xff]  }
 0x15a   :  { %v6415_v29 = vld [vmem:[#allocation3 + $0x70] sm:$0xff]   ;;  %5836 = vmatpush3.bf16.msra.mxu0 %v6414_v28  ;;  %6371 = vmatpush3.bf16.msra.mxu1 %v6414_v28  ;;  %v6425_v41 = vld [vmem:[#allocation3 + $0x48] sm:$0xff]   ;;  %v6427_v43 = vld [vmem:[#allocation3 + $0x40] sm:$0xff]  }
 0x15b   :  { %5837 = vmatprep.subr.bf16.mxu0 %v6415_v29  ;;  %6364 = vmatprep.subr.bf16.mxu1 %v6415_v29  ;;  %v6426_v42 = vld [vmem:[#allocation3 + $0x8] sm:$0xff]   ;;  %v6428_v44 = vld [vmem:[#allocation3] sm:$0xff]   ;;  %v6435_v47 = vld [vmem:[#allocation5 + $0x14] ss:$8 sps:$4 sm:$0xff]  }
 0x15c   :  { %1029 = vmatprep.mubr.bf16.mxu0 %v6429_v38  ;;  %1061 = vmatprep.mubr.bf16.mxu1 %v6431_v39  ;;  %v6433_v45 = vld [vmem:[#allocation5] ss:$8 sps:$4 sm:$0xff]   ;;  %v6437_v48 = vld [vmem:[#allocation5 + $0x54] ss:$8 sps:$4 sm:$0xff]   ;;  %v6439_v49 = vld [vmem:[#allocation5 + $0x10] ss:$8 sps:$4 sm:$0xff]  }
 0x15d   :  { %v6434_v46 = vld [vmem:[#allocation5 + $0x40] ss:$8 sps:$4 sm:$0xff]   ;;  %v6440_v50 = vld [vmem:[#allocation5 + $0x50] ss:$8 sps:$4 sm:$0xff]   ;;  %v6441_v51 = vld [vmem:[#allocation5 + $0x24] ss:$8 sps:$4 sm:$0xff]  }
 0x15e   :  { %5838 = vmatpush3.bf16.msra.mxu0 %v6416_v30  ;;  %6372 = vmatpush3.bf16.msra.mxu1 %v6416_v30  ;;  %v6443_v52 = vld [vmem:[#allocation5 + $0x64] ss:$8 sps:$4 sm:$0xff]   ;;  %v6447_v53 = vld [vmem:[#allocation5 + $0x34] ss:$8 sps:$4 sm:$0xff]  }
 0x15f   :  { %5839 = vmatprep.subr.bf16.mxu0 %v6417_v31  ;;  %6365 = vmatprep.subr.bf16.mxu1 %v6417_v31  ;;  %v6449_v54 = vld [vmem:[#allocation5 + $0x74] ss:$8 sps:$4 sm:$0xff]   ;;  %v6453_v55 = vld [vmem:[#allocation5 + $0x84] ss:$8 sps:$4 sm:$0xff]  }
 0x160   :  { %v6456_v56 = vld [vmem:[#allocation5 + $0x94] ss:$8 sps:$4 sm:$0xff]   ;;  %v6459_v57 = vld [vmem:[#allocation5 + $0xa4] ss:$8 sps:$4 sm:$0xff]  }
 0x161   :  { %v6462_v58 = vld [vmem:[#allocation5 + $0xb4] ss:$8 sps:$4 sm:$0xff]   ;;  %v6465_v59 = vld [vmem:[#allocation5 + $0xc4] ss:$8 sps:$4 sm:$0xff]  }
 0x162   :  { %5840 = vmatpush3.bf16.msra.mxu0 %v6418_v32  ;;  %6373 = vmatpush3.bf16.msra.mxu1 %v6418_v32  ;;  %v6468_v60 = vld [vmem:[#allocation5 + $0xd4] ss:$8 sps:$4 sm:$0xff]   ;;  %v6471_v61 = vld [vmem:[#allocation5 + $0xe4] ss:$8 sps:$4 sm:$0xff]  }
 0x163   :  { %5841 = vmatprep.subr.bf16.mxu0 %v6419_v33  ;;  %6366 = vmatprep.subr.bf16.mxu1 %v6419_v33  ;;  %v6474_v62 = vld [vmem:[#allocation5 + $0xf4] ss:$8 sps:$4 sm:$0xff]  }
 0x166   :  { %5842 = vmatpush3.bf16.msra.mxu0 %v6420_v34  ;;  %6374 = vmatpush3.bf16.msra.mxu1 %v6420_v34 }
 0x167   :  { %5843 = vmatprep.subr.bf16.mxu0 %v6421_v35  ;;  %6367 = vmatprep.subr.bf16.mxu1 %v6421_v35 }
 0x16a   :  { %5844 = vmatpush3.bf16.msra.mxu0 %v6422_v36  ;;  %6375 = vmatpush3.bf16.msra.mxu1 %v6422_v36 }
 0x16b   :  { %5845 = vmatprep.subr.bf16.mxu0 %v6423_v37  ;;  %6368 = vmatprep.subr.bf16.mxu1 %v6423_v37 }
 0x16e   :  { %5846 = vmatpush3.bf16.msra.mxu0 %v6424_v40  ;;  %6376 = vmatpush3.bf16.msra.mxu1 %v6424_v40 }
 0x16f   :  { %5847 = vmatprep.subr.bf16.mxu0 %v6425_v41  ;;  %6369 = vmatprep.subr.bf16.mxu1 %v6425_v41 }
 0x172   :  { %5848 = vmatpush3.bf16.msra.mxu0 %v6426_v42  ;;  %6377 = vmatpush3.bf16.msra.mxu1 %v6426_v42 }
 0x173   :  { %5849 = vmatprep.subr.bf16.mxu0 %v6427_v43  ;;  %6370 = vmatprep.subr.bf16.mxu1 %v6427_v43 }
 0x176   :  { %5850 = vmatpush3.bf16.msra.mxu0 %v6428_v44  ;;  %6378 = vmatpush3.bf16.msra.mxu1 %v6428_v44 }
 0x179   :  { %1030 = vmatmul.mubr.bf16.vlgmr.msra.gmra.mxu0 %v6433_v45  ;;  %1062 = vmatmul.mubr.bf16.vlgmr.msra.gmra.mxu1 %v6434_v46 }
 0x17a   :  { %1037 = vmatprep.mubr.bf16.mxu0 %v6435_v47  ;;  %1069 = vmatprep.mubr.bf16.mxu1 %v6437_v48 }
 0x181   :  { %1038 = vmatmul.mubr.bf16.gmra.mxu0 %v6439_v49  ;;  %1070 = vmatmul.mubr.bf16.gmra.mxu1 %v6440_v50 }
 0x182   :  { %7156 = shalt.err (!%p7302_p10)  }
 0x183   :  { %1671 = dma.hbm_to_vmem [thread:$0]  %s8139_s7, 4096, %s7295_s5, [#allocation6]  ;;  %1045 = vmatprep.mubr.bf16.mxu0 %v6441_v51  ;;  %1077 = vmatprep.mubr.bf16.mxu1 %v6443_v52  ;;  %v6477_v12 = vld [vmem:[#allocation12 + $0x38] sm:$0xff]   ;;  %v6478_v13 = vld [vmem:[#allocation12 + $0x30] sm:$0xff]   ;;  %v6479_v14 = vld [vmem:[#allocation12 + $0x28] sm:$0xff]  }
 0x184   :  { %v6445_v63 = vld [vmem:[#allocation5 + $0x20] ss:$8 sps:$4 sm:$0xff]   ;;  %v6451_v2 = vld [vmem:[#allocation5 + $0x30] ss:$8 sps:$4 sm:$0xff]   ;;  %6267 = vmatprep.subr.bf16.mxu0 %v6477_v12 }
 0x185   :  { %v6446_v1 = vld [vmem:[#allocation5 + $0x60] ss:$8 sps:$4 sm:$0xff]   ;;  %v6452_v3 = vld [vmem:[#allocation5 + $0x70] ss:$8 sps:$4 sm:$0xff]   ;;  %6268 = vmatpush3.bf16.msra.mxu0 %v6477_v12 }
 0x186   :  { %v6455_v4 = vld [vmem:[#allocation5 + $0x80] ss:$8 sps:$4 sm:$0xff]   ;;  %v6458_v5 = vld [vmem:[#allocation5 + $0x90] ss:$8 sps:$4 sm:$0xff]   ;;  %6269 = vmatprep.subr.bf16.mxu0 %v6478_v13 }
 0x187   :  { %v6461_v6 = vld [vmem:[#allocation5 + $0xa0] ss:$8 sps:$4 sm:$0xff]   ;;  %v6464_v7 = vld [vmem:[#allocation5 + $0xb0] ss:$8 sps:$4 sm:$0xff]  }
 0x188   :  { %v6467_v8 = vld [vmem:[#allocation5 + $0xc0] ss:$8 sps:$4 sm:$0xff]   ;;  %v6470_v9 = vld [vmem:[#allocation5 + $0xd0] ss:$8 sps:$4 sm:$0xff]  }
 0x189   :  { %1046 = vmatmul.mubr.bf16.gmra.mxu0 %v6445_v63  ;;  %1078 = vmatmul.mubr.bf16.gmra.mxu1 %v6446_v1  ;;  %v6473_v10 = vld [vmem:[#allocation5 + $0xe0] ss:$8 sps:$4 sm:$0xff]   ;;  %v6476_v11 = vld [vmem:[#allocation5 + $0xf0] ss:$8 sps:$4 sm:$0xff]  }
 0x18a   :  { %1053 = vmatprep.mubr.bf16.mxu0 %v6447_v53  ;;  %1085 = vmatprep.mubr.bf16.mxu1 %v6449_v54  ;;  %v6480_v15 = vld [vmem:[#allocation12 + $0x20] sm:$0xff]   ;;  %v6481_v16 = vld [vmem:[#allocation12 + $0x18] sm:$0xff]   ;;  %v6482_v17 = vld [vmem:[#allocation12 + $0x10] sm:$0xff]  }
 0x18b   :  { %6270 = vmatpush3.bf16.msra.mxu0 %v6478_v13  ;;  %v6483_v18 = vld [vmem:[#allocation12 + $0x8] sm:$0xff]   ;;  %v6485_v19 = vld [vmem:[#allocation12] sm:$0xff]  }
 0x18c   :  { %6271 = vmatprep.subr.bf16.mxu0 %v6479_v14 }
 0x18f   :  { %6272 = vmatpush3.bf16.msra.mxu0 %v6479_v14 }
 0x190   :  { %6273 = vmatprep.subr.bf16.mxu0 %v6480_v15 }
 0x191   :  { %1054 = vmatmul.mubr.bf16.gmra.mxu0 %v6451_v2  ;;  %1086 = vmatmul.mubr.bf16.gmra.mxu1 %v6452_v3 }
 0x192   :  { %1093 = vmatprep.mubr.bf16.mxu1 %v6453_v55 }
 0x193   :  { %6274 = vmatpush3.bf16.msra.mxu0 %v6480_v15 }
 0x194   :  { %6275 = vmatprep.subr.bf16.mxu0 %v6481_v16 }
 0x197   :  { %6276 = vmatpush3.bf16.msra.mxu0 %v6481_v16 }
 0x198   :  { %6277 = vmatprep.subr.bf16.mxu0 %v6482_v17 }
 0x199   :  { %1094 = vmatmul.mubr.bf16.gmra.mxu1 %v6455_v4 }
 0x19a   :  { %1101 = vmatprep.mubr.bf16.mxu1 %v6456_v56 }
 0x19b   :  { %6278 = vmatpush3.bf16.msra.mxu0 %v6482_v17 }
 0x19c   :  { %6279 = vmatprep.subr.bf16.mxu0 %v6483_v18 }
 0x19f   :  { %6280 = vmatpush3.bf16.msra.mxu0 %v6483_v18 }
 0x1a0   :  { %6281 = vmatprep.subr.bf16.mxu0 %v6485_v19 }
 0x1a1   :  { %1102 = vmatmul.mubr.bf16.gmra.mxu1 %v6458_v5 }
 0x1a2   :  { %1109 = vmatprep.mubr.bf16.mxu1 %v6459_v57 }
 0x1a3   :  { %6282 = vmatpush3.bf16.msra.mxu0 %v6485_v19 }
 0x1a9   :  { %1110 = vmatmul.mubr.bf16.gmra.mxu1 %v6461_v6 }
 0x1aa   :  { %1117 = vmatprep.mubr.bf16.mxu1 %v6462_v58 }
 0x1b1   :  { %1118 = vmatmul.mubr.bf16.gmra.mxu1 %v6464_v7 }
 0x1b2   :  { %1125 = vmatprep.mubr.bf16.mxu1 %v6465_v59 }
 0x1b9   :  { %1126 = vmatmul.mubr.bf16.gmra.mxu1 %v6467_v8 }
 0x1ba   :  { %1133 = vmatprep.mubr.bf16.mxu1 %v6468_v60 }
 0x1c1   :  { %1134 = vmatmul.mubr.bf16.gmra.mxu1 %v6470_v9 }
 0x1c2   :  { %1141 = vmatprep.mubr.bf16.mxu1 %v6471_v61 }
 0x1c9   :  { %1142 = vmatmul.mubr.bf16.gmra.mxu1 %v6473_v10 }
 0x1ca   :  { %1149 = vmatprep.mubr.bf16.mxu1 %v6474_v62 }
 0x1d1   :  { %1150 = vmatmul.mubr.bf16.gmra.mxu1 %v6476_v11 }
 0x239   :  { %v5851_v20 = vpop.f32.mrf.mxu0  ;;  %v5875_v21 = vpop.f32.mrf.mxu1 }
 0x23b   :  { %v5852_v22 = vpop.f32.mrf.mxu0  ;;  %v5876_v23 = vpop.f32.mrf.mxu1 }
 0x23c   :  { %v5853_v24 = vadd.f32 %v5852_v22, %v5851_v20  ;;  %v5877_v25 = vadd.f32 %v5876_v23, %v5875_v21 }
 0x23d   :  { %v5854_v27 = vpop.f32.mrf.mxu0  ;;  %v5878_v28 = vpop.f32.mrf.mxu1 }
 0x23e   :  { %v7324_v29 = vadd.f32 %v5853_v24, %v7293_v0  ;;  %v7327_v30 = vadd.f32 %v5877_v25, %v7293_v0 }
 0x23f   :  { %v5855_v31 = vpop.f32.mrf.mxu0  ;;  %v5879_v32 = vpop.f32.mrf.mxu1 }
 0x240   :  { %v4836_v33 = vmul.f32 -1.442695, %v7324_v29  ;;  %v4844_v34 = vmul.f32 -1.442695, %v7327_v30  ;;  %v5856_v35 = vadd.f32 %v5855_v31, %v5854_v27  ;;  %v5880_v36 = vadd.f32 %v5879_v32, %v5878_v28 }
 0x241   :  { %v5857_v37 = vpop.f32.mrf.mxu0  ;;  %v5881_v38 = vpop.f32.mrf.mxu1 }
 0x242   :  { %6501 = vpow2.f32 %v4836_v33  ;;  %v7332_v39 = vadd.f32 %v5856_v35, %v7293_v0  ;;  %v7335_v40 = vadd.f32 %v5880_v36, %v7293_v0 }
 0x243   :  { %6503 = vpow2.f32 %v4844_v34  ;;  %v5858_v41 = vpop.f32.mrf.mxu0  ;;  %v5882_v42 = vpop.f32.mrf.mxu1 }
 0x244   :  { %v4837_v43 = vmul.f32 -1.442695, %v7332_v39  ;;  %v4845_v44 = vmul.f32 -1.442695, %v7335_v40  ;;  %v5859_v45 = vadd.f32 %v5858_v41, %v5857_v37  ;;  %v5883_v46 = vadd.f32 %v5882_v42, %v5881_v38 }
 0x245   :  { %v5860_v47 = vpop.f32.mrf.mxu0  ;;  %v5884_v48 = vpop.f32.mrf.mxu1 }
 0x246   :  { %6505 = vpow2.f32 %v4837_v43  ;;  %v7340_v49 = vadd.f32 %v5859_v45, %v7293_v0  ;;  %v7343_v50 = vadd.f32 %v5883_v46, %v7293_v0 }
 0x247   :  { %6507 = vpow2.f32 %v4845_v44  ;;  %v5861_v51 = vpop.f32.mrf.mxu0  ;;  %v5885_v52 = vpop.f32.mrf.mxu1 }
 0x248   :  { %v4838_v53 = vmul.f32 -1.442695, %v7340_v49  ;;  %v4846_v54 = vmul.f32 -1.442695, %v7343_v50  ;;  %v5862_v55 = vadd.f32 %v5861_v51, %v5860_v47  ;;  %v5886_v56 = vadd.f32 %v5885_v52, %v5884_v48 }
 0x249   :  { %v5863_v57 = vpop.f32.mrf.mxu0  ;;  %v5887_v58 = vpop.f32.mrf.mxu1 }
 0x24a   :  { %6509 = vpow2.f32 %v4838_v53  ;;  %v7348_v59 = vadd.f32 %v5862_v55, %v7293_v0  ;;  %v7351_v60 = vadd.f32 %v5886_v56, %v7293_v0 }
 0x24b   :  { %6511 = vpow2.f32 %v4846_v54  ;;  %v5864_v61 = vpop.f32.mrf.mxu0  ;;  %v5888_v62 = vpop.f32.mrf.mxu1 }
 0x24c   :  { %v4839_v63 = vmul.f32 -1.442695, %v7348_v59  ;;  %v4847_v1 = vmul.f32 -1.442695, %v7351_v60  ;;  %v5865_v2 = vadd.f32 %v5864_v61, %v5863_v57  ;;  %v5889_v3 = vadd.f32 %v5888_v62, %v5887_v58 }
 0x24d   :  { %v5866_v4 = vpop.f32.mrf.mxu0  ;;  %v5890_v5 = vpop.f32.mrf.mxu1 }
 0x24e   :  { %6513 = vpow2.f32 %v4839_v63  ;;  %v7356_v6 = vadd.f32 %v5865_v2, %v7293_v0  ;;  %v7359_v7 = vadd.f32 %v5889_v3, %v7293_v0 }
 0x24f   :  { %v6502_v8 = vpop.eup %6501  ;;  %6515 = vpow2.f32 %v4847_v1  ;;  %v5867_v9 = vpop.f32.mrf.mxu0 }
 0x250   :  { %v5891_v10 = vpop.f32.mrf.mxu1  ;;  %v6504_v11 = vpop.eup %6503  ;;  %v1356_v12 = vadd.f32 1.0, %v6502_v8  ;;  %v4840_v13 = vmul.f32 -1.442695, %v7356_v6  ;;  %v5868_v14 = vadd.f32 %v5867_v9, %v5866_v4  ;;  %v4848_v16 = vmul.f32 -1.442695, %v7359_v7 }
 0x251   :  { %v1364_v15 = vadd.f32 1.0, %v6504_v11  ;;  %v5892_v17 = vadd.f32 %v5891_v10, %v5890_v5  ;;  %v5869_v18 = vpop.f32.mrf.mxu0 }
 0x252   :  { %v5893_v19 = vpop.f32.mrf.mxu1  ;;  %6517 = vrcp.f32 %v1356_v12  ;;  %v7364_v20 = vadd.f32 %v5868_v14, %v7293_v0 }
 0x253   :  { %v6506_v21 = vpop.eup %6505  ;;  %6519 = vrcp.f32 %v1364_v15  ;;  %v7367_v22 = vadd.f32 %v5892_v17, %v7293_v0  ;;  %v5870_v23 = vpop.f32.mrf.mxu0 }
 0x254   :  { %v5894_v24 = vpop.f32.mrf.mxu1  ;;  %v6508_v25 = vpop.eup %6507  ;;  %v1357_v27 = vadd.f32 1.0, %v6506_v21  ;;  %6521 = vpow2.f32 %v4840_v13  ;;  %v4841_v28 = vmul.f32 -1.442695, %v7364_v20  ;;  %v5871_v31 = vadd.f32 %v5870_v23, %v5869_v18 }
 0x255   :  { %v1365_v32 = vadd.f32 1.0, %v6508_v25  ;;  %6523 = vpow2.f32 %v4848_v16  ;;  %v4849_v33 = vmul.f32 -1.442695, %v7367_v22  ;;  %v5895_v34 = vadd.f32 %v5894_v24, %v5893_v19  ;;  %v5872_v35 = vpop.f32.mrf.mxu0 }
 0x256   :  { %v5896_v36 = vpop.f32.mrf.mxu1  ;;  %6525 = vrcp.f32 %v1357_v27  ;;  %v7372_v37 = vadd.f32 %v5871_v31, %v7293_v0 }
 0x257   :  { %v6510_v38 = vpop.eup %6509  ;;  %6527 = vrcp.f32 %v1365_v32  ;;  %v7375_v41 = vadd.f32 %v5895_v34, %v7293_v0  ;;  %v5873_v42 = vpop.f32.mrf.mxu0 }
 0x258   :  { %v5897_v43 = vpop.f32.mrf.mxu1  ;;  %v6512_v44 = vpop.eup %6511  ;;  %v1358_v45 = vadd.f32 1.0, %v6510_v38  ;;  %6529 = vpow2.f32 %v4841_v28  ;;  %v4842_v46 = vmul.f32 -1.442695, %v7372_v37  ;;  %v5874_v47 = vadd.f32 %v5873_v42, %v5872_v35 }
 0x259   :  { %v1366_v48 = vadd.f32 1.0, %v6512_v44  ;;  %6531 = vpow2.f32 %v4849_v33  ;;  %v4850_v51 = vmul.f32 -1.442695, %v7375_v41  ;;  %v5898_v52 = vadd.f32 %v5897_v43, %v5896_v36 }
 0x25a   :  { %v5899_v53 = vpop.f32.mrf.mxu1  ;;  %6533 = vrcp.f32 %v1358_v45  ;;  %v7380_v54 = vadd.f32 %v5874_v47, %v7293_v0 }
 0x25b   :  { %v6514_v55 = vpop.eup %6513  ;;  %6535 = vrcp.f32 %v1366_v48  ;;  %v7383_v56 = vadd.f32 %v5898_v52, %v7293_v0 }
 0x25c   :  { %v5900_v57 = vpop.f32.mrf.mxu1  ;;  %v6516_v58 = vpop.eup %6515  ;;  %v1359_v61 = vadd.f32 1.0, %v6514_v55  ;;  %6537 = vpow2.f32 %v4842_v46  ;;  %v4843_v62 = vmul.f32 -1.442695, %v7380_v54 }
 0x25d   :  { %v5901_v63 = vadd.f32 %v5900_v57, %v5899_v53  ;;  %v1367_v1 = vadd.f32 1.0, %v6516_v58  ;;  %6539 = vpow2.f32 %v4850_v51  ;;  %v4851_v2 = vmul.f32 -1.442695, %v7383_v56 }
 0x25e   :  { %v5902_v3 = vpop.f32.mrf.mxu1  ;;  %6541 = vrcp.f32 %v1359_v61 }
 0x25f   :  { %v7388_v4 = vadd.f32 %v5901_v63, %v7293_v0  ;;  %v6518_v5 = vpop.eup %6517  ;;  %6543 = vrcp.f32 %v1367_v1 }
 0x260   :  { %v5903_v8 = vpop.f32.mrf.mxu1  ;;  %v6520_v9 = vpop.eup %6519  ;;  %6545 = vpow2.f32 %v4843_v62  ;;  %v1452_v23 = vmul.f32 %v6518_v5, %v7324_v29 }
 0x261   :  { %v4852_v10 = vmul.f32 -1.442695, %v7388_v4  ;;  %v5904_v11 = vadd.f32 %v5903_v8, %v5902_v3  ;;  %v6522_v12 = vpop.eup %6521  ;;  %6547 = vpow2.f32 %v4851_v2  ;;  %v1460_v31 = vmul.f32 %v6520_v9, %v7327_v30 }
 0x262   :  { %v5905_v13 = vpop.f32.mrf.mxu1  ;;  %v6524_v14 = vpop.eup %6523  ;;  %v1360_v15 = vadd.f32 1.0, %v6522_v12 }
 0x263   :  { %6549 = vpow2.f32 %v4852_v10  ;;  %v7392_v16 = vadd.f32 %v5904_v11, %v7293_v0  ;;  %v6526_v17 = vpop.eup %6525  ;;  %v1368_v18 = vadd.f32 1.0, %v6524_v14 }
 0x264   :  { %v5906_v19 = vpop.f32.mrf.mxu1  ;;  %v6528_v21 = vpop.eup %6527  ;;  %v1453_v24 = vmul.f32 %v6526_v17, %v7332_v39  ;;  %6551 = vrcp.f32 %v1360_v15 }
 0x265   :  { %v4853_v25 = vmul.f32 -1.442695, %v7392_v16  ;;  %v5907_v27 = vadd.f32 %v5906_v19, %v5905_v13  ;;  %v6530_v28 = vpop.eup %6529  ;;  %v1461_v32 = vmul.f32 %v6528_v21, %v7335_v40 }
 0x266   :  { %v5908_v33 = vpop.f32.mrf.mxu1  ;;  %v6532_v34 = vpop.eup %6531  ;;  %v5419_v35 = vpack.c.bf16 %v1453_v24, %v1452_v23  ;;  %v1361_v36 = vadd.f32 1.0, %v6530_v28 }
 0x267   :  { %6553 = vpow2.f32 %v4853_v25  ;;  %v7400_v38 = vadd.f32 %v5907_v27, %v7293_v0  ;;  %v6534_v29 = vpop.eup %6533  ;;  %v5439_v42 = vpack.c.bf16 %v1461_v32, %v1460_v31  ;;  %v1369_v39 = vadd.f32 1.0, %v6532_v34 }
 0x268   :  { %6555 = vrcp.f32 %v1368_v18  ;;  %v5909_v43 = vpop.f32.mrf.mxu1  ;;  %v6536_v44 = vpop.eup %6535  ;;  %5420 = vst [vmem:[#allocation2] sm:$0xff] %v5419_v35   ;;  %v1454_v58 = vmul.f32 %v6534_v29, %v7340_v49 }
 0x269   :  { %6557 = vrcp.f32 %v1361_v36  ;;  %v4854_v30 = vmul.f32 -1.442695, %v7400_v38  ;;  %v5910_v40 = vadd.f32 %v5909_v43, %v5908_v33  ;;  %v6538_v45 = vpop.eup %6537  ;;  %5754 = vst [vmem:[#allocation2 + $0x20] sm:$0xff] %v5439_v42   ;;  %v1462_v2 = vmul.f32 %v6536_v44, %v7343_v50 }
 0x26a   :  { %6559 = vrcp.f32 %v1369_v39  ;;  %v5911_v46 = vpop.f32.mrf.mxu1  ;;  %v6540_v47 = vpop.eup %6539  ;;  %v1362_v48 = vadd.f32 1.0, %v6538_v45 }
 0x26b   :  { %6561 = vpow2.f32 %v4854_v30  ;;  %v7404_v51 = vadd.f32 %v5910_v40, %v7293_v0  ;;  %v6542_v52 = vpop.eup %6541  ;;  %v1370_v53 = vadd.f32 1.0, %v6540_v47 }
 0x26c   :  { %v5912_v55 = vpop.f32.mrf.mxu1  ;;  %v6544_v57 = vpop.eup %6543  ;;  %v1455_v61 = vmul.f32 %v6542_v52, %v7348_v59  ;;  %6563 = vrcp.f32 %v1362_v48 }
 0x26d   :  { %v4855_v62 = vmul.f32 -1.442695, %v7404_v51  ;;  %v5913_v63 = vadd.f32 %v5912_v55, %v5911_v46  ;;  %v6546_v1 = vpop.eup %6545  ;;  %v1463_v3 = vmul.f32 %v6544_v57, %v7351_v60 }
 0x26e   :  { %v5914_v5 = vpop.f32.mrf.mxu1  ;;  %v6548_v8 = vpop.eup %6547  ;;  %v5424_v9 = vpack.c.bf16 %v1455_v61, %v1454_v58  ;;  %v1363_v10 = vadd.f32 1.0, %v6546_v1 }
 0x26f   :  { %6565 = vpow2.f32 %v4855_v62  ;;  %v7412_v11 = vadd.f32 %v5913_v63, %v7293_v0  ;;  %v5444_v12 = vpack.c.bf16 %v1463_v3, %v1462_v2  ;;  %v1371_v59 = vadd.f32 1.0, %v6548_v8  ;;  %v6484_v14 = vld [vmem:[#allocation2] sm:$0xff]  }
 0x270   :  { %v6550_v49 = vpop.eup %6549  ;;  %6567 = vrcp.f32 %v1370_v53  ;;  %v5915_v13 = vpop.f32.mrf.mxu1  ;;  %5751 = vst [vmem:[#allocation2 + $0x8] sm:$0xff] %v5424_v9   ;;  %6283 = vmatprep.mubr.bf16.mxu0 %v6484_v14 }
 0x271   :  { %6569 = vrcp.f32 %v1363_v10  ;;  %v1372_v50 = vadd.f32 1.0, %v6550_v49  ;;  %v4856_v60 = vmul.f32 -1.442695, %v7412_v11  ;;  %v5916_v15 = vadd.f32 %v5915_v13, %v5914_v5  ;;  %5755 = vst [vmem:[#allocation2 + $0x28] sm:$0xff] %v5444_v12   ;;  %v6552_v18 = vpop.eup %6551 }
 0x272   :  { %6571 = vrcp.f32 %v1371_v59  ;;  %v5917_v17 = vpop.f32.mrf.mxu1  ;;  %v1456_v34 = vmul.f32 %v6552_v18, %v7356_v6 }
 0x273   :  { %v7416_v19 = vadd.f32 %v5916_v15, %v7293_v0  ;;  %6573 = vpow2.f32 %v4856_v60 }
 0x274   :  { %v6554_v21 = vpop.eup %6553  ;;  %v5918_v23 = vpop.f32.mrf.mxu1  ;;  %6575 = vrcp.f32 %v1372_v50 }
 0x275   :  { %v6556_v24 = vpop.eup %6555  ;;  %v1373_v25 = vadd.f32 1.0, %v6554_v21  ;;  %v4857_v27 = vmul.f32 -1.442695, %v7416_v19  ;;  %v5919_v28 = vadd.f32 %v5918_v23, %v5917_v17 }
 0x276   :  { %v6558_v31 = vpop.eup %6557  ;;  %v5920_v32 = vpop.f32.mrf.mxu1  ;;  %v1464_v42 = vmul.f32 %v6556_v24, %v7359_v7 }
 0x277   :  { %v6560_v33 = vpop.eup %6559  ;;  %v1457_v35 = vmul.f32 %v6558_v31, %v7364_v20  ;;  %6577 = vrcp.f32 %v1373_v25  ;;  %v7422_v36 = vadd.f32 %v5919_v28, %v7293_v0  ;;  %v6486_v44 = vld [vmem:[#allocation2 + $0x8] sm:$0xff]  }
 0x278   :  { %v6562_v29 = vpop.eup %6561  ;;  %v1465_v39 = vmul.f32 %v6560_v33, %v7367_v22  ;;  %6579 = vpow2.f32 %v4857_v27  ;;  %v5921_v43 = vpop.f32.mrf.mxu1  ;;  %6284 = vmatmul.mubr.bf16.vlgmr.msra.gmra.mxu0 %v6486_v44 }
 0x279   :  { %v5429_v30 = vpack.c.bf16 %v1457_v35, %v1456_v34  ;;  %v1374_v40 = vadd.f32 1.0, %v6562_v29  ;;  %v4858_v45 = vmul.f32 -1.442695, %v7422_v36  ;;  %v5922_v46 = vadd.f32 %v5921_v43, %v5920_v32  ;;  %v6564_v20 = vpop.eup %6563 }
 0x27a   :  { %v5449_v6 = vpack.c.bf16 %v1465_v39, %v1464_v42  ;;  %v5923_v47 = vpop.f32.mrf.mxu1  ;;  %v1458_v63 = vmul.f32 %v6564_v20, %v7372_v37  ;;  %v6489_v42 = vld [vmem:[#allocation2 + $0x20] sm:$0xff]  }
 0x27b   :  { %5752 = vst [vmem:[#allocation2 + $0x10] sm:$0xff] %v5429_v30   ;;  %v7428_v48 = vadd.f32 %v5922_v46, %v7293_v0  ;;  %6581 = vpow2.f32 %v4858_v45 }
 0x27c   :  { %v6566_v52 = vpop.eup %6565  ;;  %5756 = vst [vmem:[#allocation2 + $0x30] sm:$0xff] %v5449_v6   ;;  %v5924_v7 = vpop.f32.mrf.mxu1  ;;  %6583 = vrcp.f32 %v1374_v40 }
 0x27d   :  { %v6568_v22 = vpop.eup %6567  ;;  %v1375_v53 = vadd.f32 1.0, %v6566_v52  ;;  %v4859_v55 = vmul.f32 -1.442695, %v7428_v48  ;;  %v5925_v57 = vadd.f32 %v5924_v7, %v5923_v47 }
 0x27e   :  { %v6570_v58 = vpop.eup %6569  ;;  %v5926_v61 = vpop.f32.mrf.mxu1  ;;  %v1466_v3 = vmul.f32 %v6568_v22, %v7375_v41 }
 0x27f   :  { %v6572_v62 = vpop.eup %6571  ;;  %v1459_v1 = vmul.f32 %v6570_v58, %v7380_v54  ;;  %6585 = vrcp.f32 %v1375_v53  ;;  %v7434_v2 = vadd.f32 %v5925_v57, %v7293_v0  ;;  %v6490_v57 = vld [vmem:[#allocation2 + $0x28] sm:$0xff]  }
 0x280   :  { %v1467_v5 = vmul.f32 %v6572_v62, %v7383_v56  ;;  %6587 = vpow2.f32 %v4859_v55  ;;  %v5927_v8 = vpop.f32.mrf.mxu1  ;;  %v6574_v9 = vpop.eup %6573 }
 0x281   :  { %v5434_v10 = vpack.c.bf16 %v1459_v1, %v1458_v63  ;;  %v4860_v49 = vmul.f32 -1.442695, %v7434_v2  ;;  %v5928_v12 = vadd.f32 %v5927_v8, %v5926_v61  ;;  %v6576_v59 = vpop.eup %6575  ;;  %v1376_v37 = vadd.f32 1.0, %v6574_v9 }
 0x282   :  { %v5454_v13 = vpack.c.bf16 %v1467_v5, %v1466_v3  ;;  %v5929_v14 = vpop.f32.mrf.mxu1  ;;  %v6487_v54 = vld [vmem:[#allocation2 + $0x10] sm:$0xff]   ;;  %v1468_v15 = vmul.f32 %v6576_v59, %v7388_v4 }
 0x283   :  { %5753 = vst [vmem:[#allocation2 + $0x18] sm:$0xff] %v5434_v10   ;;  %6589 = vpow2.f32 %v4860_v49  ;;  %v7440_v50 = vadd.f32 %v5928_v12, %v7293_v0  ;;  %6287 = vmatprep.mubr.bf16.mxu0 %v6487_v54  ;;  %v6491_v62 = vld [vmem:[#allocation2 + $0x30] sm:$0xff]  }
 0x284   :  { %v6578_v41 = vpop.eup %6577  ;;  %5757 = vst [vmem:[#allocation2 + $0x38] sm:$0xff] %v5454_v13   ;;  %v5930_v56 = vpop.f32.mrf.mxu1  ;;  %6591 = vrcp.f32 %v1376_v37 }
 0x285   :  { %v6580_v60 = vpop.eup %6579  ;;  %v1469_v17 = vmul.f32 %v6578_v41, %v7392_v16  ;;  %v4861_v18 = vmul.f32 -1.442695, %v7440_v50  ;;  %v5931_v21 = vadd.f32 %v5930_v56, %v5929_v14 }
 0x286   :  { %v1377_v23 = vadd.f32 1.0, %v6580_v60  ;;  %v5932_v24 = vpop.f32.mrf.mxu1 }
 0x287   :  { %v5459_v25 = vpack.c.bf16 %v1469_v17, %v1468_v15  ;;  %6593 = vpow2.f32 %v4861_v18  ;;  %v7446_v27 = vadd.f32 %v5931_v21, %v7293_v0 }
 0x288   :  { %6595 = vrcp.f32 %v1377_v23  ;;  %v5933_v28 = vpop.f32.mrf.mxu1  ;;  %v6582_v31 = vpop.eup %6581 }
 0x289   :  { %5758 = vst [vmem:[#allocation2 + $0x40] sm:$0xff] %v5459_v25   ;;  %v4862_v32 = vmul.f32 -1.442695, %v7446_v27  ;;  %v5934_v4 = vadd.f32 %v5933_v28, %v5932_v24  ;;  %v6584_v33 = vpop.eup %6583  ;;  %v1378_v16 = vadd.f32 1.0, %v6582_v31 }
 0x28a   :  { %v5935_v34 = vpop.f32.mrf.mxu1  ;;  %v6488_v35 = vld [vmem:[#allocation2 + $0x18] sm:$0xff]   ;;  %v1470_v30 = vmul.f32 %v6584_v33, %v7400_v38 }
 0x28b   :  { %6597 = vpow2.f32 %v4862_v32  ;;  %v7450_v29 = vadd.f32 %v5934_v4, %v7293_v0  ;;  %6288 = vmatmul.mubr.bf16.gmra.mxu0 %v6488_v35  ;;  %v6492_v60 = vld [vmem:[#allocation2 + $0x38] sm:$0xff]  }
 0x28c   :  { %v6586_v39 = vpop.eup %6585  ;;  %v5936_v43 = vpop.f32.mrf.mxu1  ;;  %6291 = vmatprep.mubr.bf16.mxu0 %v6489_v42  ;;  %6599 = vrcp.f32 %v1378_v16 }
 0x28d   :  { %v6588_v44 = vpop.eup %6587  ;;  %v1471_v40 = vmul.f32 %v6586_v39, %v7404_v51  ;;  %v4863_v45 = vmul.f32 -1.442695, %v7450_v29  ;;  %v5937_v46 = vadd.f32 %v5936_v43, %v5935_v34 }
 0x28e   :  { %v1379_v6 = vadd.f32 1.0, %v6588_v44  ;;  %v5938_v47 = vpop.f32.mrf.mxu1 }
 0x28f   :  { %v5464_v20 = vpack.c.bf16 %v1471_v40, %v1470_v30  ;;  %6601 = vpow2.f32 %v4863_v45  ;;  %v7456_v52 = vadd.f32 %v5937_v46, %v7293_v0 }
 0x290   :  { %v6590_v7 = vpop.eup %6589  ;;  %6603 = vrcp.f32 %v1379_v6  ;;  %v5939_v22 = vpop.f32.mrf.mxu1  ;;  %v6493_v17 = vld [vmem:[#allocation2 + $0x40] sm:$0xff]  }
 0x291   :  { %5759 = vst [vmem:[#allocation2 + $0x48] sm:$0xff] %v5464_v20   ;;  %v1380_v53 = vadd.f32 1.0, %v6590_v7  ;;  %v4864_v38 = vmul.f32 -1.442695, %v7456_v52  ;;  %v5940_v51 = vadd.f32 %v5939_v22, %v5938_v47  ;;  %v6592_v58 = vpop.eup %6591 }
 0x292   :  { %v5941_v55 = vpop.f32.mrf.mxu1  ;;  %v1472_v10 = vmul.f32 %v6592_v58, %v7412_v11 }
 0x293   :  { %v7460_v61 = vadd.f32 %v5940_v51, %v7293_v0  ;;  %6605 = vpow2.f32 %v4864_v38  ;;  %6292 = vmatmul.mubr.bf16.gmra.mxu0 %v6490_v57 }
 0x294   :  { %v6594_v63 = vpop.eup %6593  ;;  %v5942_v1 = vpop.f32.mrf.mxu1  ;;  %6607 = vrcp.f32 %v1380_v53  ;;  %6295 = vmatprep.mubr.bf16.mxu0 %v6491_v62 }
 0x295   :  { %v6596_v3 = vpop.eup %6595  ;;  %v1381_v5 = vadd.f32 1.0, %v6594_v63  ;;  %v4865_v8 = vmul.f32 -1.442695, %v7460_v61  ;;  %v5943_v9 = vadd.f32 %v5942_v1, %v5941_v55 }
 0x296   :  { %v1473_v49 = vmul.f32 %v6596_v3, %v7416_v19  ;;  %v5944_v12 = vpop.f32.mrf.mxu1 }
 0x297   :  { %6609 = vrcp.f32 %v1381_v5  ;;  %v7466_v59 = vadd.f32 %v5943_v9, %v7293_v0 }
 0x298   :  { %v6598_v13 = vpop.eup %6597  ;;  %v5469_v37 = vpack.c.bf16 %v1473_v49, %v1472_v10  ;;  %6611 = vpow2.f32 %v4865_v8  ;;  %v5945_v14 = vpop.f32.mrf.mxu1  ;;  %v6494_v33 = vld [vmem:[#allocation2 + $0x48] sm:$0xff]  }
 0x299   :  { %v1382_v54 = vadd.f32 1.0, %v6598_v13  ;;  %v4866_v41 = vmul.f32 -1.442695, %v7466_v59  ;;  %v5946_v56 = vadd.f32 %v5945_v14, %v5944_v12  ;;  %v6600_v15 = vpop.eup %6599 }
 0x29a   :  { %5760 = vst [vmem:[#allocation2 + $0x50] sm:$0xff] %v5469_v37   ;;  %v1474_v24 = vmul.f32 %v6600_v15, %v7422_v36 }
 0x29b   :  { %v1259_v11 = vadd.f32 %v5946_v56, %v7293_v0  ;;  %6613 = vpow2.f32 %v4866_v41  ;;  %6296 = vmatmul.mubr.bf16.gmra.mxu0 %v6492_v60 }
 0x29c   :  { %v6602_v19 = vpop.eup %6601  ;;  %6615 = vrcp.f32 %v1382_v54  ;;  %6299 = vmatprep.mubr.bf16.mxu0 %v6493_v17 }
 0x29d   :  { %v6604_v18 = vpop.eup %6603  ;;  %v1383_v21 = vadd.f32 1.0, %v6602_v19  ;;  %v4867_v23 = vmul.f32 -1.442695, %v1259_v11 }
 0x29e   :  { %v1475_v25 = vmul.f32 %v6604_v18, %v7428_v48 }
 0x29f   :  { %6617 = vrcp.f32 %v1383_v21 }
 0x2a0   :  { %v5474_v28 = vpack.c.bf16 %v1475_v25, %v1474_v24  ;;  %6619 = vpow2.f32 %v4867_v23  ;;  %v6606_v31 = vpop.eup %6605 }
 0x2a1   :  { %v6495_v32 = vld [vmem:[#allocation2 + $0x50] sm:$0xff]   ;;  %v6608_v4 = vpop.eup %6607  ;;  %v1384_v0 = vadd.f32 1.0, %v6606_v31 }
 0x2a2   :  { %5761 = vst [vmem:[#allocation2 + $0x58] sm:$0xff] %v5474_v28   ;;  %v1476_v35 = vmul.f32 %v6608_v4, %v7434_v2 }
 0x2a3   :  { %6300 = vmatmul.mubr.bf16.gmra.mxu0 %v6494_v33  ;;  %6621 = vrcp.f32 %v1384_v0 }
 0x2a4   :  { %v6610_v16 = vpop.eup %6609  ;;  %6303 = vmatprep.mubr.bf16.mxu0 %v6495_v32 }
 0x2a5   :  { %v6612_v34 = vpop.eup %6611  ;;  %v1477_v42 = vmul.f32 %v6610_v16, %v7440_v50 }
 0x2a6   :  { %v1385_v36 = vadd.f32 1.0, %v6612_v34 }
 0x2a7   :  { %v5479_v48 = vpack.c.bf16 %v1477_v42, %v1476_v35 }
 0x2a8   :  { %6623 = vrcp.f32 %v1385_v36  ;;  %v6614_v39 = vpop.eup %6613 }
 0x2a9   :  { %5762 = vst [vmem:[#allocation2 + $0x60] sm:$0xff] %v5479_v48   ;;  %v6496_v43 = vld [vmem:[#allocation2 + $0x58] sm:$0xff]   ;;  %v6616_v44 = vpop.eup %6615  ;;  %v1386_v30 = vadd.f32 1.0, %v6614_v39 }
 0x2aa   :  { %v1478_v46 = vmul.f32 %v6616_v44, %v7446_v27 }
 0x2ab   :  { %6304 = vmatmul.mubr.bf16.gmra.mxu0 %v6496_v43  ;;  %6625 = vrcp.f32 %v1386_v30 }
 0x2ac   :  { %v6618_v40 = vpop.eup %6617 }
 0x2ad   :  { %v6620_v45 = vpop.eup %6619  ;;  %v1479_v6 = vmul.f32 %v6618_v40, %v7450_v29 }
 0x2ae   :  { %v1387_v2 = vadd.f32 1.0, %v6620_v45 }
 0x2af   :  { %v5484_v50 = vpack.c.bf16 %v1479_v6, %v1478_v46 }
 0x2b0   :  { %6627 = vrcp.f32 %v1387_v2  ;;  %v6497_v47 = vld [vmem:[#allocation2 + $0x60] sm:$0xff]   ;;  %v6622_v20 = vpop.eup %6621 }
 0x2b1   :  { %5763 = vst [vmem:[#allocation2 + $0x68] sm:$0xff] %v5484_v50   ;;  %6307 = vmatprep.mubr.bf16.mxu0 %v6497_v47  ;;  %v1480_v22 = vmul.f32 %v6622_v20, %v7456_v52 }
 0x2b5   :  { %v6624_v7 = vpop.eup %6623 }
 0x2b6   :  { %v1481_v53 = vmul.f32 %v6624_v7, %v7460_v61 }
 0x2b8   :  { %v5489_v38 = vpack.c.bf16 %v1481_v53, %v1480_v22  ;;  %v6498_v51 = vld [vmem:[#allocation2 + $0x68] sm:$0xff]   ;;  %v6626_v27 = vpop.eup %6625 }
 0x2b9   :  { %6308 = vmatmul.mubr.bf16.gmra.mxu0 %v6498_v51  ;;  %v1482_v29 = vmul.f32 %v6626_v27, %v7466_v59 }
 0x2ba   :  { %5764 = vst [vmem:[#allocation2 + $0x70] sm:$0xff] %v5489_v38  }
 0x2bd   :  { %v6628_v55 = vpop.eup %6627 }
 0x2be   :  { %v1483_v57 = vmul.f32 %v6628_v55, %v1259_v11 }
 0x2c0   :  { %v5494_v58 = vpack.c.bf16 %v1483_v57, %v1482_v29 }
 0x2c1   :  { %v6499_v62 = vld [vmem:[#allocation2 + $0x70] sm:$0xff]  }
 0x2c2   :  { %5765 = vst [vmem:[#allocation2 + $0x78] sm:$0xff] %v5494_v58   ;;  %6311 = vmatprep.mubr.bf16.mxu0 %v6499_v62 }
 0x2c9   :  { %v6500_v63 = vld [vmem:[#allocation2 + $0x78] sm:$0xff]  }
 0x2ca   :  { %6312 = vmatmul.mubr.bf16.gmra.mxu0 %v6500_v63 }
 0x338   :  { %v6285_v1 = vpop.f32.mrf.mxu0 }
 0x33a   :  { %v1882_v3 = vpop.f32.mrf.mxu0 }
 0x33c   :  { %v6286_v52 = vpop.f32.mrf.mxu0 }
 0x33d   :  { %v5504_v5 = vpack.c.bf16 %v6286_v52, %v6285_v1 }
 0x33e   :  { %v1885_v61 = vpop.f32.mrf.mxu0 }
 0x33f   :  { %5766 = vst [vmem:[#allocation3 + $0x8] sm:$0xff] %v5504_v5   ;;  %v5499_v8 = vpack.c.bf16 %v1885_v61, %v1882_v3 }
 0x341   :  { %5500 = vst [vmem:[#allocation3] sm:$0xff] %v5499_v8  }
 0x34b   :  { %v6289_v9 = vpop.f32.mrf.mxu0 }
 0x34d   :  { %v1898_v10 = vpop.f32.mrf.mxu0 }
 0x34f   :  { %v6290_v49 = vpop.f32.mrf.mxu0 }
 0x350   :  { %v5514_v12 = vpack.c.bf16 %v6290_v49, %v6289_v9 }
 0x351   :  { %v1901_v59 = vpop.f32.mrf.mxu0 }
 0x352   :  { %5768 = vst [vmem:[#allocation3 + $0x18] sm:$0xff] %v5514_v12   ;;  %v5509_v13 = vpack.c.bf16 %v1901_v59, %v1898_v10 }
 0x353   :  { %v6293_v37 = vpop.f32.mrf.mxu0 }
 0x354   :  { %5767 = vst [vmem:[#allocation3 + $0x10] sm:$0xff] %v5509_v13  }
 0x355   :  { %v1914_v14 = vpop.f32.mrf.mxu0 }
 0x357   :  { %v6294_v54 = vpop.f32.mrf.mxu0 }
 0x358   :  { %v5524_v41 = vpack.c.bf16 %v6294_v54, %v6293_v37 }
 0x359   :  { %v1917_v56 = vpop.f32.mrf.mxu0 }
 0x35a   :  { %5770 = vst [vmem:[#allocation3 + $0x28] sm:$0xff] %v5524_v41   ;;  %v5519_v60 = vpack.c.bf16 %v1917_v56, %v1914_v14 }
 0x35b   :  { %v6297_v15 = vpop.f32.mrf.mxu0 }
 0x35c   :  { %5769 = vst [vmem:[#allocation3 + $0x20] sm:$0xff] %v5519_v60  }
 0x35d   :  { %v1930_v11 = vpop.f32.mrf.mxu0 }
 0x35f   :  { %v6298_v17 = vpop.f32.mrf.mxu0 }
 0x360   :  { %v5534_v19 = vpack.c.bf16 %v6298_v17, %v6297_v15 }
 0x361   :  { %v1933_v18 = vpop.f32.mrf.mxu0 }
 0x362   :  { %5772 = vst [vmem:[#allocation3 + $0x38] sm:$0xff] %v5534_v19   ;;  %v5529_v21 = vpack.c.bf16 %v1933_v18, %v1930_v11 }
 0x363   :  { %v6301_v23 = vpop.f32.mrf.mxu0 }
 0x364   :  { %5771 = vst [vmem:[#allocation3 + $0x30] sm:$0xff] %v5529_v21  }
 0x365   :  { %v1946_v24 = vpop.f32.mrf.mxu0 }
 0x367   :  { %v6302_v25 = vpop.f32.mrf.mxu0 }
 0x368   :  { %v5544_v28 = vpack.c.bf16 %v6302_v25, %v6301_v23 }
 0x369   :  { %v1949_v31 = vpop.f32.mrf.mxu0 }
 0x36a   :  { %5774 = vst [vmem:[#allocation3 + $0x48] sm:$0xff] %v5544_v28   ;;  %v5539_v32 = vpack.c.bf16 %v1949_v31, %v1946_v24 }
 0x36b   :  { %v6305_v4 = vpop.f32.mrf.mxu0 }
 0x36c   :  { %5773 = vst [vmem:[#allocation3 + $0x40] sm:$0xff] %v5539_v32  }
 0x36d   :  { %v1962_v0 = vpop.f32.mrf.mxu0 }
 0x36f   :  { %v6306_v33 = vpop.f32.mrf.mxu0 }
 0x370   :  { %v5554_v16 = vpack.c.bf16 %v6306_v33, %v6305_v4 }
 0x371   :  { %v1965_v34 = vpop.f32.mrf.mxu0 }
 0x372   :  { %5776 = vst [vmem:[#allocation3 + $0x58] sm:$0xff] %v5554_v16   ;;  %v5549_v35 = vpack.c.bf16 %v1965_v34, %v1962_v0 }
 0x374   :  { %5775 = vst [vmem:[#allocation3 + $0x50] sm:$0xff] %v5549_v35  }
 0x379   :  { %v6309_v42 = vpop.f32.mrf.mxu0 }
 0x37b   :  { %v1978_v36 = vpop.f32.mrf.mxu0 }
 0x37d   :  { %v6310_v48 = vpop.f32.mrf.mxu0 }
 0x37e   :  { %v5564_v39 = vpack.c.bf16 %v6310_v48, %v6309_v42 }
 0x37f   :  { %v1981_v43 = vpop.f32.mrf.mxu0 }
 0x380   :  { %5778 = vst [vmem:[#allocation3 + $0x68] sm:$0xff] %v5564_v39   ;;  %v5559_v44 = vpack.c.bf16 %v1981_v43, %v1978_v36 }
 0x382   :  { %5777 = vst [vmem:[#allocation3 + $0x60] sm:$0xff] %v5559_v44  }
 0x38a   :  { %v6313_v30 = vpop.f32.mrf.mxu0 }
 0x38c   :  { %v1994_v40 = vpop.f32.mrf.mxu0 }
 0x38e   :  { %v6314_v45 = vpop.f32.mrf.mxu0 }
 0x38f   :  { %v5574_v46 = vpack.c.bf16 %v6314_v45, %v6313_v30 }
 0x390   :  { %v1997_v6 = vpop.f32.mrf.mxu0 }
 0x391   :  { %5780 = vst [vmem:[#allocation3 + $0x78] sm:$0xff] %v5574_v46   ;;  %v5569_v2 = vpack.c.bf16 %v1997_v6, %v1994_v40 }
 0x393   :  { %5779 = vst [vmem:[#allocation3 + $0x70] sm:$0xff] %v5569_v2  }
 0x394   :  { %7205 = dma.done.wait [#allocation6], 4096 }
 0x395   :  { %7206 = vsyncadd [#allocation6], 4294963200  ;;  %v7482_v50 = vld [vmem:[%s8138_s6] ss:$0 sm:$0xff]  ;;  %v6630_v20 = vld [vmem:[#allocation3 + $0x38] sm:$0xff]  }
 0x396   :  { %v6632_v22 = vld [vmem:[#allocation3 + $0x30] sm:$0xff]   ;;  %v6633_v53 = vld [vmem:[#allocation3 + $0x68] sm:$0xff]   ;;  %v6635_v51 = vld [vmem:[#allocation3 + $0x60] sm:$0xff]  }
 0x397   :  { %v6634_v38 = vld [vmem:[#allocation3 + $0x28] sm:$0xff]   ;;  %v6636_v27 = vld [vmem:[#allocation3 + $0x20] sm:$0xff]   ;;  %v6637_v55 = vld [vmem:[#allocation3 + $0x58] sm:$0xff]  }
 0x398   :  { %v6629_v47 = vld [vmem:[#allocation3 + $0x78] sm:$0xff]   ;;  %v6639_v57 = vld [vmem:[#allocation3 + $0x50] sm:$0xff]   ;;  %v6645_v58 = vld [vmem:[#allocation5 + $0x4] ss:$8 sps:$4 sm:$0xff]  }
 0x399   :  { %5971 = vmatprep.subr.bf16.mxu0 %v6629_v47  ;;  %v6638_v29 = vld [vmem:[#allocation3 + $0x18] sm:$0xff]   ;;  %2523 = vmatprep.mubr.bf16.mxu0 %v6645_v58  ;;  %v6640_v62 = vld [vmem:[#allocation3 + $0x10] sm:$0xff]   ;;  %v6641_v63 = vld [vmem:[#allocation3 + $0x48] sm:$0xff]  }
 0x39a   :  { %v6631_v7 = vld [vmem:[#allocation3 + $0x70] sm:$0xff]   ;;  %5972 = vmatpush3.bf16.msra.mxu0 %v6630_v20  ;;  %v6642_v1 = vld [vmem:[#allocation3 + $0x8] sm:$0xff]   ;;  %v6643_v3 = vld [vmem:[#allocation3 + $0x40] sm:$0xff]  }
 0x39b   :  { %5973 = vmatprep.subr.bf16.mxu0 %v6631_v7  ;;  %v6644_v52 = vld [vmem:[#allocation3] sm:$0xff]   ;;  %v6648_v61 = vld [vmem:[#allocation5 + $0x14] ss:$8 sps:$4 sm:$0xff]   ;;  %v6650_v8 = vld [vmem:[#allocation5 + $0x10] ss:$8 sps:$4 sm:$0xff]  }
 0x39c   :  { %v6647_v5 = vld [vmem:[#allocation5] ss:$8 sps:$4 sm:$0xff]   ;;  %v6651_v9 = vld [vmem:[#allocation5 + $0x24] ss:$8 sps:$4 sm:$0xff]   ;;  %v6654_v10 = vld [vmem:[#allocation5 + $0x34] ss:$8 sps:$4 sm:$0xff]  }
 0x39d   :  { %v6657_v49 = vld [vmem:[#allocation5 + $0x44] ss:$8 sps:$4 sm:$0xff]   ;;  %v6660_v12 = vld [vmem:[#allocation5 + $0x54] ss:$8 sps:$4 sm:$0xff]  }
 0x39e   :  { %5974 = vmatpush3.bf16.msra.mxu0 %v6632_v22  ;;  %v6663_v59 = vld [vmem:[#allocation5 + $0x64] ss:$8 sps:$4 sm:$0xff]   ;;  %v6666_v13 = vld [vmem:[#allocation5 + $0x74] ss:$8 sps:$4 sm:$0xff]  }
 0x39f   :  { %5975 = vmatprep.subr.bf16.mxu0 %v6633_v53  ;;  %v6669_v37 = vld [vmem:[#allocation5 + $0x84] ss:$8 sps:$4 sm:$0xff]   ;;  %v6672_v14 = vld [vmem:[#allocation5 + $0x94] ss:$8 sps:$4 sm:$0xff]  }
 0x3a0   :  { %v6675_v54 = vld [vmem:[#allocation5 + $0xa4] ss:$8 sps:$4 sm:$0xff]   ;;  %v6678_v41 = vld [vmem:[#allocation5 + $0xb4] ss:$8 sps:$4 sm:$0xff]  }
 0x3a1   :  { %v6681_v56 = vld [vmem:[#allocation5 + $0xc4] ss:$8 sps:$4 sm:$0xff]   ;;  %v6684_v60 = vld [vmem:[#allocation5 + $0xd4] ss:$8 sps:$4 sm:$0xff]  }
 0x3a2   :  { %5976 = vmatpush3.bf16.msra.mxu0 %v6634_v38  ;;  %v6687_v15 = vld [vmem:[#allocation5 + $0xe4] ss:$8 sps:$4 sm:$0xff]   ;;  %v6690_v11 = vld [vmem:[#allocation5 + $0xf4] ss:$8 sps:$4 sm:$0xff]  }
 0x3a3   :  { %5977 = vmatprep.subr.bf16.mxu0 %v6635_v51 }
 0x3a6   :  { %5978 = vmatpush3.bf16.msra.mxu0 %v6636_v27 }
 0x3a7   :  { %5979 = vmatprep.subr.bf16.mxu0 %v6637_v55 }
 0x3aa   :  { %5980 = vmatpush3.bf16.msra.mxu0 %v6638_v29 }
 0x3ab   :  { %5981 = vmatprep.subr.bf16.mxu0 %v6639_v57 }
 0x3ae   :  { %5982 = vmatpush3.bf16.msra.mxu0 %v6640_v62 }
 0x3af   :  { %5983 = vmatprep.subr.bf16.mxu0 %v6641_v63 }
 0x3b2   :  { %5984 = vmatpush3.bf16.msra.mxu0 %v6642_v1 }
 0x3b3   :  { %5985 = vmatprep.subr.bf16.mxu0 %v6643_v3 }
 0x3b6   :  { %5986 = vmatpush3.bf16.msra.mxu0 %v6644_v52 }
 0x3b9   :  { %2524 = vmatmul.mubr.bf16.vlgmr.msra.gmra.mxu0 %v6647_v5 }
 0x3ba   :  { %2531 = vmatprep.mubr.bf16.mxu0 %v6648_v61 }
 0x3c1   :  { %2532 = vmatmul.mubr.bf16.gmra.mxu0 %v6650_v8 }
 0x3c2   :  { %7176 = shalt.err (!%p7302_p10)  }
 0x3c3   :  { %3165 = dma.hbm_to_vmem [thread:$0]  %s8139_s7, 4096, %s7295_s5, [#allocation6]  ;;  %2539 = vmatprep.mubr.bf16.mxu0 %v6651_v9  ;;  %v6693_v0 = vld [vmem:[#allocation13 + $0x38] sm:$0xff]   ;;  %v6694_v33 = vld [vmem:[#allocation13 + $0x30] sm:$0xff]   ;;  %v6695_v34 = vld [vmem:[#allocation13 + $0x28] sm:$0xff]  }
 0x3c4   :  { %v6653_v17 = vld [vmem:[#allocation5 + $0x20] ss:$8 sps:$4 sm:$0xff]   ;;  %v6656_v19 = vld [vmem:[#allocation5 + $0x30] ss:$8 sps:$4 sm:$0xff]   ;;  %6315 = vmatprep.subr.bf16.mxu1 %v6693_v0 }
 0x3c5   :  { %v6659_v18 = vld [vmem:[#allocation5 + $0x40] ss:$8 sps:$4 sm:$0xff]   ;;  %v6662_v21 = vld [vmem:[#allocation5 + $0x50] ss:$8 sps:$4 sm:$0xff]   ;;  %6316 = vmatpush3.bf16.msra.mxu1 %v6693_v0 }
 0x3c6   :  { %v6665_v23 = vld [vmem:[#allocation5 + $0x60] ss:$8 sps:$4 sm:$0xff]   ;;  %v6668_v24 = vld [vmem:[#allocation5 + $0x70] ss:$8 sps:$4 sm:$0xff]   ;;  %6317 = vmatprep.subr.bf16.mxu1 %v6694_v33 }
 0x3c7   :  { %v6671_v25 = vld [vmem:[#allocation5 + $0x80] ss:$8 sps:$4 sm:$0xff]   ;;  %v6674_v28 = vld [vmem:[#allocation5 + $0x90] ss:$8 sps:$4 sm:$0xff]  }
 0x3c8   :  { %v6677_v31 = vld [vmem:[#allocation5 + $0xa0] ss:$8 sps:$4 sm:$0xff]   ;;  %v6680_v32 = vld [vmem:[#allocation5 + $0xb0] ss:$8 sps:$4 sm:$0xff]  }
 0x3c9   :  { %2540 = vmatmul.mubr.bf16.gmra.mxu0 %v6653_v17  ;;  %v6683_v4 = vld [vmem:[#allocation5 + $0xc0] ss:$8 sps:$4 sm:$0xff]   ;;  %v6686_v16 = vld [vmem:[#allocation5 + $0xd0] ss:$8 sps:$4 sm:$0xff]   ;;  %6318 = vmatpush3.bf16.msra.mxu1 %v6694_v33 }
 0x3ca   :  { %2547 = vmatprep.mubr.bf16.mxu0 %v6654_v10  ;;  %6319 = vmatprep.subr.bf16.mxu1 %v6695_v34  ;;  %v6696_v35 = vld [vmem:[#allocation13 + $0x20] sm:$0xff]   ;;  %v6697_v36 = vld [vmem:[#allocation13 + $0x18] sm:$0xff]   ;;  %v6698_v48 = vld [vmem:[#allocation13 + $0x10] sm:$0xff]  }
 0x3cb   :  { %v6689_v42 = vld [vmem:[#allocation5 + $0xe0] ss:$8 sps:$4 sm:$0xff]   ;;  %v6692_v39 = vld [vmem:[#allocation5 + $0xf0] ss:$8 sps:$4 sm:$0xff]  }
 0x3cc   :  { %v6699_v43 = vld [vmem:[#allocation13 + $0x8] sm:$0xff]   ;;  %v6701_v44 = vld [vmem:[#allocation13] sm:$0xff]  }
 0x3cd   :  { %6320 = vmatpush3.bf16.msra.mxu1 %v6695_v34 }
 0x3ce   :  { %6321 = vmatprep.subr.bf16.mxu1 %v6696_v35 }
 0x3d1   :  { %2548 = vmatmul.mubr.bf16.gmra.mxu0 %v6656_v19  ;;  %6322 = vmatpush3.bf16.msra.mxu1 %v6696_v35 }
 0x3d2   :  { %2555 = vmatprep.mubr.bf16.mxu0 %v6657_v49  ;;  %6323 = vmatprep.subr.bf16.mxu1 %v6697_v36 }
 0x3d5   :  { %6324 = vmatpush3.bf16.msra.mxu1 %v6697_v36 }
 0x3d6   :  { %6325 = vmatprep.subr.bf16.mxu1 %v6698_v48 }
 0x3d9   :  { %2556 = vmatmul.mubr.bf16.gmra.mxu0 %v6659_v18  ;;  %6326 = vmatpush3.bf16.msra.mxu1 %v6698_v48 }
 0x3da   :  { %2563 = vmatprep.mubr.bf16.mxu0 %v6660_v12  ;;  %6327 = vmatprep.subr.bf16.mxu1 %v6699_v43 }
 0x3dd   :  { %6328 = vmatpush3.bf16.msra.mxu1 %v6699_v43 }
 0x3de   :  { %6329 = vmatprep.subr.bf16.mxu1 %v6701_v44 }
 0x3e1   :  { %2564 = vmatmul.mubr.bf16.gmra.mxu0 %v6662_v21  ;;  %6330 = vmatpush3.bf16.msra.mxu1 %v6701_v44 }
 0x3e2   :  { %2571 = vmatprep.mubr.bf16.mxu0 %v6663_v59 }
 0x3e9   :  { %2572 = vmatmul.mubr.bf16.gmra.mxu0 %v6665_v23 }
 0x3ea   :  { %2579 = vmatprep.mubr.bf16.mxu0 %v6666_v13 }
 0x3f1   :  { %2580 = vmatmul.mubr.bf16.gmra.mxu0 %v6668_v24 }
 0x3f2   :  { %2587 = vmatprep.mubr.bf16.mxu0 %v6669_v37 }
 0x3f9   :  { %2588 = vmatmul.mubr.bf16.gmra.mxu0 %v6671_v25 }
 0x3fa   :  { %2595 = vmatprep.mubr.bf16.mxu0 %v6672_v14 }
 0x401   :  { %2596 = vmatmul.mubr.bf16.gmra.mxu0 %v6674_v28 }
 0x402   :  { %2603 = vmatprep.mubr.bf16.mxu0 %v6675_v54 }
 0x409   :  { %2604 = vmatmul.mubr.bf16.gmra.mxu0 %v6677_v31 }
 0x40a   :  { %2611 = vmatprep.mubr.bf16.mxu0 %v6678_v41 }
 0x411   :  { %2612 = vmatmul.mubr.bf16.gmra.mxu0 %v6680_v32 }
 0x412   :  { %2619 = vmatprep.mubr.bf16.mxu0 %v6681_v56 }
 0x419   :  { %2620 = vmatmul.mubr.bf16.gmra.mxu0 %v6683_v4 }
 0x41a   :  { %2627 = vmatprep.mubr.bf16.mxu0 %v6684_v60 }
 0x421   :  { %2628 = vmatmul.mubr.bf16.gmra.mxu0 %v6686_v16 }
 0x422   :  { %2635 = vmatprep.mubr.bf16.mxu0 %v6687_v15 }
 0x429   :  { %2636 = vmatmul.mubr.bf16.gmra.mxu0 %v6689_v42 }
 0x42a   :  { %2643 = vmatprep.mubr.bf16.mxu0 %v6690_v11 }
 0x431   :  { %2644 = vmatmul.mubr.bf16.gmra.mxu0 %v6692_v39 }
 0x479   :  { %v5987_v30 = vpop.f32.mrf.mxu0 }
 0x47b   :  { %v5988_v40 = vpop.f32.mrf.mxu0 }
 0x47c   :  { %v5989_v45 = vadd.f32 %v5988_v40, %v5987_v30 }
 0x47d   :  { %v5990_v46 = vpop.f32.mrf.mxu0 }
 0x47e   :  { %v7491_v6 = vadd.f32 %v5989_v45, %v7315_v26 }
 0x47f   :  { %v5991_v2 = vpop.f32.mrf.mxu0 }
 0x480   :  { %v5005_v47 = vmul.f32 -1.442695, %v7491_v6  ;;  %v5992_v20 = vadd.f32 %v5991_v2, %v5990_v46 }
 0x481   :  { %v5993_v7 = vpop.f32.mrf.mxu0 }
 0x482   :  { %6717 = vpow2.f32 %v5005_v47  ;;  %v7495_v22 = vadd.f32 %v5992_v20, %v7315_v26 }
 0x483   :  { %v5994_v53 = vpop.f32.mrf.mxu0 }
 0x484   :  { %v5006_v38 = vmul.f32 -1.442695, %v7495_v22  ;;  %v5995_v51 = vadd.f32 %v5994_v53, %v5993_v7 }
 0x485   :  { %v5996_v27 = vpop.f32.mrf.mxu0 }
 0x486   :  { %6719 = vpow2.f32 %v5006_v38  ;;  %v7499_v55 = vadd.f32 %v5995_v51, %v7315_v26 }
 0x487   :  { %v5997_v29 = vpop.f32.mrf.mxu0 }
 0x488   :  { %v5007_v57 = vmul.f32 -1.442695, %v7499_v55  ;;  %v5998_v58 = vadd.f32 %v5997_v29, %v5996_v27 }
 0x489   :  { %v5999_v62 = vpop.f32.mrf.mxu0 }
 0x48a   :  { %6721 = vpow2.f32 %v5007_v57  ;;  %v7503_v63 = vadd.f32 %v5998_v58, %v7315_v26 }
 0x48b   :  { %v6000_v1 = vpop.f32.mrf.mxu0 }
 0x48c   :  { %v5008_v3 = vmul.f32 -1.442695, %v7503_v63  ;;  %v6001_v52 = vadd.f32 %v6000_v1, %v5999_v62 }
 0x48d   :  { %v6002_v5 = vpop.f32.mrf.mxu0 }
 0x48e   :  { %6723 = vpow2.f32 %v5008_v3  ;;  %v7507_v61 = vadd.f32 %v6001_v52, %v7315_v26 }
 0x48f   :  { %v6718_v8 = vpop.eup %6717  ;;  %v6003_v9 = vpop.f32.mrf.mxu0 }
 0x490   :  { %v2850_v10 = vadd.f32 1.0, %v6718_v8  ;;  %v5009_v49 = vmul.f32 -1.442695, %v7507_v61  ;;  %v6004_v12 = vadd.f32 %v6003_v9, %v6002_v5 }
 0x491   :  { %v6005_v59 = vpop.f32.mrf.mxu0 }
 0x492   :  { %v7511_v13 = vadd.f32 %v6004_v12, %v7315_v26  ;;  %6725 = vpow2.f32 %v5009_v49 }
 0x493   :  { %v6720_v37 = vpop.eup %6719  ;;  %v6006_v14 = vpop.f32.mrf.mxu0  ;;  %6727 = vrcp.f32 %v2850_v10 }
 0x494   :  { %v2851_v54 = vadd.f32 1.0, %v6720_v37  ;;  %v5010_v41 = vmul.f32 -1.442695, %v7511_v13  ;;  %v6007_v56 = vadd.f32 %v6006_v14, %v6005_v59 }
 0x495   :  { %v6008_v60 = vpop.f32.mrf.mxu0 }
 0x496   :  { %6729 = vrcp.f32 %v2851_v54  ;;  %v7515_v15 = vadd.f32 %v6007_v56, %v7315_v26 }
 0x497   :  { %v6722_v11 = vpop.eup %6721  ;;  %6731 = vpow2.f32 %v5010_v41  ;;  %v6009_v17 = vpop.f32.mrf.mxu0 }
 0x498   :  { %v2852_v19 = vadd.f32 1.0, %v6722_v11  ;;  %v5011_v18 = vmul.f32 -1.442695, %v7515_v15  ;;  %v6010_v21 = vadd.f32 %v6009_v17, %v6008_v60 }
 0x499   :  { %v6011_v23 = vpop.f32.mrf.mxu0 }
 0x49a   :  { %v7519_v24 = vadd.f32 %v6010_v21, %v7315_v26  ;;  %6733 = vpow2.f32 %v5011_v18 }
 0x49b   :  { %v6724_v25 = vpop.eup %6723  ;;  %v6012_v28 = vpop.f32.mrf.mxu0  ;;  %6735 = vrcp.f32 %v2852_v19 }
 0x49c   :  { %v2853_v31 = vadd.f32 1.0, %v6724_v25  ;;  %v5012_v32 = vmul.f32 -1.442695, %v7519_v24  ;;  %v6013_v4 = vadd.f32 %v6012_v28, %v6011_v23 }
 0x49d   :  { %v6014_v0 = vpop.f32.mrf.mxu0 }
 0x49e   :  { %6737 = vrcp.f32 %v2853_v31  ;;  %v7523_v33 = vadd.f32 %v6013_v4, %v7315_v26 }
 0x49f   :  { %6739 = vpow2.f32 %v5012_v32  ;;  %v6015_v16 = vpop.f32.mrf.mxu0  ;;  %v6726_v34 = vpop.eup %6725 }
 0x4a0   :  { %v5013_v35 = vmul.f32 -1.442695, %v7523_v33  ;;  %v6016_v42 = vadd.f32 %v6015_v16, %v6014_v0  ;;  %v6728_v36 = vpop.eup %6727  ;;  %v2854_v48 = vadd.f32 1.0, %v6726_v34 }
 0x4a1   :  { %v6017_v39 = vpop.f32.mrf.mxu0  ;;  %v2946_v45 = vmul.f32 %v6728_v36, %v7491_v6 }
 0x4a2   :  { %6741 = vpow2.f32 %v5013_v35  ;;  %v7527_v43 = vadd.f32 %v6016_v42, %v7315_v26 }
 0x4a3   :  { %v6730_v44 = vpop.eup %6729  ;;  %v6018_v30 = vpop.f32.mrf.mxu0  ;;  %6743 = vrcp.f32 %v2854_v48 }
 0x4a4   :  { %v6732_v40 = vpop.eup %6731  ;;  %v2947_v46 = vmul.f32 %v6730_v44, %v7495_v22  ;;  %v5014_v2 = vmul.f32 -1.442695, %v7527_v43  ;;  %v6019_v47 = vadd.f32 %v6018_v30, %v6017_v39 }
 0x4a5   :  { %v2855_v20 = vadd.f32 1.0, %v6732_v40  ;;  %v6020_v7 = vpop.f32.mrf.mxu0 }
 0x4a6   :  { %v5579_v53 = vpack.c.bf16 %v2947_v46, %v2946_v45  ;;  %6745 = vpow2.f32 %v5014_v2  ;;  %v7533_v38 = vadd.f32 %v6019_v47, %v7315_v26 }
 0x4a7   :  { %6747 = vrcp.f32 %v2855_v20  ;;  %v6021_v51 = vpop.f32.mrf.mxu0  ;;  %v6734_v27 = vpop.eup %6733 }
 0x4a8   :  { %5580 = vst [vmem:[#allocation2] sm:$0xff] %v5579_v53   ;;  %v5015_v29 = vmul.f32 -1.442695, %v7533_v38  ;;  %v6022_v6 = vadd.f32 %v6021_v51, %v6020_v7  ;;  %v6736_v57 = vpop.eup %6735  ;;  %v2856_v22 = vadd.f32 1.0, %v6734_v27 }
 0x4a9   :  { %v6023_v58 = vpop.f32.mrf.mxu0  ;;  %v2948_v5 = vmul.f32 %v6736_v57, %v7499_v55 }
 0x4aa   :  { %6749 = vpow2.f32 %v5015_v29  ;;  %v7537_v62 = vadd.f32 %v6022_v6, %v7315_v26 }
 0x4ab   :  { %v6738_v1 = vpop.eup %6737  ;;  %v6024_v3 = vpop.f32.mrf.mxu0  ;;  %6751 = vrcp.f32 %v2856_v22 }
 0x4ac   :  { %v6740_v52 = vpop.eup %6739  ;;  %v2949_v8 = vmul.f32 %v6738_v1, %v7503_v63  ;;  %v5016_v9 = vmul.f32 -1.442695, %v7537_v62  ;;  %v6025_v10 = vadd.f32 %v6024_v3, %v6023_v58 }
 0x4ad   :  { %v2857_v49 = vadd.f32 1.0, %v6740_v52  ;;  %v6026_v12 = vpop.f32.mrf.mxu0 }
 0x4ae   :  { %v5584_v59 = vpack.c.bf16 %v2949_v8, %v2948_v5  ;;  %6753 = vpow2.f32 %v5016_v9  ;;  %v7543_v37 = vadd.f32 %v6025_v10, %v7315_v26 }
 0x4af   :  { %v6742_v14 = vpop.eup %6741  ;;  %6755 = vrcp.f32 %v2857_v49  ;;  %v6027_v54 = vpop.f32.mrf.mxu0  ;;  %v6700_v41 = vld [vmem:[#allocation2] sm:$0xff]  }
 0x4b0   :  { %5781 = vst [vmem:[#allocation2 + $0x8] sm:$0xff] %v5584_v59   ;;  %v2858_v56 = vadd.f32 1.0, %v6742_v14  ;;  %v5017_v55 = vmul.f32 -1.442695, %v7543_v37  ;;  %v6028_v63 = vadd.f32 %v6027_v54, %v6026_v12  ;;  %6331 = vmatprep.mubr.bf16.mxu1 %v6700_v41  ;;  %v6744_v11 = vpop.eup %6743 }
 0x4b1   :  { %v6029_v60 = vpop.f32.mrf.mxu0  ;;  %v2950_v31 = vmul.f32 %v6744_v11, %v7507_v61 }
 0x4b2   :  { %v7547_v17 = vadd.f32 %v6028_v63, %v7315_v26  ;;  %6757 = vpow2.f32 %v5017_v55 }
 0x4b3   :  { %v6746_v19 = vpop.eup %6745  ;;  %v6030_v18 = vpop.f32.mrf.mxu0  ;;  %6759 = vrcp.f32 %v2858_v56 }
 0x4b4   :  { %v6748_v21 = vpop.eup %6747  ;;  %v2859_v23 = vadd.f32 1.0, %v6746_v19  ;;  %v5018_v25 = vmul.f32 -1.442695, %v7547_v17  ;;  %v6031_v28 = vadd.f32 %v6030_v18, %v6029_v60 }
 0x4b5   :  { %v2951_v32 = vmul.f32 %v6748_v21, %v7511_v13  ;;  %v6032_v4 = vpop.f32.mrf.mxu0 }
 0x4b6   :  { %6761 = vrcp.f32 %v2859_v23  ;;  %v7553_v0 = vadd.f32 %v6031_v28, %v7315_v26 }
 0x4b7   :  { %v6750_v16 = vpop.eup %6749  ;;  %v5589_v34 = vpack.c.bf16 %v2951_v32, %v2950_v31  ;;  %6763 = vpow2.f32 %v5018_v25  ;;  %v6033_v35 = vpop.f32.mrf.mxu0  ;;  %v6702_v42 = vld [vmem:[#allocation2 + $0x8] sm:$0xff]  }
 0x4b8   :  { %v2860_v36 = vadd.f32 1.0, %v6750_v16  ;;  %v5019_v48 = vmul.f32 -1.442695, %v7553_v0  ;;  %v6034_v39 = vadd.f32 %v6033_v35, %v6032_v4  ;;  %6332 = vmatmul.mubr.bf16.vlgmr.msra.gmra.mxu1 %v6702_v42  ;;  %v6752_v61 = vpop.eup %6751 }
 0x4b9   :  { %5782 = vst [vmem:[#allocation2 + $0x10] sm:$0xff] %v5589_v34   ;;  %v6035_v44 = vpop.f32.mrf.mxu0  ;;  %v2952_v20 = vmul.f32 %v6752_v61, %v7515_v15 }
 0x4ba   :  { %v7557_v13 = vadd.f32 %v6034_v39, %v7315_v26  ;;  %6765 = vpow2.f32 %v5019_v48 }
 0x4bb   :  { %v6754_v30 = vpop.eup %6753  ;;  %v6036_v40 = vpop.f32.mrf.mxu0  ;;  %6767 = vrcp.f32 %v2860_v36 }
 0x4bc   :  { %v6756_v45 = vpop.eup %6755  ;;  %v2861_v46 = vadd.f32 1.0, %v6754_v30  ;;  %v5020_v2 = vmul.f32 -1.442695, %v7557_v13  ;;  %v6037_v47 = vadd.f32 %v6036_v40, %v6035_v44 }
 0x4bd   :  { %v2953_v7 = vmul.f32 %v6756_v45, %v7519_v24  ;;  %v6038_v53 = vpop.f32.mrf.mxu0 }
 0x4be   :  { %6769 = vrcp.f32 %v2861_v46  ;;  %v7563_v51 = vadd.f32 %v6037_v47, %v7315_v26 }
 0x4bf   :  { %v5594_v27 = vpack.c.bf16 %v2953_v7, %v2952_v20  ;;  %6771 = vpow2.f32 %v5020_v2  ;;  %v6039_v29 = vpop.f32.mrf.mxu0  ;;  %v6758_v6 = vpop.eup %6757 }
 0x4c0   :  { %v5021_v57 = vmul.f32 -1.442695, %v7563_v51  ;;  %v6040_v22 = vadd.f32 %v6039_v29, %v6038_v53  ;;  %v6760_v58 = vpop.eup %6759  ;;  %v2862_v1 = vadd.f32 1.0, %v6758_v6  ;;  %v6703_v52 = vld [vmem:[#allocation2 + $0x10] sm:$0xff]  }
 0x4c1   :  { %5783 = vst [vmem:[#allocation2 + $0x18] sm:$0xff] %v5594_v27   ;;  %v6041_v3 = vpop.f32.mrf.mxu0  ;;  %6335 = vmatprep.mubr.bf16.mxu1 %v6703_v52  ;;  %v2954_v9 = vmul.f32 %v6760_v58, %v7523_v33 }
 0x4c2   :  { %6773 = vpow2.f32 %v5021_v57  ;;  %v7567_v15 = vadd.f32 %v6040_v22, %v7315_v26 }
 0x4c3   :  { %v6762_v24 = vpop.eup %6761  ;;  %v6042_v5 = vpop.f32.mrf.mxu0  ;;  %6775 = vrcp.f32 %v2862_v1 }
 0x4c4   :  { %v6764_v8 = vpop.eup %6763  ;;  %v2955_v10 = vmul.f32 %v6762_v24, %v7527_v43  ;;  %v5022_v49 = vmul.f32 -1.442695, %v7567_v15  ;;  %v6043_v12 = vadd.f32 %v6042_v5, %v6041_v3 }
 0x4c5   :  { %v2863_v59 = vadd.f32 1.0, %v6764_v8  ;;  %v6044_v14 = vpop.f32.mrf.mxu0 }
 0x4c6   :  { %v5599_v54 = vpack.c.bf16 %v2955_v10, %v2954_v9  ;;  %6777 = vpow2.f32 %v5022_v49  ;;  %v7573_v41 = vadd.f32 %v6043_v12, %v7315_v26 }
 0x4c7   :  { %6779 = vrcp.f32 %v2863_v59  ;;  %v6045_v56 = vpop.f32.mrf.mxu0  ;;  %v6766_v55 = vpop.eup %6765 }
 0x4c8   :  { %5784 = vst [vmem:[#allocation2 + $0x20] sm:$0xff] %v5599_v54   ;;  %v5023_v63 = vmul.f32 -1.442695, %v7573_v41  ;;  %v6046_v33 = vadd.f32 %v6045_v56, %v6044_v14  ;;  %v6768_v60 = vpop.eup %6767  ;;  %v2864_v43 = vadd.f32 1.0, %v6766_v55  ;;  %v6704_v19 = vld [vmem:[#allocation2 + $0x18] sm:$0xff]  }
 0x4c9   :  { %v6047_v11 = vpop.f32.mrf.mxu0  ;;  %6336 = vmatmul.mubr.bf16.gmra.mxu1 %v6704_v19  ;;  %v2956_v28 = vmul.f32 %v6768_v60, %v7533_v38 }
 0x4ca   :  { %6781 = vpow2.f32 %v5023_v63  ;;  %v7577_v18 = vadd.f32 %v6046_v33, %v7315_v26 }
 0x4cb   :  { %v6770_v21 = vpop.eup %6769  ;;  %v6048_v23 = vpop.f32.mrf.mxu0  ;;  %6783 = vrcp.f32 %v2864_v43 }
 0x4cc   :  { %v6772_v25 = vpop.eup %6771  ;;  %v2957_v31 = vmul.f32 %v6770_v21, %v7537_v62  ;;  %v5024_v32 = vmul.f32 -1.442695, %v7577_v18  ;;  %v6049_v4 = vadd.f32 %v6048_v23, %v6047_v11 }
 0x4cd   :  { %v2865_v16 = vadd.f32 1.0, %v6772_v25  ;;  %v6050_v34 = vpop.f32.mrf.mxu0 }
 0x4ce   :  { %v5604_v35 = vpack.c.bf16 %v2957_v31, %v2956_v28  ;;  %6785 = vpow2.f32 %v5024_v32  ;;  %v7583_v42 = vadd.f32 %v6049_v4, %v7315_v26 }
 0x4cf   :  { %v6774_v36 = vpop.eup %6773  ;;  %6787 = vrcp.f32 %v2865_v16  ;;  %v6051_v48 = vpop.f32.mrf.mxu0  ;;  %v6705_v39 = vld [vmem:[#allocation2 + $0x20] sm:$0xff]  }
 0x4d0   :  { %5785 = vst [vmem:[#allocation2 + $0x28] sm:$0xff] %v5604_v35   ;;  %v2866_v44 = vadd.f32 1.0, %v6774_v36  ;;  %v5025_v38 = vmul.f32 -1.442695, %v7583_v42  ;;  %v6052_v62 = vadd.f32 %v6051_v48, %v6050_v34  ;;  %6339 = vmatprep.mubr.bf16.mxu1 %v6705_v39  ;;  %v6776_v30 = vpop.eup %6775 }
 0x4d1   :  { %v6053_v61 = vpop.f32.mrf.mxu0  ;;  %v2958_v53 = vmul.f32 %v6776_v30, %v7543_v37 }
 0x4d2   :  { %v7587_v40 = vadd.f32 %v6052_v62, %v7315_v26  ;;  %6789 = vpow2.f32 %v5025_v38 }
 0x4d3   :  { %v6778_v45 = vpop.eup %6777  ;;  %v6054_v46 = vpop.f32.mrf.mxu0  ;;  %6791 = vrcp.f32 %v2866_v44 }
 0x4d4   :  { %v6780_v2 = vpop.eup %6779  ;;  %v2867_v47 = vadd.f32 1.0, %v6778_v45  ;;  %v5026_v20 = vmul.f32 -1.442695, %v7587_v40  ;;  %v6055_v7 = vadd.f32 %v6054_v46, %v6053_v61 }
 0x4d5   :  { %v2959_v27 = vmul.f32 %v6780_v2, %v7547_v17  ;;  %v6056_v29 = vpop.f32.mrf.mxu0 }
 0x4d6   :  { %6793 = vrcp.f32 %v2867_v47  ;;  %v7593_v6 = vadd.f32 %v6055_v7, %v7315_v26 }
 0x4d7   :  { %v6782_v57 = vpop.eup %6781  ;;  %v5609_v22 = vpack.c.bf16 %v2959_v27, %v2958_v53  ;;  %6795 = vpow2.f32 %v5026_v20  ;;  %v6057_v58 = vpop.f32.mrf.mxu0  ;;  %v6706_v1 = vld [vmem:[#allocation2 + $0x28] sm:$0xff]  }
 0x4d8   :  { %v2868_v3 = vadd.f32 1.0, %v6782_v57  ;;  %v5027_v52 = vmul.f32 -1.442695, %v7593_v6  ;;  %v6058_v24 = vadd.f32 %v6057_v58, %v6056_v29  ;;  %6340 = vmatmul.mubr.bf16.gmra.mxu1 %v6706_v1  ;;  %v6784_v37 = vpop.eup %6783 }
 0x4d9   :  { %5786 = vst [vmem:[#allocation2 + $0x30] sm:$0xff] %v5609_v22   ;;  %v6059_v5 = vpop.f32.mrf.mxu0  ;;  %v2960_v14 = vmul.f32 %v6784_v37, %v7553_v0 }
 0x4da   :  { %v7597_v17 = vadd.f32 %v6058_v24, %v7315_v26  ;;  %6797 = vpow2.f32 %v5027_v52 }
 0x4db   :  { %v6786_v8 = vpop.eup %6785  ;;  %v6060_v9 = vpop.f32.mrf.mxu0  ;;  %6799 = vrcp.f32 %v2868_v3 }
 0x4dc   :  { %v6788_v10 = vpop.eup %6787  ;;  %v2869_v49 = vadd.f32 1.0, %v6786_v8  ;;  %v5028_v12 = vmul.f32 -1.442695, %v7597_v17  ;;  %v6061_v59 = vadd.f32 %v6060_v9, %v6059_v5 }
 0x4dd   :  { %v2961_v54 = vmul.f32 %v6788_v10, %v7557_v13  ;;  %v6062_v56 = vpop.f32.mrf.mxu0 }
 0x4de   :  { %6801 = vrcp.f32 %v2869_v49  ;;  %v7603_v55 = vadd.f32 %v6061_v59, %v7315_v26 }
 0x4df   :  { %v5614_v63 = vpack.c.bf16 %v2961_v54, %v2960_v14  ;;  %6803 = vpow2.f32 %v5028_v12  ;;  %v6063_v33 = vpop.f32.mrf.mxu0  ;;  %v6790_v60 = vpop.eup %6789 }
 0x4e0   :  { %v5029_v43 = vmul.f32 -1.442695, %v7603_v55  ;;  %v6064_v11 = vadd.f32 %v6063_v33, %v6062_v56  ;;  %v6792_v19 = vpop.eup %6791  ;;  %v2870_v21 = vadd.f32 1.0, %v6790_v60  ;;  %v6707_v25 = vld [vmem:[#allocation2 + $0x30] sm:$0xff]  }
 0x4e1   :  { %5787 = vst [vmem:[#allocation2 + $0x38] sm:$0xff] %v5614_v63   ;;  %v6065_v23 = vpop.f32.mrf.mxu0  ;;  %6343 = vmatprep.mubr.bf16.mxu1 %v6707_v25  ;;  %v2962_v32 = vmul.f32 %v6792_v19, %v7563_v51 }
 0x4e2   :  { %6805 = vpow2.f32 %v5029_v43  ;;  %v7607_v0 = vadd.f32 %v6064_v11, %v7315_v26 }
 0x4e3   :  { %v6794_v13 = vpop.eup %6793  ;;  %v6066_v28 = vpop.f32.mrf.mxu0  ;;  %6807 = vrcp.f32 %v2870_v21 }
 0x4e4   :  { %v6796_v31 = vpop.eup %6795  ;;  %v2963_v4 = vmul.f32 %v6794_v13, %v7567_v15  ;;  %v5030_v16 = vmul.f32 -1.442695, %v7607_v0  ;;  %v6067_v34 = vadd.f32 %v6066_v28, %v6065_v23 }
 0x4e5   :  { %v2871_v35 = vadd.f32 1.0, %v6796_v31  ;;  %v6068_v36 = vpop.f32.mrf.mxu0 }
 0x4e6   :  { %v5619_v48 = vpack.c.bf16 %v2963_v4, %v2962_v32  ;;  %6809 = vpow2.f32 %v5030_v16  ;;  %v7613_v39 = vadd.f32 %v6067_v34, %v7315_v26 }
 0x4e7   :  { %6811 = vrcp.f32 %v2871_v35  ;;  %v6069_v44 = vpop.f32.mrf.mxu0  ;;  %v6798_v38 = vpop.eup %6797 }
 0x4e8   :  { %5788 = vst [vmem:[#allocation2 + $0x40] sm:$0xff] %v5619_v48   ;;  %v5031_v62 = vmul.f32 -1.442695, %v7613_v39  ;;  %v6070_v51 = vadd.f32 %v6069_v44, %v6068_v36  ;;  %v6800_v61 = vpop.eup %6799  ;;  %v2872_v15 = vadd.f32 1.0, %v6798_v38  ;;  %v6708_v45 = vld [vmem:[#allocation2 + $0x38] sm:$0xff]  }
 0x4e9   :  { %v6071_v30 = vpop.f32.mrf.mxu0  ;;  %6344 = vmatmul.mubr.bf16.gmra.mxu1 %v6708_v45  ;;  %v2964_v7 = vmul.f32 %v6800_v61, %v7573_v41 }
 0x4ea   :  { %6813 = vpow2.f32 %v5031_v62  ;;  %v7617_v46 = vadd.f32 %v6070_v51, %v7315_v26 }
 0x4eb   :  { %v6802_v2 = vpop.eup %6801  ;;  %v6072_v47 = vpop.f32.mrf.mxu0  ;;  %6815 = vrcp.f32 %v2872_v15 }
 0x4ec   :  { %v6804_v20 = vpop.eup %6803  ;;  %v2965_v53 = vmul.f32 %v6802_v2, %v7577_v18  ;;  %v5032_v27 = vmul.f32 -1.442695, %v7617_v46  ;;  %v6073_v29 = vadd.f32 %v6072_v47, %v6071_v30 }
 0x4ed   :  { %v2873_v57 = vadd.f32 1.0, %v6804_v20  ;;  %v6074_v22 = vpop.f32.mrf.mxu0 }
 0x4ee   :  { %v5624_v58 = vpack.c.bf16 %v2965_v53, %v2964_v7  ;;  %6817 = vpow2.f32 %v5032_v27  ;;  %v7623_v1 = vadd.f32 %v6073_v29, %v7315_v26 }
 0x4ef   :  { %v6806_v3 = vpop.eup %6805  ;;  %6819 = vrcp.f32 %v2873_v57  ;;  %v6075_v52 = vpop.f32.mrf.mxu0  ;;  %v6709_v24 = vld [vmem:[#allocation2 + $0x40] sm:$0xff]  }
 0x4f0   :  { %5789 = vst [vmem:[#allocation2 + $0x48] sm:$0xff] %v5624_v58   ;;  %v2874_v5 = vadd.f32 1.0, %v6806_v3  ;;  %v5033_v41 = vmul.f32 -1.442695, %v7623_v1  ;;  %v6076_v18 = vadd.f32 %v6075_v52, %v6074_v22  ;;  %6347 = vmatprep.mubr.bf16.mxu1 %v6709_v24  ;;  %v6808_v8 = vpop.eup %6807 }
 0x4f1   :  { %v6077_v37 = vpop.f32.mrf.mxu0  ;;  %v2966_v56 = vmul.f32 %v6808_v8, %v7583_v42 }
 0x4f2   :  { %v7627_v9 = vadd.f32 %v6076_v18, %v7315_v26  ;;  %6821 = vpow2.f32 %v5033_v41 }
 0x4f3   :  { %v6810_v10 = vpop.eup %6809  ;;  %v6078_v49 = vpop.f32.mrf.mxu0  ;;  %6823 = vrcp.f32 %v2874_v5 }
 0x4f4   :  { %v6812_v12 = vpop.eup %6811  ;;  %v2875_v59 = vadd.f32 1.0, %v6810_v10  ;;  %v5034_v14 = vmul.f32 -1.442695, %v7627_v9  ;;  %v6079_v54 = vadd.f32 %v6078_v49, %v6077_v37 }
 0x4f5   :  { %v2967_v63 = vmul.f32 %v6812_v12, %v7587_v40  ;;  %v6080_v33 = vpop.f32.mrf.mxu0 }
 0x4f6   :  { %6825 = vrcp.f32 %v2875_v59  ;;  %v7633_v60 = vadd.f32 %v6079_v54, %v7315_v26 }
 0x4f7   :  { %v6814_v43 = vpop.eup %6813  ;;  %v5629_v11 = vpack.c.bf16 %v2967_v63, %v2966_v56  ;;  %6827 = vpow2.f32 %v5034_v14  ;;  %v6081_v19 = vpop.f32.mrf.mxu0  ;;  %v6710_v21 = vld [vmem:[#allocation2 + $0x48] sm:$0xff]  }
 0x4f8   :  { %v2876_v23 = vadd.f32 1.0, %v6814_v43  ;;  %v5035_v25 = vmul.f32 -1.442695, %v7633_v60  ;;  %v6082_v13 = vadd.f32 %v6081_v19, %v6080_v33  ;;  %6348 = vmatmul.mubr.bf16.gmra.mxu1 %v6710_v21  ;;  %v6816_v28 = vpop.eup %6815 }
 0x4f9   :  { %5790 = vst [vmem:[#allocation2 + $0x50] sm:$0xff] %v5629_v11   ;;  %v2968_v16 = vmul.f32 %v6816_v28, %v7593_v6 }
 0x4fa   :  { %v2753_v42 = vadd.f32 %v6082_v13, %v7315_v26  ;;  %6829 = vpow2.f32 %v5035_v25 }
 0x4fb   :  { %v6818_v40 = vpop.eup %6817  ;;  %6831 = vrcp.f32 %v2876_v23 }
 0x4fc   :  { %v6820_v31 = vpop.eup %6819  ;;  %v2877_v32 = vadd.f32 1.0, %v6818_v40  ;;  %v5036_v4 = vmul.f32 -1.442695, %v2753_v42 }
 0x4fd   :  { %v2969_v34 = vmul.f32 %v6820_v31, %v7597_v17 }
 0x4fe   :  { %6833 = vrcp.f32 %v2877_v32 }
 0x4ff   :  { %v5634_v35 = vpack.c.bf16 %v2969_v34, %v2968_v16  ;;  %6835 = vpow2.f32 %v5036_v4  ;;  %v6822_v36 = vpop.eup %6821 }
 0x500   :  { %v6711_v48 = vld [vmem:[#allocation2 + $0x50] sm:$0xff]   ;;  %v6824_v44 = vpop.eup %6823  ;;  %v2878_v38 = vadd.f32 1.0, %v6822_v36 }
 0x501   :  { %5791 = vst [vmem:[#allocation2 + $0x58] sm:$0xff] %v5634_v35   ;;  %6351 = vmatprep.mubr.bf16.mxu1 %v6711_v48  ;;  %v2970_v51 = vmul.f32 %v6824_v44, %v7603_v55 }
 0x502   :  { %6837 = vrcp.f32 %v2878_v38 }
 0x503   :  { %v6826_v26 = vpop.eup %6825 }
 0x504   :  { %v6828_v62 = vpop.eup %6827  ;;  %v2971_v61 = vmul.f32 %v6826_v26, %v7607_v0 }
 0x505   :  { %v2879_v15 = vadd.f32 1.0, %v6828_v62 }
 0x506   :  { %v5639_v6 = vpack.c.bf16 %v2971_v61, %v2970_v51 }
 0x507   :  { %6839 = vrcp.f32 %v2879_v15  ;;  %v6830_v17 = vpop.eup %6829 }
 0x508   :  { %5792 = vst [vmem:[#allocation2 + $0x60] sm:$0xff] %v5639_v6   ;;  %v6712_v30 = vld [vmem:[#allocation2 + $0x58] sm:$0xff]   ;;  %v6832_v45 = vpop.eup %6831  ;;  %v2880_v2 = vadd.f32 1.0, %v6830_v17 }
 0x509   :  { %6352 = vmatmul.mubr.bf16.gmra.mxu1 %v6712_v30  ;;  %v2972_v7 = vmul.f32 %v6832_v45, %v7613_v39 }
 0x50a   :  { %6841 = vrcp.f32 %v2880_v2 }
 0x50b   :  { %v6834_v47 = vpop.eup %6833 }
 0x50c   :  { %v6836_v20 = vpop.eup %6835  ;;  %v2973_v53 = vmul.f32 %v6834_v47, %v7617_v46 }
 0x50d   :  { %v2881_v55 = vadd.f32 1.0, %v6836_v20 }
 0x50e   :  { %v5644_v27 = vpack.c.bf16 %v2973_v53, %v2972_v7 }
 0x50f   :  { %6843 = vrcp.f32 %v2881_v55  ;;  %v6713_v0 = vld [vmem:[#allocation2 + $0x60] sm:$0xff]   ;;  %v6838_v29 = vpop.eup %6837 }
 0x510   :  { %5793 = vst [vmem:[#allocation2 + $0x68] sm:$0xff] %v5644_v27   ;;  %6355 = vmatprep.mubr.bf16.mxu1 %v6713_v0  ;;  %v2974_v22 = vmul.f32 %v6838_v29, %v7623_v1 }
 0x514   :  { %v6840_v57 = vpop.eup %6839 }
 0x515   :  { %v2975_v58 = vmul.f32 %v6840_v57, %v7627_v9 }
 0x517   :  { %v5649_v3 = vpack.c.bf16 %v2975_v58, %v2974_v22  ;;  %v6714_v52 = vld [vmem:[#allocation2 + $0x68] sm:$0xff]   ;;  %v6842_v39 = vpop.eup %6841 }
 0x518   :  { %6356 = vmatmul.mubr.bf16.gmra.mxu1 %v6714_v52  ;;  %v2976_v46 = vmul.f32 %v6842_v39, %v7633_v60 }
 0x519   :  { %5794 = vst [vmem:[#allocation2 + $0x70] sm:$0xff] %v5649_v3  }
 0x51c   :  { %v6844_v24 = vpop.eup %6843 }
 0x51d   :  { %v2977_v5 = vmul.f32 %v6844_v24, %v2753_v42 }
 0x51f   :  { %v5654_v41 = vpack.c.bf16 %v2977_v5, %v2976_v46 }
 0x520   :  { %v6715_v18 = vld [vmem:[#allocation2 + $0x70] sm:$0xff]  }
 0x521   :  { %5795 = vst [vmem:[#allocation2 + $0x78] sm:$0xff] %v5654_v41   ;;  %6359 = vmatprep.mubr.bf16.mxu1 %v6715_v18 }
 0x528   :  { %v6716_v37 = vld [vmem:[#allocation2 + $0x78] sm:$0xff]  }
 0x529   :  { %6360 = vmatmul.mubr.bf16.gmra.mxu1 %v6716_v37 }
 0x578   :  { %v6333_v8 = vpop.f32.mrf.mxu1 }
 0x57a   :  { %v3376_v10 = vpop.f32.mrf.mxu1 }
 0x57c   :  { %v6334_v1 = vpop.f32.mrf.mxu1 }
 0x57d   :  { %v5664_v49 = vpack.c.bf16 %v6334_v1, %v6333_v8 }
 0x57e   :  { %v3379_v9 = vpop.f32.mrf.mxu1 }
 0x57f   :  { %5796 = vst [vmem:[#allocation3 + $0x8] sm:$0xff] %v5664_v49   ;;  %v5659_v12 = vpack.c.bf16 %v3379_v9, %v3376_v10 }
 0x581   :  { %5660 = vst [vmem:[#allocation3] sm:$0xff] %v5659_v12  }
 0x589   :  { %v6337_v59 = vpop.f32.mrf.mxu1 }
 0x58b   :  { %v3392_v14 = vpop.f32.mrf.mxu1 }
 0x58d   :  { %v6338_v54 = vpop.f32.mrf.mxu1 }
 0x58e   :  { %v5674_v56 = vpack.c.bf16 %v6338_v54, %v6337_v59 }
 0x58f   :  { %v3395_v63 = vpop.f32.mrf.mxu1 }
 0x590   :  { %5798 = vst [vmem:[#allocation3 + $0x18] sm:$0xff] %v5674_v56   ;;  %v5669_v33 = vpack.c.bf16 %v3395_v63, %v3392_v14 }
 0x592   :  { %5797 = vst [vmem:[#allocation3 + $0x10] sm:$0xff] %v5669_v33  }
 0x598   :  { %v6341_v60 = vpop.f32.mrf.mxu1 }
 0x59a   :  { %v3408_v43 = vpop.f32.mrf.mxu1 }
 0x59c   :  { %v6342_v11 = vpop.f32.mrf.mxu1 }
 0x59d   :  { %v5684_v19 = vpack.c.bf16 %v6342_v11, %v6341_v60 }
 0x59e   :  { %v3411_v21 = vpop.f32.mrf.mxu1 }
 0x59f   :  { %5800 = vst [vmem:[#allocation3 + $0x28] sm:$0xff] %v5684_v19   ;;  %v5679_v23 = vpack.c.bf16 %v3411_v21, %v3408_v43 }
 0x5a1   :  { %5799 = vst [vmem:[#allocation3 + $0x20] sm:$0xff] %v5679_v23  }
 0x5a9   :  { %v6345_v25 = vpop.f32.mrf.mxu1 }
 0x5ab   :  { %v3424_v13 = vpop.f32.mrf.mxu1 }
 0x5ad   :  { %v6346_v28 = vpop.f32.mrf.mxu1 }
 0x5ae   :  { %v5694_v42 = vpack.c.bf16 %v6346_v28, %v6345_v25 }
 0x5af   :  { %v3427_v40 = vpop.f32.mrf.mxu1 }
 0x5b0   :  { %5802 = vst [vmem:[#allocation3 + $0x38] sm:$0xff] %v5694_v42   ;;  %v5689_v31 = vpack.c.bf16 %v3427_v40, %v3424_v13 }
 0x5b2   :  { %5801 = vst [vmem:[#allocation3 + $0x30] sm:$0xff] %v5689_v31  }
 0x5b8   :  { %v6349_v32 = vpop.f32.mrf.mxu1 }
 0x5ba   :  { %v3440_v4 = vpop.f32.mrf.mxu1 }
 0x5bc   :  { %v6350_v16 = vpop.f32.mrf.mxu1 }
 0x5bd   :  { %v5704_v34 = vpack.c.bf16 %v6350_v16, %v6349_v32 }
 0x5be   :  { %v3443_v35 = vpop.f32.mrf.mxu1 }
 0x5bf   :  { %5804 = vst [vmem:[#allocation3 + $0x48] sm:$0xff] %v5704_v34   ;;  %v5699_v36 = vpack.c.bf16 %v3443_v35, %v3440_v4 }
 0x5c1   :  { %5803 = vst [vmem:[#allocation3 + $0x40] sm:$0xff] %v5699_v36  }
 0x5c9   :  { %v6353_v48 = vpop.f32.mrf.mxu1 }
 0x5cb   :  { %v3456_v44 = vpop.f32.mrf.mxu1 }
 0x5cd   :  { %v6354_v38 = vpop.f32.mrf.mxu1 }
 0x5ce   :  { %v5714_v26 = vpack.c.bf16 %v6354_v38, %v6353_v48 }
 0x5cf   :  { %v3459_v62 = vpop.f32.mrf.mxu1 }
 0x5d0   :  { %5806 = vst [vmem:[#allocation3 + $0x58] sm:$0xff] %v5714_v26   ;;  %v5709_v51 = vpack.c.bf16 %v3459_v62, %v3456_v44 }
 0x5d2   :  { %5805 = vst [vmem:[#allocation3 + $0x50] sm:$0xff] %v5709_v51  }
 0x5d8   :  { %v6357_v61 = vpop.f32.mrf.mxu1 }
 0x5da   :  { %v3472_v15 = vpop.f32.mrf.mxu1 }
 0x5dc   :  { %v6358_v6 = vpop.f32.mrf.mxu1 }
 0x5dd   :  { %v5724_v17 = vpack.c.bf16 %v6358_v6, %v6357_v61 }
 0x5de   :  { %v3475_v30 = vpop.f32.mrf.mxu1 }
 0x5df   :  { %5808 = vst [vmem:[#allocation3 + $0x68] sm:$0xff] %v5724_v17   ;;  %v5719_v45 = vpack.c.bf16 %v3475_v30, %v3472_v15 }
 0x5e1   :  { %5807 = vst [vmem:[#allocation3 + $0x60] sm:$0xff] %v5719_v45  }
 0x5e9   :  { %v6361_v2 = vpop.f32.mrf.mxu1 }
 0x5eb   :  { %v3488_v47 = vpop.f32.mrf.mxu1 }
 0x5ed   :  { %v6362_v20 = vpop.f32.mrf.mxu1 }
 0x5ee   :  { %v5734_v7 = vpack.c.bf16 %v6362_v20, %v6361_v2 }
 0x5ef   :  { %v3491_v53 = vpop.f32.mrf.mxu1 }
 0x5f0   :  { %5810 = vst [vmem:[#allocation3 + $0x78] sm:$0xff] %v5734_v7   ;;  %v5729_v55 = vpack.c.bf16 %v3491_v53, %v3488_v47 }
 0x5f2   :  { %5809 = vst [vmem:[#allocation3 + $0x70] sm:$0xff] %v5729_v55  }
 0x5f3   :  { %7207 = dma.done.wait [#allocation6], 4096 }
 0x5f4   :  { %7208 = vsyncadd [#allocation6], 4294963200  ;;  %v6846_v0 = vld [vmem:[#allocation3 + $0x38] sm:$0xff]   ;;  %v6848_v57 = vld [vmem:[#allocation3 + $0x30] sm:$0xff]   ;;  %v4248_v26 = vlaneseq  ;;  %s7218_s7 = smov [#allocation15]  }
 0x5f5   :  { %v6849_v22 = vld [vmem:[#allocation3 + $0x68] sm:$0xff]   ;;  %v6851_v3 = vld [vmem:[#allocation3 + $0x60] sm:$0xff]   ;;  %v6853_v39 = vld [vmem:[#allocation3 + $0x58] sm:$0xff]   ;;  %s4704_s15 = sshll.u32 %s7218_s7, 4  ;;  %s4705_s15 = int_to_ptr.vmem [resolvable:$true] %s4704_s15 }
 0x5f6   :  { %v6850_v58 = vld [vmem:[#allocation3 + $0x28] sm:$0xff]   ;;  %v6852_v52 = vld [vmem:[#allocation3 + $0x20] sm:$0xff]   ;;  %v6854_v24 = vld [vmem:[#allocation3 + $0x18] sm:$0xff]   ;;  %v7646_v51 = vand.u32 127, %v4248_v26  ;;  %s7177_s16 = scalar_lea.vmem %s4705_s15, 4096  ;;  %p7182_p12 = scmp.lt.s32.totalorder %s4705_s15, %s4705_s15 }
 0x5f7   :  { %v6845_v27 = vld [vmem:[#allocation3 + $0x78] sm:$0xff]   ;;  %v6855_v46 = vld [vmem:[#allocation3 + $0x50] sm:$0xff]   ;;  %v6863_v5 = vld [vmem:[#allocation5 + $0x4] ss:$8 sps:$4 sm:$0xff]   ;;  %p7178_p11 = scmp.ne.s32.totalorder %s4705_s15, %s7177_s16  ;;  %p7183_p13 = scmp.lt.s32.totalorder %s7177_s16, %s7177_s16 }
 0x5f8   :  { %6107 = vmatprep.subr.bf16.mxu1 %v6845_v27  ;;  %v6856_v41 = vld [vmem:[#allocation3 + $0x10] sm:$0xff]   ;;  %4017 = vmatprep.mubr.bf16.mxu1 %v6863_v5  ;;  %v6857_v18 = vld [vmem:[#allocation3 + $0x48] sm:$0xff]   ;;  %v6859_v8 = vld [vmem:[#allocation3 + $0x40] sm:$0xff]   ;;  %vm4250_vm0 = vcmp.lt.s32.totalorder %v7646_v51, 4 }
 0x5f9   :  { %v6847_v29 = vld [vmem:[#allocation3 + $0x70] sm:$0xff]   ;;  %6108 = vmatpush3.bf16.msra.mxu1 %v6846_v0  ;;  %v6858_v37 = vld [vmem:[#allocation3 + $0x8] sm:$0xff]   ;;  %v6860_v10 = vld [vmem:[#allocation3] sm:$0xff]   ;;  %p7184_p0 = por %p7183_p13, %p7182_p12 }
 0x5fa   :  { %6109 = vmatprep.subr.bf16.mxu1 %v6847_v29  ;;  %v6861_v1 = vld [vmem:[#allocation5] ss:$8 sps:$4 sm:$0xff]   ;;  %v6864_v49 = vld [vmem:[#allocation5 + $0x14] ss:$8 sps:$4 sm:$0xff]   ;;  %v6866_v9 = vld [vmem:[#allocation5 + $0x10] ss:$8 sps:$4 sm:$0xff]  }
 0x5fb   :  { %v6867_v12 = vld [vmem:[#allocation5 + $0x24] ss:$8 sps:$4 sm:$0xff]   ;;  %v6869_v59 = vld [vmem:[#allocation5 + $0x20] ss:$8 sps:$4 sm:$0xff]   ;;  %v6870_v14 = vld [vmem:[#allocation5 + $0x34] ss:$8 sps:$4 sm:$0xff]   ;;  %p7185_p1 = pnand %p7184_p0, %p7178_p11 }
 0x5fc   :  { %v6872_v54 = vld [vmem:[#allocation5 + $0x30] ss:$8 sps:$4 sm:$0xff]   ;;  %v6873_v56 = vld [vmem:[#allocation5 + $0x44] ss:$8 sps:$4 sm:$0xff]   ;;  %v6875_v63 = vld [vmem:[#allocation5 + $0x40] ss:$8 sps:$4 sm:$0xff]  }
 0x5fd   :  { %6110 = vmatpush3.bf16.msra.mxu1 %v6848_v57  ;;  %v6876_v33 = vld [vmem:[#allocation5 + $0x54] ss:$8 sps:$4 sm:$0xff]   ;;  %v6878_v60 = vld [vmem:[#allocation5 + $0x50] ss:$8 sps:$4 sm:$0xff]   ;;  %v6879_v43 = vld [vmem:[#allocation5 + $0x64] ss:$8 sps:$4 sm:$0xff]  }
 0x5fe   :  { %6111 = vmatprep.subr.bf16.mxu1 %v6849_v22  ;;  %v6881_v11 = vld [vmem:[#allocation5 + $0x60] ss:$8 sps:$4 sm:$0xff]   ;;  %v6882_v19 = vld [vmem:[#allocation5 + $0x74] ss:$8 sps:$4 sm:$0xff]   ;;  %v6884_v21 = vld [vmem:[#allocation5 + $0x70] ss:$8 sps:$4 sm:$0xff]  }
 0x5ff   :  { %v6885_v23 = vld [vmem:[#allocation5 + $0x84] ss:$8 sps:$4 sm:$0xff]   ;;  %v6887_v25 = vld [vmem:[#allocation5 + $0x80] ss:$8 sps:$4 sm:$0xff]   ;;  %v6888_v13 = vld [vmem:[#allocation5 + $0x94] ss:$8 sps:$4 sm:$0xff]  }
 0x600   :  { %v6890_v28 = vld [vmem:[#allocation5 + $0x90] ss:$8 sps:$4 sm:$0xff]   ;;  %v6891_v42 = vld [vmem:[#allocation5 + $0xa4] ss:$8 sps:$4 sm:$0xff]   ;;  %v6893_v40 = vld [vmem:[#allocation5 + $0xa0] ss:$8 sps:$4 sm:$0xff]  }
 0x601   :  { %6112 = vmatpush3.bf16.msra.mxu1 %v6850_v58  ;;  %v6894_v31 = vld [vmem:[#allocation5 + $0xb4] ss:$8 sps:$4 sm:$0xff]   ;;  %v6896_v32 = vld [vmem:[#allocation5 + $0xb0] ss:$8 sps:$4 sm:$0xff]   ;;  %v6897_v4 = vld [vmem:[#allocation5 + $0xc4] ss:$8 sps:$4 sm:$0xff]  }
 0x602   :  { %6113 = vmatprep.subr.bf16.mxu1 %v6851_v3  ;;  %v6899_v16 = vld [vmem:[#allocation5 + $0xc0] ss:$8 sps:$4 sm:$0xff]   ;;  %v6900_v34 = vld [vmem:[#allocation5 + $0xd4] ss:$8 sps:$4 sm:$0xff]   ;;  %v6902_v35 = vld [vmem:[#allocation5 + $0xd0] ss:$8 sps:$4 sm:$0xff]  }
 0x603   :  { %v6903_v36 = vld [vmem:[#allocation5 + $0xe4] ss:$8 sps:$4 sm:$0xff]   ;;  %v6905_v48 = vld [vmem:[#allocation5 + $0xe0] ss:$8 sps:$4 sm:$0xff]   ;;  %v6906_v44 = vld [vmem:[#allocation5 + $0xf4] ss:$8 sps:$4 sm:$0xff]  }
 0x604   :  { %v6908_v38 = vld [vmem:[#allocation5 + $0xf0] ss:$8 sps:$4 sm:$0xff]  }
 0x605   :  { %6114 = vmatpush3.bf16.msra.mxu1 %v6852_v52 }
 0x606   :  { %6115 = vmatprep.subr.bf16.mxu1 %v6853_v39 }
 0x609   :  { %6116 = vmatpush3.bf16.msra.mxu1 %v6854_v24 }
 0x60a   :  { %6117 = vmatprep.subr.bf16.mxu1 %v6855_v46 }
 0x60d   :  { %6118 = vmatpush3.bf16.msra.mxu1 %v6856_v41 }
 0x60e   :  { %6119 = vmatprep.subr.bf16.mxu1 %v6857_v18 }
 0x611   :  { %6120 = vmatpush3.bf16.msra.mxu1 %v6858_v37 }
 0x612   :  { %6121 = vmatprep.subr.bf16.mxu1 %v6859_v8 }
 0x615   :  { %6122 = vmatpush3.bf16.msra.mxu1 %v6860_v10 }
 0x618   :  { %4018 = vmatmul.mubr.bf16.vlgmr.msra.gmra.mxu1 %v6861_v1 }
 0x619   :  { %4025 = vmatprep.mubr.bf16.mxu1 %v6864_v49 }
 0x620   :  { %4026 = vmatmul.mubr.bf16.gmra.mxu1 %v6866_v9 }
 0x621   :  { %4033 = vmatprep.mubr.bf16.mxu1 %v6867_v12 }
 0x628   :  { %4034 = vmatmul.mubr.bf16.gmra.mxu1 %v6869_v59 }
 0x629   :  { %4041 = vmatprep.mubr.bf16.mxu1 %v6870_v14 }
 0x630   :  { %4042 = vmatmul.mubr.bf16.gmra.mxu1 %v6872_v54 }
 0x631   :  { %4049 = vmatprep.mubr.bf16.mxu1 %v6873_v56 }
 0x638   :  { %4050 = vmatmul.mubr.bf16.gmra.mxu1 %v6875_v63 }
 0x639   :  { %4057 = vmatprep.mubr.bf16.mxu1 %v6876_v33 }
 0x640   :  { %4058 = vmatmul.mubr.bf16.gmra.mxu1 %v6878_v60 }
 0x641   :  { %4065 = vmatprep.mubr.bf16.mxu1 %v6879_v43 }
 0x648   :  { %4066 = vmatmul.mubr.bf16.gmra.mxu1 %v6881_v11 }
 0x649   :  { %4073 = vmatprep.mubr.bf16.mxu1 %v6882_v19 }
 0x650   :  { %4074 = vmatmul.mubr.bf16.gmra.mxu1 %v6884_v21 }
 0x651   :  { %4081 = vmatprep.mubr.bf16.mxu1 %v6885_v23 }
 0x658   :  { %4082 = vmatmul.mubr.bf16.gmra.mxu1 %v6887_v25 }
 0x659   :  { %4089 = vmatprep.mubr.bf16.mxu1 %v6888_v13 }
 0x660   :  { %4090 = vmatmul.mubr.bf16.gmra.mxu1 %v6890_v28 }
 0x661   :  { %4097 = vmatprep.mubr.bf16.mxu1 %v6891_v42 }
 0x668   :  { %4098 = vmatmul.mubr.bf16.gmra.mxu1 %v6893_v40 }
 0x669   :  { %4105 = vmatprep.mubr.bf16.mxu1 %v6894_v31 }
 0x670   :  { %4106 = vmatmul.mubr.bf16.gmra.mxu1 %v6896_v32 }
 0x671   :  { %4113 = vmatprep.mubr.bf16.mxu1 %v6897_v4 }
 0x678   :  { %4114 = vmatmul.mubr.bf16.gmra.mxu1 %v6899_v16 }
 0x679   :  { %4121 = vmatprep.mubr.bf16.mxu1 %v6900_v34 }
 0x680   :  { %4122 = vmatmul.mubr.bf16.gmra.mxu1 %v6902_v35 }
 0x681   :  { %4129 = vmatprep.mubr.bf16.mxu1 %v6903_v36 }
 0x688   :  { %4130 = vmatmul.mubr.bf16.gmra.mxu1 %v6905_v48 }
 0x689   :  { %4137 = vmatprep.mubr.bf16.mxu1 %v6906_v44 }
 0x690   :  { %4138 = vmatmul.mubr.bf16.gmra.mxu1 %v6908_v38 }
 0x6d8   :  { %v6123_v62 = vpop.f32.mrf.mxu1 }
 0x6da   :  { %v6124_v61 = vpop.f32.mrf.mxu1 }
 0x6db   :  { %v6125_v15 = vadd.f32 %v6124_v61, %v6123_v62 }
 0x6dc   :  { %v6126_v6 = vpop.f32.mrf.mxu1 }
 0x6dd   :  { %v4216_v17 = vadd.f32 %v6125_v15, %v7482_v50 }
 0x6de   :  { %v6127_v30 = vpop.f32.mrf.mxu1 }
 0x6df   :  { %v6128_v45 = vadd.f32 %v6127_v30, %v6126_v6  ;;  %v7652_v2 = vsel %vm4250_vm0, %v4216_v17, -inf }
 0x6e0   :  { %v6129_v47 = vpop.f32.mrf.mxu1  ;;  %4283 = vmax.xlane.f32.xlu0 %v7652_v2 }
 0x6e1   :  { %v4217_v20 = vadd.f32 %v6128_v45, %v7482_v50 }
 0x6e2   :  { %v6130_v7 = vpop.f32.mrf.mxu1 }
 0x6e3   :  { %v6131_v53 = vadd.f32 %v6130_v7, %v6129_v47  ;;  %v7658_v55 = vsel %vm4250_vm0, %v4217_v20, -inf }
 0x6e4   :  { %v6132_v27 = vpop.f32.mrf.mxu1  ;;  %4285 = vmax.xlane.f32.xlu0 %v7658_v55 }
 0x6e5   :  { %v4218_v0 = vadd.f32 %v6131_v53, %v7482_v50 }
 0x6e6   :  { %v6133_v29 = vpop.f32.mrf.mxu1 }
 0x6e7   :  { %v6134_v57 = vadd.f32 %v6133_v29, %v6132_v27  ;;  %v7664_v22 = vsel %vm4250_vm0, %v4218_v0, -inf }
 0x6e8   :  { %v6135_v58 = vpop.f32.mrf.mxu1  ;;  %4287 = vmax.xlane.f32.xlu1 %v7664_v22 }
 0x6e9   :  { %v4219_v3 = vadd.f32 %v6134_v57, %v7482_v50 }
 0x6ea   :  { %v6136_v52 = vpop.f32.mrf.mxu1 }
 0x6eb   :  { %v6137_v39 = vadd.f32 %v6136_v52, %v6135_v58  ;;  %v7670_v24 = vsel %vm4250_vm0, %v4219_v3, -inf }
 0x6ec   :  { %v6138_v46 = vpop.f32.mrf.mxu1  ;;  %4289 = vmax.xlane.f32.xlu1 %v7670_v24 }
 0x6ed   :  { %v4220_v5 = vadd.f32 %v6137_v39, %v7482_v50 }
 0x6ee   :  { %v6139_v41 = vpop.f32.mrf.mxu1 }
 0x6ef   :  { %v6140_v18 = vadd.f32 %v6139_v41, %v6138_v46  ;;  %v7676_v37 = vsel %vm4250_vm0, %v4220_v5, -inf }
 0x6f0   :  { %v6141_v8 = vpop.f32.mrf.mxu1  ;;  %4291 = vmax.xlane.f32.xlu0 %v7676_v37 }
 0x6f1   :  { %v4221_v10 = vadd.f32 %v6140_v18, %v7482_v50 }
 0x6f2   :  { %v6142_v1 = vpop.f32.mrf.mxu1 }
 0x6f3   :  { %v6143_v49 = vadd.f32 %v6142_v1, %v6141_v8  ;;  %v7682_v9 = vsel %vm4250_vm0, %v4221_v10, -inf }
 0x6f4   :  { %v6144_v12 = vpop.f32.mrf.mxu1  ;;  %4293 = vmax.xlane.f32.xlu1 %v7682_v9 }
 0x6f5   :  { %v4222_v59 = vadd.f32 %v6143_v49, %v7482_v50 }
 0x6f6   :  { %v6145_v14 = vpop.f32.mrf.mxu1 }
 0x6f7   :  { %v6146_v54 = vadd.f32 %v6145_v14, %v6144_v12  ;;  %v7688_v56 = vsel %vm4250_vm0, %v4222_v59, -inf }
 0x6f8   :  { %v6147_v63 = vpop.f32.mrf.mxu1  ;;  %4295 = vmax.xlane.f32.xlu0 %v7688_v56 }
 0x6f9   :  { %v4223_v33 = vadd.f32 %v6146_v54, %v7482_v50 }
 0x6fa   :  { %v6148_v60 = vpop.f32.mrf.mxu1 }
 0x6fb   :  { %v6149_v43 = vadd.f32 %v6148_v60, %v6147_v63  ;;  %v7694_v11 = vsel %vm4250_vm0, %v4223_v33, -inf }
 0x6fc   :  { %v6150_v19 = vpop.f32.mrf.mxu1  ;;  %4297 = vmax.xlane.f32.xlu1 %v7694_v11 }
 0x6fd   :  { %v4224_v21 = vadd.f32 %v6149_v43, %v7482_v50 }
 0x6fe   :  { %v6151_v23 = vpop.f32.mrf.mxu1 }
 0x6ff   :  { %v6152_v25 = vadd.f32 %v6151_v23, %v6150_v19  ;;  %v7700_v13 = vsel %vm4250_vm0, %v4224_v21, -inf }
 0x700   :  { %v6153_v28 = vpop.f32.mrf.mxu1  ;;  %4299 = vmax.xlane.f32.xlu0 %v7700_v13 }
 0x701   :  { %v4225_v42 = vadd.f32 %v6152_v25, %v7482_v50 }
 0x702   :  { %v6154_v40 = vpop.f32.mrf.mxu1 }
 0x703   :  { %v6155_v31 = vadd.f32 %v6154_v40, %v6153_v28  ;;  %v7706_v32 = vsel %vm4250_vm0, %v4225_v42, -inf }
 0x704   :  { %v6156_v4 = vpop.f32.mrf.mxu1  ;;  %4301 = vmax.xlane.f32.xlu1 %v7706_v32 }
 0x705   :  { %v4226_v16 = vadd.f32 %v6155_v31, %v7482_v50 }
 0x706   :  { %v6157_v34 = vpop.f32.mrf.mxu1 }
 0x707   :  { %v6158_v35 = vadd.f32 %v6157_v34, %v6156_v4  ;;  %v7712_v36 = vsel %vm4250_vm0, %v4226_v16, -inf }
 0x708   :  { %v6159_v48 = vpop.f32.mrf.mxu1  ;;  %4303 = vmax.xlane.f32.xlu0 %v7712_v36 }
 0x709   :  { %v4227_v44 = vadd.f32 %v6158_v35, %v7482_v50 }
 0x70a   :  { %v6160_v38 = vpop.f32.mrf.mxu1 }
 0x70b   :  { %v6161_v26 = vadd.f32 %v6160_v38, %v6159_v48  ;;  %v7718_v62 = vsel %vm4250_vm0, %v4227_v44, -inf }
 0x70c   :  { %v6162_v61 = vpop.f32.mrf.mxu1  ;;  %4305 = vmax.xlane.f32.xlu1 %v7718_v62 }
 0x70d   :  { %v4228_v15 = vadd.f32 %v6161_v26, %v7482_v50 }
 0x70e   :  { %v6163_v6 = vpop.f32.mrf.mxu1 }
 0x70f   :  { %v6164_v17 = vadd.f32 %v6163_v6, %v6162_v61  ;;  %v7724_v30 = vsel %vm4250_vm0, %v4228_v15, -inf }
 0x710   :  { %v6165_v45 = vpop.f32.mrf.mxu1  ;;  %4307 = vmax.xlane.f32.xlu0 %v7724_v30 }
 0x711   :  { %v4229_v47 = vadd.f32 %v6164_v17, %v7482_v50 }
 0x712   :  { %v6166_v20 = vpop.f32.mrf.mxu1 }
 0x713   :  { %v6167_v7 = vadd.f32 %v6166_v20, %v6165_v45  ;;  %v7730_v53 = vsel %vm4250_vm0, %v4229_v47, -inf }
 0x714   :  { %v6168_v27 = vpop.f32.mrf.mxu1  ;;  %4309 = vmax.xlane.f32.xlu1 %v7730_v53 }
 0x715   :  { %v4230_v0 = vadd.f32 %v6167_v7, %v7482_v50 }
 0x716   :  { %v6169_v29 = vpop.f32.mrf.mxu1 }
 0x717   :  { %v6170_v57 = vadd.f32 %v6169_v29, %v6168_v27  ;;  %v7736_v58 = vsel %vm4250_vm0, %v4230_v0, -inf }
 0x718   :  { %v6171_v3 = vpop.f32.mrf.mxu1  ;;  %4311 = vmax.xlane.f32.xlu0 %v7736_v58 }
 0x719   :  { %v4231_v52 = vadd.f32 %v6170_v57, %v7482_v50 }
 0x71a   :  { %v6172_v39 = vpop.f32.mrf.mxu1 }
 0x71b   :  { %v6173_v46 = vadd.f32 %v6172_v39, %v6171_v3  ;;  %v7742_v5 = vsel %vm4250_vm0, %v4231_v52, -inf }
 0x71c   :  { %v6174_v41 = vpop.f32.mrf.mxu1  ;;  %4313 = vmax.xlane.f32.xlu1 %v7742_v5 }
 0x71d   :  { %v4232_v18 = vadd.f32 %v6173_v46, %v7482_v50 }
 0x71e   :  { %v6175_v8 = vpop.f32.mrf.mxu1 }
 0x71f   :  { %v6176_v10 = vadd.f32 %v6175_v8, %v6174_v41  ;;  %v7748_v1 = vsel %vm4250_vm0, %v4232_v18, -inf }
 0x720   :  { %v6177_v49 = vpop.f32.mrf.mxu1  ;;  %4315 = vmax.xlane.f32.xlu0 %v7748_v1 }
 0x721   :  { %v4233_v12 = vadd.f32 %v6176_v10, %v7482_v50 }
 0x722   :  { %v6178_v59 = vpop.f32.mrf.mxu1 }
 0x723   :  { %v6179_v14 = vadd.f32 %v6178_v59, %v6177_v49  ;;  %v7754_v54 = vsel %vm4250_vm0, %v4233_v12, -inf }
 0x724   :  { %v6180_v63 = vpop.f32.mrf.mxu1  ;;  %4317 = vmax.xlane.f32.xlu1 %v7754_v54 }
 0x725   :  { %v4234_v33 = vadd.f32 %v6179_v14, %v7482_v50 }
 0x726   :  { %v6181_v60 = vpop.f32.mrf.mxu1 }
 0x727   :  { %v6182_v43 = vadd.f32 %v6181_v60, %v6180_v63  ;;  %v7760_v19 = vsel %vm4250_vm0, %v4234_v33, -inf }
 0x728   :  { %v6183_v21 = vpop.f32.mrf.mxu1  ;;  %4319 = vmax.xlane.f32.xlu0 %v7760_v19 }
 0x729   :  { %v4235_v23 = vadd.f32 %v6182_v43, %v7482_v50 }
 0x72a   :  { %v6184_v25 = vpop.f32.mrf.mxu1 }
 0x72b   :  { %v6185_v28 = vadd.f32 %v6184_v25, %v6183_v21  ;;  %v7766_v42 = vsel %vm4250_vm0, %v4235_v23, -inf }
 0x72c   :  { %v6186_v40 = vpop.f32.mrf.mxu1  ;;  %4321 = vmax.xlane.f32.xlu1 %v7766_v42 }
 0x72d   :  { %v4236_v31 = vadd.f32 %v6185_v28, %v7482_v50 }
 0x72e   :  { %v6187_v4 = vpop.f32.mrf.mxu1 }
 0x72f   :  { %v6188_v16 = vadd.f32 %v6187_v4, %v6186_v40  ;;  %v7772_v34 = vsel %vm4250_vm0, %v4236_v31, -inf }
 0x730   :  { %v6189_v35 = vpop.f32.mrf.mxu1  ;;  %4323 = vmax.xlane.f32.xlu0 %v7772_v34 }
 0x731   :  { %v4237_v48 = vadd.f32 %v6188_v16, %v7482_v50 }
 0x732   :  { %v6190_v44 = vpop.f32.mrf.mxu1 }
 0x733   :  { %v6191_v38 = vadd.f32 %v6190_v44, %v6189_v35  ;;  %v7778_v26 = vsel %vm4250_vm0, %v4237_v48, -inf }
 0x734   :  { %v6192_v61 = vpop.f32.mrf.mxu1  ;;  %4325 = vmax.xlane.f32.xlu1 %v7778_v26 }
 0x735   :  { %v4238_v15 = vadd.f32 %v6191_v38, %v7482_v50 }
 0x736   :  { %v6193_v6 = vpop.f32.mrf.mxu1 }
 0x737   :  { %v6194_v17 = vadd.f32 %v6193_v6, %v6192_v61  ;;  %v7784_v45 = vsel %vm4250_vm0, %v4238_v15, -inf }
 0x738   :  { %v6195_v47 = vpop.f32.mrf.mxu1  ;;  %4327 = vmax.xlane.f32.xlu0 %v7784_v45 }
 0x739   :  { %v4239_v20 = vadd.f32 %v6194_v17, %v7482_v50 }
 0x73a   :  { %v6196_v7 = vpop.f32.mrf.mxu1 }
 0x73b   :  { %v6197_v27 = vadd.f32 %v6196_v7, %v6195_v47  ;;  %v7790_v0 = vsel %vm4250_vm0, %v4239_v20, -inf }
 0x73c   :  { %v6198_v29 = vpop.f32.mrf.mxu1  ;;  %4329 = vmax.xlane.f32.xlu1 %v7790_v0 }
 0x73d   :  { %v4240_v57 = vadd.f32 %v6197_v27, %v7482_v50 }
 0x73e   :  { %v6199_v3 = vpop.f32.mrf.mxu1 }
 0x73f   :  { %v6200_v52 = vadd.f32 %v6199_v3, %v6198_v29  ;;  %v7796_v39 = vsel %vm4250_vm0, %v4240_v57, -inf }
 0x740   :  { %v6201_v46 = vpop.f32.mrf.mxu1  ;;  %4331 = vmax.xlane.f32.xlu0 %v7796_v39 }
 0x741   :  { %v4241_v41 = vadd.f32 %v6200_v52, %v7482_v50 }
 0x742   :  { %v6202_v18 = vpop.f32.mrf.mxu1 }
 0x743   :  { %v6203_v8 = vadd.f32 %v6202_v18, %v6201_v46  ;;  %v7802_v10 = vsel %vm4250_vm0, %v4241_v41, -inf }
 0x744   :  { %v6204_v49 = vpop.f32.mrf.mxu1  ;;  %4333 = vmax.xlane.f32.xlu1 %v7802_v10 }
 0x745   :  { %v4242_v12 = vadd.f32 %v6203_v8, %v7482_v50 }
 0x746   :  { %v6205_v59 = vpop.f32.mrf.mxu1 }
 0x747   :  { %v6206_v14 = vadd.f32 %v6205_v59, %v6204_v49  ;;  %v7808_v63 = vsel %vm4250_vm0, %v4242_v12, -inf }
 0x748   :  { %v6207_v33 = vpop.f32.mrf.mxu1  ;;  %4335 = vmax.xlane.f32.xlu0 %v7808_v63 }
 0x749   :  { %v4243_v60 = vadd.f32 %v6206_v14, %v7482_v50 }
 0x74a   :  { %v6208_v43 = vpop.f32.mrf.mxu1 }
 0x74b   :  { %v6209_v21 = vadd.f32 %v6208_v43, %v6207_v33  ;;  %v7814_v23 = vsel %vm4250_vm0, %v4243_v60, -inf }
 0x74c   :  { %v6210_v25 = vpop.f32.mrf.mxu1  ;;  %4337 = vmax.xlane.f32.xlu1 %v7814_v23 }
 0x74d   :  { %v4244_v28 = vadd.f32 %v6209_v21, %v7482_v50 }
 0x74e   :  { %v6211_v40 = vpop.f32.mrf.mxu1 }
 0x74f   :  { %v6212_v31 = vadd.f32 %v6211_v40, %v6210_v25  ;;  %v7820_v4 = vsel %vm4250_vm0, %v4244_v28, -inf }
 0x750   :  { %v6213_v16 = vpop.f32.mrf.mxu1  ;;  %4339 = vmax.xlane.f32.xlu0 %v7820_v4 }
 0x751   :  { %v4245_v35 = vadd.f32 %v6212_v31, %v7482_v50 }
 0x752   :  { %v6214_v48 = vpop.f32.mrf.mxu1 }
 0x753   :  { %v6215_v44 = vadd.f32 %v6214_v48, %v6213_v16  ;;  %v7826_v38 = vsel %vm4250_vm0, %v4245_v35, -inf }
 0x754   :  { %v6216_v61 = vpop.f32.mrf.mxu1  ;;  %4341 = vmax.xlane.f32.xlu1 %v7826_v38 }
 0x755   :  { %v4246_v15 = vadd.f32 %v6215_v44, %v7482_v50 }
 0x756   :  { %v6217_v6 = vpop.f32.mrf.mxu1 }
 0x757   :  { %v6218_v17 = vadd.f32 %v6217_v6, %v6216_v61  ;;  %v7832_v47 = vsel %vm4250_vm0, %v4246_v15, -inf }
 0x758   :  { %4343 = vmax.xlane.f32.xlu0 %v7832_v47 }
 0x759   :  { %v4247_v20 = vadd.f32 %v6218_v17, %v7482_v50 }
 0x75b   :  { %v7838_v7 = vsel %vm4250_vm0, %v4247_v20, -inf }
 0x75c   :  { %4345 = vmax.xlane.f32.xlu1 %v7838_v7 }
 0x769   :  { %v4284_v27 = vpop.xlane.xlu0 %4283 }
 0x76a   :  { %v7842_v29 = vsub.f32 %v7652_v2, %v4284_v27 }
 0x76c   :  { %v4379_v57 = vmul.f32 1.442695, %v7842_v29 }
 0x76d   :  { %v4286_v3 = vpop.xlane.xlu0 %4285 }
 0x76e   :  { %6909 = vpow2.f32 %v4379_v57  ;;  %v7846_v52 = vsub.f32 %v7658_v55, %v4286_v3 }
 0x770   :  { %v4381_v46 = vmul.f32 1.442695, %v7846_v52 }
 0x771   :  { %v4288_v50 = vpop.xlane.xlu1 %4287 }
 0x772   :  { %6911 = vpow2.f32 %v4381_v46  ;;  %v7850_v41 = vsub.f32 %v7664_v22, %v4288_v50 }
 0x774   :  { %v4383_v18 = vmul.f32 1.442695, %v7850_v41 }
 0x775   :  { %v4290_v8 = vpop.xlane.xlu1 %4289 }
 0x776   :  { %6913 = vpow2.f32 %v4383_v18  ;;  %v7854_v2 = vsub.f32 %v7670_v24, %v4290_v8 }
 0x778   :  { %v4385_v49 = vmul.f32 1.442695, %v7854_v2 }
 0x779   :  { %v4292_v12 = vpop.xlane.xlu0 %4291 }
 0x77a   :  { %6915 = vpow2.f32 %v4385_v49  ;;  %v7858_v55 = vsub.f32 %v7676_v37, %v4292_v12 }
 0x77b   :  { %v6910_v59 = vpop.eup %6909 }
 0x77c   :  { %v4387_v14 = vmul.f32 1.442695, %v7858_v55  ;;  %v4443_v22 = vsel %vm4250_vm0, %v6910_v59, 0.0 }
 0x77d   :  { %v4294_v33 = vpop.xlane.xlu1 %4293  ;;  %4475 = vadd.xlane.f32.xlu0 %v4443_v22 }
 0x77e   :  { %6917 = vpow2.f32 %v4387_v14  ;;  %v7864_v60 = vsub.f32 %v7682_v9, %v4294_v33 }
 0x77f   :  { %v6912_v24 = vpop.eup %6911 }
 0x780   :  { %v4389_v43 = vmul.f32 1.442695, %v7864_v60  ;;  %v4444_v21 = vsel %vm4250_vm0, %v6912_v24, 0.0 }
 0x781   :  { %4477 = vadd.xlane.f32.xlu1 %v4444_v21  ;;  %v4296_v37 = vpop.xlane.xlu0 %4295 }
 0x782   :  { %6919 = vpow2.f32 %v4389_v43  ;;  %v7870_v25 = vsub.f32 %v7688_v56, %v4296_v37 }
 0x783   :  { %v6914_v28 = vpop.eup %6913 }
 0x784   :  { %v4391_v40 = vmul.f32 1.442695, %v7870_v25  ;;  %v4445_v31 = vsel %vm4250_vm0, %v6914_v28, 0.0 }
 0x785   :  { %v4298_v9 = vpop.xlane.xlu1 %4297  ;;  %4479 = vadd.xlane.f32.xlu0 %v4445_v31 }
 0x786   :  { %6921 = vpow2.f32 %v4391_v40  ;;  %v7876_v16 = vsub.f32 %v7694_v11, %v4298_v9 }
 0x787   :  { %v6916_v35 = vpop.eup %6915 }
 0x788   :  { %v4393_v48 = vmul.f32 1.442695, %v7876_v16  ;;  %v4446_v44 = vsel %vm4250_vm0, %v6916_v35, 0.0 }
 0x789   :  { %4481 = vadd.xlane.f32.xlu1 %v4446_v44  ;;  %v4300_v56 = vpop.xlane.xlu0 %4299 }
 0x78a   :  { %6923 = vpow2.f32 %v4393_v48  ;;  %v7882_v61 = vsub.f32 %v7700_v13, %v4300_v56 }
 0x78b   :  { %v6918_v15 = vpop.eup %6917 }
 0x78c   :  { %v4395_v6 = vmul.f32 1.442695, %v7882_v61  ;;  %v4447_v17 = vsel %vm4250_vm0, %v6918_v15, 0.0 }
 0x78d   :  { %v4302_v11 = vpop.xlane.xlu1 %4301  ;;  %4483 = vadd.xlane.f32.xlu0 %v4447_v17 }
 0x78e   :  { %6925 = vpow2.f32 %v4395_v6  ;;  %v7888_v20 = vsub.f32 %v7706_v32, %v4302_v11 }
 0x78f   :  { %v6920_v27 = vpop.eup %6919 }
 0x790   :  { %v4397_v57 = vmul.f32 1.442695, %v7888_v20  ;;  %v4448_v3 = vsel %vm4250_vm0, %v6920_v27, 0.0 }
 0x791   :  { %4485 = vadd.xlane.f32.xlu1 %v4448_v3  ;;  %v4304_v13 = vpop.xlane.xlu0 %4303 }
 0x792   :  { %6927 = vpow2.f32 %v4397_v57  ;;  %v7894_v46 = vsub.f32 %v7712_v36, %v4304_v13 }
 0x793   :  { %v6922_v50 = vpop.eup %6921 }
 0x794   :  { %v4399_v18 = vmul.f32 1.442695, %v7894_v46  ;;  %v4449_v8 = vsel %vm4250_vm0, %v6922_v50, 0.0 }
 0x795   :  { %v4306_v32 = vpop.xlane.xlu1 %4305  ;;  %4487 = vadd.xlane.f32.xlu0 %v4449_v8 }
 0x796   :  { %6929 = vpow2.f32 %v4399_v18  ;;  %v7900_v49 = vsub.f32 %v7718_v62, %v4306_v32 }
 0x797   :  { %v6924_v12 = vpop.eup %6923 }
 0x798   :  { %v4401_v59 = vmul.f32 1.442695, %v7900_v49  ;;  %v4450_v14 = vsel %vm4250_vm0, %v6924_v12, 0.0 }
 0x799   :  { %4489 = vadd.xlane.f32.xlu1 %v4450_v14  ;;  %v4308_v36 = vpop.xlane.xlu0 %4307 }
 0x79a   :  { %6931 = vpow2.f32 %v4401_v59  ;;  %v7906_v22 = vsub.f32 %v7724_v30, %v4308_v36 }
 0x79b   :  { %v6926_v33 = vpop.eup %6925 }
 0x79c   :  { %v4403_v24 = vmul.f32 1.442695, %v7906_v22  ;;  %v4451_v43 = vsel %vm4250_vm0, %v6926_v33, 0.0 }
 0x79d   :  { %v4310_v62 = vpop.xlane.xlu1 %4309  ;;  %4491 = vadd.xlane.f32.xlu0 %v4451_v43 }
 0x79e   :  { %6933 = vpow2.f32 %v4403_v24  ;;  %v7912_v21 = vsub.f32 %v7730_v53, %v4310_v62 }
 0x79f   :  { %v6928_v37 = vpop.eup %6927 }
 0x7a0   :  { %v4405_v28 = vmul.f32 1.442695, %v7912_v21  ;;  %v4452_v40 = vsel %vm4250_vm0, %v6928_v37, 0.0 }
 0x7a1   :  { %4493 = vadd.xlane.f32.xlu1 %v4452_v40  ;;  %v4312_v30 = vpop.xlane.xlu0 %4311 }
 0x7a2   :  { %6935 = vpow2.f32 %v4405_v28  ;;  %v7918_v31 = vsub.f32 %v7736_v58, %v4312_v30 }
 0x7a3   :  { %v6930_v9 = vpop.eup %6929 }
 0x7a4   :  { %v4407_v35 = vmul.f32 1.442695, %v7918_v31  ;;  %v4453_v48 = vsel %vm4250_vm0, %v6930_v9, 0.0 }
 0x7a5   :  { %v4314_v53 = vpop.xlane.xlu1 %4313  ;;  %4495 = vadd.xlane.f32.xlu0 %v4453_v48 }
 0x7a6   :  { %6937 = vpow2.f32 %v4407_v35  ;;  %v7924_v44 = vsub.f32 %v7742_v5, %v4314_v53 }
 0x7a7   :  { %v6932_v56 = vpop.eup %6931 }
 0x7a8   :  { %v4409_v15 = vmul.f32 1.442695, %v7924_v44  ;;  %v4454_v6 = vsel %vm4250_vm0, %v6932_v56, 0.0 }
 0x7a9   :  { %4497 = vadd.xlane.f32.xlu1 %v4454_v6  ;;  %v4316_v58 = vpop.xlane.xlu0 %4315 }
 0x7aa   :  { %6939 = vpow2.f32 %v4409_v15  ;;  %v7930_v17 = vsub.f32 %v7748_v1, %v4316_v58 }
 0x7ab   :  { %v6934_v11 = vpop.eup %6933 }
 0x7ac   :  { %v4411_v27 = vmul.f32 1.442695, %v7930_v17  ;;  %v4455_v57 = vsel %vm4250_vm0, %v6934_v11, 0.0 }
 0x7ad   :  { %v4318_v5 = vpop.xlane.xlu1 %4317  ;;  %4499 = vadd.xlane.f32.xlu0 %v4455_v57 }
 0x7ae   :  { %6941 = vpow2.f32 %v4411_v27  ;;  %v7936_v3 = vsub.f32 %v7754_v54, %v4318_v5 }
 0x7af   :  { %v6936_v13 = vpop.eup %6935 }
 0x7b0   :  { %v4413_v50 = vmul.f32 1.442695, %v7936_v3  ;;  %v4456_v18 = vsel %vm4250_vm0, %v6936_v13, 0.0 }
 0x7b1   :  { %4501 = vadd.xlane.f32.xlu1 %v4456_v18  ;;  %v4320_v1 = vpop.xlane.xlu0 %4319 }
 0x7b2   :  { %6943 = vpow2.f32 %v4413_v50  ;;  %v7942_v8 = vsub.f32 %v7760_v19, %v4320_v1 }
 0x7b3   :  { %v6938_v32 = vpop.eup %6937 }
 0x7b4   :  { %v4415_v12 = vmul.f32 1.442695, %v7942_v8  ;;  %v4457_v59 = vsel %vm4250_vm0, %v6938_v32, 0.0 }
 0x7b5   :  { %v4322_v54 = vpop.xlane.xlu1 %4321  ;;  %4503 = vadd.xlane.f32.xlu0 %v4457_v59 }
 0x7b6   :  { %6945 = vpow2.f32 %v4415_v12  ;;  %v7948_v14 = vsub.f32 %v7766_v42, %v4322_v54 }
 0x7b7   :  { %v6940_v36 = vpop.eup %6939 }
 0x7b8   :  { %v4417_v33 = vmul.f32 1.442695, %v7948_v14  ;;  %v4458_v24 = vsel %vm4250_vm0, %v6940_v36, 0.0 }
 0x7b9   :  { %4505 = vadd.xlane.f32.xlu1 %v4458_v24  ;;  %v4324_v19 = vpop.xlane.xlu0 %4323 }
 0x7ba   :  { %6947 = vpow2.f32 %v4417_v33  ;;  %v7954_v43 = vsub.f32 %v7772_v34, %v4324_v19 }
 0x7bb   :  { %v6942_v62 = vpop.eup %6941 }
 0x7bc   :  { %v4419_v37 = vmul.f32 1.442695, %v7954_v43  ;;  %v4459_v28 = vsel %vm4250_vm0, %v6942_v62, 0.0 }
 0x7bd   :  { %v4326_v42 = vpop.xlane.xlu1 %4325  ;;  %4507 = vadd.xlane.f32.xlu0 %v4459_v28 }
 0x7be   :  { %6949 = vpow2.f32 %v4419_v37  ;;  %v7960_v40 = vsub.f32 %v7778_v26, %v4326_v42 }
 0x7bf   :  { %v6944_v30 = vpop.eup %6943 }
 0x7c0   :  { %v4421_v9 = vmul.f32 1.442695, %v7960_v40  ;;  %v4460_v35 = vsel %vm4250_vm0, %v6944_v30, 0.0 }
 0x7c1   :  { %4509 = vadd.xlane.f32.xlu1 %v4460_v35  ;;  %v4328_v34 = vpop.xlane.xlu0 %4327 }
 0x7c2   :  { %6951 = vpow2.f32 %v4421_v9  ;;  %v7966_v48 = vsub.f32 %v7784_v45, %v4328_v34 }
 0x7c3   :  { %v6946_v53 = vpop.eup %6945 }
 0x7c4   :  { %v4423_v56 = vmul.f32 1.442695, %v7966_v48  ;;  %v4461_v15 = vsel %vm4250_vm0, %v6946_v53, 0.0 }
 0x7c5   :  { %v4330_v26 = vpop.xlane.xlu1 %4329  ;;  %4511 = vadd.xlane.f32.xlu0 %v4461_v15 }
 0x7c6   :  { %6953 = vpow2.f32 %v4423_v56  ;;  %v7972_v6 = vsub.f32 %v7790_v0, %v4330_v26 }
 0x7c7   :  { %v6948_v58 = vpop.eup %6947 }
 0x7c8   :  { %v4425_v11 = vmul.f32 1.442695, %v7972_v6  ;;  %v4462_v27 = vsel %vm4250_vm0, %v6948_v58, 0.0 }
 0x7c9   :  { %4513 = vadd.xlane.f32.xlu1 %v4462_v27  ;;  %v4332_v45 = vpop.xlane.xlu0 %4331 }
 0x7ca   :  { %6955 = vpow2.f32 %v4425_v11  ;;  %v7978_v57 = vsub.f32 %v7796_v39, %v4332_v45 }
 0x7cb   :  { %v6950_v5 = vpop.eup %6949 }
 0x7cc   :  { %v4427_v13 = vmul.f32 1.442695, %v7978_v57  ;;  %v4463_v50 = vsel %vm4250_vm0, %v6950_v5, 0.0 }
 0x7cd   :  { %v4334_v0 = vpop.xlane.xlu1 %4333  ;;  %4515 = vadd.xlane.f32.xlu0 %v4463_v50 }
 0x7ce   :  { %6957 = vpow2.f32 %v4427_v13  ;;  %v7984_v18 = vsub.f32 %v7802_v10, %v4334_v0 }
 0x7cf   :  { %v6952_v1 = vpop.eup %6951 }
 0x7d0   :  { %v4429_v32 = vmul.f32 1.442695, %v7984_v18  ;;  %v4464_v12 = vsel %vm4250_vm0, %v6952_v1, 0.0 }
 0x7d1   :  { %4517 = vadd.xlane.f32.xlu1 %v4464_v12  ;;  %v4336_v39 = vpop.xlane.xlu0 %4335 }
 0x7d2   :  { %6959 = vpow2.f32 %v4429_v32  ;;  %v7990_v59 = vsub.f32 %v7808_v63, %v4336_v39 }
 0x7d3   :  { %v6954_v54 = vpop.eup %6953 }
 0x7d4   :  { %v4431_v36 = vmul.f32 1.442695, %v7990_v59  ;;  %v4465_v33 = vsel %vm4250_vm0, %v6954_v54, 0.0 }
 0x7d5   :  { %v4338_v10 = vpop.xlane.xlu1 %4337  ;;  %4519 = vadd.xlane.f32.xlu0 %v4465_v33 }
 0x7d6   :  { %6961 = vpow2.f32 %v4431_v36  ;;  %v7996_v24 = vsub.f32 %v7814_v23, %v4338_v10 }
 0x7d7   :  { %v6956_v19 = vpop.eup %6955 }
 0x7d8   :  { %v4433_v62 = vmul.f32 1.442695, %v7996_v24  ;;  %v4466_v37 = vsel %vm4250_vm0, %v6956_v19, 0.0 }
 0x7d9   :  { %4521 = vadd.xlane.f32.xlu1 %v4466_v37  ;;  %v4340_v63 = vpop.xlane.xlu0 %4339 }
 0x7da   :  { %6963 = vpow2.f32 %v4433_v62  ;;  %v8002_v28 = vsub.f32 %v7820_v4, %v4340_v63 }
 0x7db   :  { %v6958_v42 = vpop.eup %6957 }
 0x7dc   :  { %v4435_v30 = vmul.f32 1.442695, %v8002_v28  ;;  %v4467_v9 = vsel %vm4250_vm0, %v6958_v42, 0.0 }
 0x7dd   :  { %v4342_v23 = vpop.xlane.xlu1 %4341  ;;  %4523 = vadd.xlane.f32.xlu0 %v4467_v9 }
 0x7de   :  { %6965 = vpow2.f32 %v4435_v30  ;;  %v8008_v35 = vsub.f32 %v7826_v38, %v4342_v23 }
 0x7df   :  { %v6960_v34 = vpop.eup %6959 }
 0x7e0   :  { %v4437_v53 = vmul.f32 1.442695, %v8008_v35  ;;  %v4468_v56 = vsel %vm4250_vm0, %v6960_v34, 0.0 }
 0x7e1   :  { %4525 = vadd.xlane.f32.xlu1 %v4468_v56  ;;  %v4344_v4 = vpop.xlane.xlu0 %4343 }
 0x7e2   :  { %6967 = vpow2.f32 %v4437_v53  ;;  %v8014_v15 = vsub.f32 %v7832_v47, %v4344_v4 }
 0x7e3   :  { %v6962_v26 = vpop.eup %6961 }
 0x7e4   :  { %v4439_v58 = vmul.f32 1.442695, %v8014_v15  ;;  %v4469_v11 = vsel %vm4250_vm0, %v6962_v26, 0.0 }
 0x7e5   :  { %v4346_v38 = vpop.xlane.xlu1 %4345  ;;  %4527 = vadd.xlane.f32.xlu0 %v4469_v11 }
 0x7e6   :  { %6969 = vpow2.f32 %v4439_v58  ;;  %v8020_v27 = vsub.f32 %v7838_v7, %v4346_v38 }
 0x7e7   :  { %v6964_v45 = vpop.eup %6963 }
 0x7e8   :  { %v4441_v5 = vmul.f32 1.442695, %v8020_v27  ;;  %v4470_v13 = vsel %vm4250_vm0, %v6964_v45, 0.0 }
 0x7e9   :  { %4529 = vadd.xlane.f32.xlu1 %v4470_v13 }
 0x7ea   :  { %6971 = vpow2.f32 %v4441_v5 }
 0x7eb   :  { %v6966_v47 = vpop.eup %6965 }
 0x7ec   :  { %v4471_v50 = vsel %vm4250_vm0, %v6966_v47, 0.0 }
 0x7ed   :  { %4531 = vadd.xlane.f32.xlu0 %v4471_v50 }
 0x7ef   :  { %v6968_v0 = vpop.eup %6967 }
 0x7f0   :  { %v4472_v1 = vsel %vm4250_vm0, %v6968_v0, 0.0 }
 0x7f1   :  { %4533 = vadd.xlane.f32.xlu1 %v4472_v1 }
 0x7f3   :  { %v6970_v7 = vpop.eup %6969 }
 0x7f4   :  { %v4473_v32 = vsel %vm4250_vm0, %v6970_v7, 0.0 }
 0x7f5   :  { %4535 = vadd.xlane.f32.xlu0 %v4473_v32 }
 0x7f7   :  { %v6972_v12 = vpop.eup %6971 }
 0x7f8   :  { %v4474_v39 = vsel %vm4250_vm0, %v6972_v12, 0.0 }
 0x7f9   :  { %4537 = vadd.xlane.f32.xlu1 %v4474_v39 }
 0x806   :  { %v4476_v54 = vpop.xlane.xlu0 %4475 }
 0x807   :  { %6973 = vlog2.f32 %v4476_v54 }
 0x80a   :  { %v4478_v36 = vpop.xlane.xlu1 %4477 }
 0x80b   :  { %6975 = vlog2.f32 %v4478_v36 }
 0x80e   :  { %v4480_v33 = vpop.xlane.xlu0 %4479 }
 0x80f   :  { %6977 = vlog2.f32 %v4480_v33 }
 0x812   :  { %v4482_v10 = vpop.xlane.xlu1 %4481 }
 0x813   :  { %6979 = vlog2.f32 %v4482_v10 }
 0x814   :  { %v6974_v19 = vpop.eup %6973 }
 0x815   :  { %v4540_v62 = vmul.f32 0.6931472, %v6974_v19 }
 0x816   :  { %v4484_v37 = vpop.xlane.xlu0 %4483 }
 0x817   :  { %v4603_v63 = vsub.f32 %v7842_v29, %v4540_v62  ;;  %6981 = vlog2.f32 %v4484_v37 }
 0x818   :  { %v6976_v42 = vpop.eup %6975 }
 0x819   :  { %v4635_v30 = vsel %vm4250_vm0, %v4603_v63, 0.0  ;;  %v4542_v9 = vmul.f32 0.6931472, %v6976_v42 }
 0x81a   :  { %4667 = vst [vmem:[#allocation15] sm:$0xff] %v4635_v30  ;;  %v4486_v23 = vpop.xlane.xlu1 %4485 }
 0x81b   :  { %v4604_v34 = vsub.f32 %v7846_v52, %v4542_v9  ;;  %6983 = vlog2.f32 %v4486_v23 }
 0x81c   :  { %v6978_v53 = vpop.eup %6977 }
 0x81d   :  { %v4636_v56 = vsel %vm4250_vm0, %v4604_v34, 0.0  ;;  %v4544_v4 = vmul.f32 0.6931472, %v6978_v53 }
 0x81e   :  { %4668 = vst [vmem:[#allocation15 + $0x8] sm:$0xff] %v4636_v56  ;;  %v4488_v26 = vpop.xlane.xlu0 %4487 }
 0x81f   :  { %v4605_v29 = vsub.f32 %v7850_v41, %v4544_v4  ;;  %6985 = vlog2.f32 %v4488_v26 }
 0x820   :  { %v6980_v58 = vpop.eup %6979 }
 0x821   :  { %v4637_v11 = vsel %vm4250_vm0, %v4605_v29, 0.0  ;;  %v4546_v38 = vmul.f32 0.6931472, %v6980_v58 }
 0x822   :  { %4669 = vst [vmem:[#allocation15 + $0x10] sm:$0xff] %v4637_v11  ;;  %v4490_v45 = vpop.xlane.xlu1 %4489 }
 0x823   :  { %v4606_v52 = vsub.f32 %v7854_v2, %v4546_v38  ;;  %6987 = vlog2.f32 %v4490_v45 }
 0x824   :  { %v6982_v5 = vpop.eup %6981 }
 0x825   :  { %v4638_v13 = vsel %vm4250_vm0, %v4606_v52, 0.0  ;;  %v4548_v47 = vmul.f32 0.6931472, %v6982_v5 }
 0x826   :  { %4670 = vst [vmem:[#allocation15 + $0x18] sm:$0xff] %v4638_v13  ;;  %v4492_v50 = vpop.xlane.xlu0 %4491 }
 0x827   :  { %v4607_v41 = vsub.f32 %v7858_v55, %v4548_v47  ;;  %6989 = vlog2.f32 %v4492_v50 }
 0x828   :  { %v6984_v0 = vpop.eup %6983 }
 0x829   :  { %v4639_v1 = vsel %vm4250_vm0, %v4607_v41, 0.0  ;;  %v4550_v7 = vmul.f32 0.6931472, %v6984_v0 }
 0x82a   :  { %4671 = vst [vmem:[#allocation15 + $0x20] sm:$0xff] %v4639_v1  ;;  %v4494_v32 = vpop.xlane.xlu1 %4493 }
 0x82b   :  { %v4608_v2 = vsub.f32 %v7864_v60, %v4550_v7  ;;  %6991 = vlog2.f32 %v4494_v32 }
 0x82c   :  { %v6986_v12 = vpop.eup %6985 }
 0x82d   :  { %v4640_v39 = vsel %vm4250_vm0, %v4608_v2, 0.0  ;;  %v4552_v54 = vmul.f32 0.6931472, %v6986_v12 }
 0x82e   :  { %4672 = vst [vmem:[#allocation15 + $0x28] sm:$0xff] %v4640_v39  ;;  %v4496_v36 = vpop.xlane.xlu0 %4495 }
 0x82f   :  { %v4609_v55 = vsub.f32 %v7870_v25, %v4552_v54  ;;  %6993 = vlog2.f32 %v4496_v36 }
 0x830   :  { %v6988_v33 = vpop.eup %6987 }
 0x831   :  { %v4641_v10 = vsel %vm4250_vm0, %v4609_v55, 0.0  ;;  %v4554_v19 = vmul.f32 0.6931472, %v6988_v33 }
 0x832   :  { %4673 = vst [vmem:[#allocation15 + $0x30] sm:$0xff] %v4641_v10  ;;  %v4498_v62 = vpop.xlane.xlu1 %4497 }
 0x833   :  { %v4610_v60 = vsub.f32 %v7876_v16, %v4554_v19  ;;  %6995 = vlog2.f32 %v4498_v62 }
 0x834   :  { %v6990_v37 = vpop.eup %6989 }
 0x835   :  { %v4642_v63 = vsel %vm4250_vm0, %v4610_v60, 0.0  ;;  %v4556_v42 = vmul.f32 0.6931472, %v6990_v37 }
 0x836   :  { %4674 = vst [vmem:[#allocation15 + $0x38] sm:$0xff] %v4642_v63  ;;  %v4500_v30 = vpop.xlane.xlu0 %4499 }
 0x837   :  { %v4611_v25 = vsub.f32 %v7882_v61, %v4556_v42  ;;  %6997 = vlog2.f32 %v4500_v30 }
 0x838   :  { %v6992_v9 = vpop.eup %6991 }
 0x839   :  { %v4643_v23 = vsel %vm4250_vm0, %v4611_v25, 0.0  ;;  %v4558_v34 = vmul.f32 0.6931472, %v6992_v9 }
 0x83a   :  { %4675 = vst [vmem:[#allocation15 + $0x40] sm:$0xff] %v4643_v23  ;;  %v4502_v53 = vpop.xlane.xlu1 %4501 }
 0x83b   :  { %v4612_v16 = vsub.f32 %v7888_v20, %v4558_v34  ;;  %6999 = vlog2.f32 %v4502_v53 }
 0x83c   :  { %v6994_v56 = vpop.eup %6993 }
 0x83d   :  { %v4644_v4 = vsel %vm4250_vm0, %v4612_v16, 0.0  ;;  %v4560_v26 = vmul.f32 0.6931472, %v6994_v56 }
 0x83e   :  { %4676 = vst [vmem:[#allocation15 + $0x48] sm:$0xff] %v4644_v4  ;;  %v4504_v29 = vpop.xlane.xlu0 %4503 }
 0x83f   :  { %v4613_v61 = vsub.f32 %v7894_v46, %v4560_v26  ;;  %7001 = vlog2.f32 %v4504_v29 }
 0x840   :  { %v6996_v58 = vpop.eup %6995 }
 0x841   :  { %v4645_v11 = vsel %vm4250_vm0, %v4613_v61, 0.0  ;;  %v4562_v38 = vmul.f32 0.6931472, %v6996_v58 }
 0x842   :  { %4677 = vst [vmem:[#allocation15 + $0x50] sm:$0xff] %v4645_v11  ;;  %v4506_v45 = vpop.xlane.xlu1 %4505 }
 0x843   :  { %v4614_v20 = vsub.f32 %v7900_v49, %v4562_v38  ;;  %7003 = vlog2.f32 %v4506_v45 }
 0x844   :  { %v6998_v52 = vpop.eup %6997 }
 0x845   :  { %v4646_v5 = vsel %vm4250_vm0, %v4614_v20, 0.0  ;;  %v4564_v13 = vmul.f32 0.6931472, %v6998_v52 }
 0x846   :  { %4678 = vst [vmem:[#allocation15 + $0x58] sm:$0xff] %v4646_v5  ;;  %v4508_v47 = vpop.xlane.xlu0 %4507 }
 0x847   :  { %v4615_v46 = vsub.f32 %v7906_v22, %v4564_v13  ;;  %7005 = vlog2.f32 %v4508_v47 }
 0x848   :  { %v7000_v50 = vpop.eup %6999 }
 0x849   :  { %v4647_v41 = vsel %vm4250_vm0, %v4615_v46, 0.0  ;;  %v4566_v0 = vmul.f32 0.6931472, %v7000_v50 }
 0x84a   :  { %4679 = vst [vmem:[#allocation15 + $0x60] sm:$0xff] %v4647_v41  ;;  %v4510_v1 = vpop.xlane.xlu1 %4509 }
 0x84b   :  { %v4616_v49 = vsub.f32 %v7912_v21, %v4566_v0  ;;  %7007 = vlog2.f32 %v4510_v1 }
 0x84c   :  { %v7002_v7 = vpop.eup %7001 }
 0x84d   :  { %v4648_v32 = vsel %vm4250_vm0, %v4616_v49, 0.0  ;;  %v4568_v2 = vmul.f32 0.6931472, %v7002_v7 }
 0x84e   :  { %4680 = vst [vmem:[#allocation15 + $0x68] sm:$0xff] %v4648_v32  ;;  %v4512_v12 = vpop.xlane.xlu0 %4511 }
 0x84f   :  { %v4617_v22 = vsub.f32 %v7918_v31, %v4568_v2  ;;  %7009 = vlog2.f32 %v4512_v12 }
 0x850   :  { %v7004_v39 = vpop.eup %7003 }
 0x851   :  { %v4649_v54 = vsel %vm4250_vm0, %v4617_v22, 0.0  ;;  %v4570_v36 = vmul.f32 0.6931472, %v7004_v39 }
 0x852   :  { %4681 = vst [vmem:[#allocation15 + $0x70] sm:$0xff] %v4649_v54  ;;  %v4514_v55 = vpop.xlane.xlu1 %4513 }
 0x853   :  { %v4618_v21 = vsub.f32 %v7924_v44, %v4570_v36  ;;  %7011 = vlog2.f32 %v4514_v55 }
 0x854   :  { %v7006_v33 = vpop.eup %7005 }
 0x855   :  { %v4650_v10 = vsel %vm4250_vm0, %v4618_v21, 0.0  ;;  %v4572_v19 = vmul.f32 0.6931472, %v7006_v33 }
 0x856   :  { %4682 = vst [vmem:[#allocation15 + $0x78] sm:$0xff] %v4650_v10  ;;  %v4516_v62 = vpop.xlane.xlu0 %4515 }
 0x857   :  { %v4619_v31 = vsub.f32 %v7930_v17, %v4572_v19  ;;  %7013 = vlog2.f32 %v4516_v62 }
 0x858   :  { %v7008_v60 = vpop.eup %7007 }
 0x859   :  { %v4651_v37 = vsel %vm4250_vm0, %v4619_v31, 0.0  ;;  %v4574_v63 = vmul.f32 0.6931472, %v7008_v60 }
 0x85a   :  { %4683 = vst [vmem:[#allocation15 + $0x80] sm:$0xff] %v4651_v37  ;;  %v4518_v42 = vpop.xlane.xlu1 %4517 }
 0x85b   :  { %v4620_v44 = vsub.f32 %v7936_v3, %v4574_v63  ;;  %7015 = vlog2.f32 %v4518_v42 }
 0x85c   :  { %v7010_v30 = vpop.eup %7009 }
 0x85d   :  { %v4652_v25 = vsel %vm4250_vm0, %v4620_v44, 0.0  ;;  %v4576_v9 = vmul.f32 0.6931472, %v7010_v30 }
 0x85e   :  { %4684 = vst [vmem:[#allocation15 + $0x88] sm:$0xff] %v4652_v25  ;;  %v4520_v23 = vpop.xlane.xlu0 %4519 }
 0x85f   :  { %v4621_v17 = vsub.f32 %v7942_v8, %v4576_v9  ;;  %7017 = vlog2.f32 %v4520_v23 }
 0x860   :  { %v7012_v34 = vpop.eup %7011 }
 0x861   :  { %v4653_v53 = vsel %vm4250_vm0, %v4621_v17, 0.0  ;;  %v4578_v16 = vmul.f32 0.6931472, %v7012_v34 }
 0x862   :  { %4685 = vst [vmem:[#allocation15 + $0x90] sm:$0xff] %v4653_v53  ;;  %v4522_v56 = vpop.xlane.xlu1 %4521 }
 0x863   :  { %v4622_v3 = vsub.f32 %v7948_v14, %v4578_v16  ;;  %7019 = vlog2.f32 %v4522_v56 }
 0x864   :  { %v7014_v4 = vpop.eup %7013 }
 0x865   :  { %v4654_v26 = vsel %vm4250_vm0, %v4622_v3, 0.0  ;;  %v4580_v29 = vmul.f32 0.6931472, %v7014_v4 }
 0x866   :  { %4686 = vst [vmem:[#allocation15 + $0x98] sm:$0xff] %v4654_v26  ;;  %v4524_v61 = vpop.xlane.xlu0 %4523 }
 0x867   :  { %v4623_v8 = vsub.f32 %v7954_v43, %v4580_v29  ;;  %7021 = vlog2.f32 %v4524_v61 }
 0x868   :  { %v7016_v58 = vpop.eup %7015 }
 0x869   :  { %v4655_v11 = vsel %vm4250_vm0, %v4623_v8, 0.0  ;;  %v4582_v38 = vmul.f32 0.6931472, %v7016_v58 }
 0x86a   :  { %4687 = vst [vmem:[#allocation15 + $0xa0] sm:$0xff] %v4655_v11  ;;  %v4526_v45 = vpop.xlane.xlu1 %4525 }
 0x86b   :  { %v4624_v14 = vsub.f32 %v7960_v40, %v4582_v38  ;;  %7023 = vlog2.f32 %v4526_v45 }
 0x86c   :  { %v7018_v20 = vpop.eup %7017 }
 0x86d   :  { %v4656_v52 = vsel %vm4250_vm0, %v4624_v14, 0.0  ;;  %v4584_v5 = vmul.f32 0.6931472, %v7018_v20 }
 0x86e   :  { %4688 = vst [vmem:[#allocation15 + $0xa8] sm:$0xff] %v4656_v52  ;;  %v4528_v13 = vpop.xlane.xlu0 %4527 }
 0x86f   :  { %v4625_v43 = vsub.f32 %v7966_v48, %v4584_v5  ;;  %7025 = vlog2.f32 %v4528_v13 }
 0x870   :  { %v7020_v47 = vpop.eup %7019 }
 0x871   :  { %v4657_v46 = vsel %vm4250_vm0, %v4625_v43, 0.0  ;;  %v4586_v50 = vmul.f32 0.6931472, %v7020_v47 }
 0x872   :  { %4689 = vst [vmem:[#allocation15 + $0xb0] sm:$0xff] %v4657_v46  ;;  %v4530_v41 = vpop.xlane.xlu1 %4529 }
 0x873   :  { %v4626_v40 = vsub.f32 %v7972_v6, %v4586_v50  ;;  %7027 = vlog2.f32 %v4530_v41 }
 0x874   :  { %v7022_v0 = vpop.eup %7021 }
 0x875   :  { %v4658_v1 = vsel %vm4250_vm0, %v4626_v40, 0.0  ;;  %v4588_v49 = vmul.f32 0.6931472, %v7022_v0 }
 0x876   :  { %4690 = vst [vmem:[#allocation15 + $0xb8] sm:$0xff] %v4658_v1  ;;  %v4532_v7 = vpop.xlane.xlu0 %4531 }
 0x877   :  { %v4627_v48 = vsub.f32 %v7978_v57, %v4588_v49  ;;  %7029 = vlog2.f32 %v4532_v7 }
 0x878   :  { %v7024_v32 = vpop.eup %7023 }
 0x879   :  { %v4659_v2 = vsel %vm4250_vm0, %v4627_v48, 0.0  ;;  %v4590_v12 = vmul.f32 0.6931472, %v7024_v32 }
 0x87a   :  { %4691 = vst [vmem:[#allocation15 + $0xc0] sm:$0xff] %v4659_v2  ;;  %v4534_v22 = vpop.xlane.xlu1 %4533 }
 0x87b   :  { %v4628_v6 = vsub.f32 %v7984_v18, %v4590_v12  ;;  %7031 = vlog2.f32 %v4534_v22 }
 0x87c   :  { %v7026_v39 = vpop.eup %7025 }
 0x87d   :  { %v4660_v54 = vsel %vm4250_vm0, %v4628_v6, 0.0  ;;  %v4592_v36 = vmul.f32 0.6931472, %v7026_v39 }
 0x87e   :  { %4692 = vst [vmem:[#allocation15 + $0xc8] sm:$0xff] %v4660_v54  ;;  %v4536_v55 = vpop.xlane.xlu0 %4535 }
 0x87f   :  { %v4629_v57 = vsub.f32 %v7990_v59, %v4592_v36  ;;  %7033 = vlog2.f32 %v4536_v55 }
 0x880   :  { %v7028_v21 = vpop.eup %7027 }
 0x881   :  { %v4661_v33 = vsel %vm4250_vm0, %v4629_v57, 0.0  ;;  %v4594_v10 = vmul.f32 0.6931472, %v7028_v21 }
 0x882   :  { %4693 = vst [vmem:[#allocation15 + $0xd0] sm:$0xff] %v4661_v33  ;;  %v4538_v19 = vpop.xlane.xlu1 %4537 }
 0x883   :  { %v4630_v18 = vsub.f32 %v7996_v24, %v4594_v10  ;;  %7035 = vlog2.f32 %v4538_v19 }
 0x884   :  { %v7030_v62 = vpop.eup %7029 }
 0x885   :  { %v4662_v31 = vsel %vm4250_vm0, %v4630_v18, 0.0  ;;  %v4596_v60 = vmul.f32 0.6931472, %v7030_v62 }
 0x886   :  { %4694 = vst [vmem:[#allocation15 + $0xd8] sm:$0xff] %v4662_v31 }
 0x887   :  { %v4631_v37 = vsub.f32 %v8002_v28, %v4596_v60 }
 0x888   :  { %v7032_v59 = vpop.eup %7031 }
 0x889   :  { %v4663_v63 = vsel %vm4250_vm0, %v4631_v37, 0.0  ;;  %v4598_v42 = vmul.f32 0.6931472, %v7032_v59 }
 0x88a   :  { %4695 = vst [vmem:[#allocation15 + $0xe0] sm:$0xff] %v4663_v63 }
 0x88b   :  { %v4632_v44 = vsub.f32 %v8008_v35, %v4598_v42 }
 0x88c   :  { %v7034_v30 = vpop.eup %7033 }
 0x88d   :  { %v4664_v24 = vsel %vm4250_vm0, %v4632_v44, 0.0  ;;  %v4600_v25 = vmul.f32 0.6931472, %v7034_v30 }
 0x88e   :  { %4696 = vst [vmem:[#allocation15 + $0xe8] sm:$0xff] %v4664_v24 }
 0x88f   :  { %v4633_v9 = vsub.f32 %v8014_v15, %v4600_v25 }
 0x890   :  { %v7036_v23 = vpop.eup %7035 }
 0x891   :  { %v4665_v28 = vsel %vm4250_vm0, %v4633_v9, 0.0  ;;  %v4602_v17 = vmul.f32 0.6931472, %v7036_v23 }
 0x892   :  { %4697 = vst [vmem:[#allocation15 + $0xf0] sm:$0xff] %v4665_v28 }
 0x893   :  { %v4634_v34 = vsub.f32 %v8020_v27, %v4602_v17 }
 0x895   :  { %v4666_v35 = vsel %vm4250_vm0, %v4634_v34, 0.0 }
 0x896   :  { %4698 = vst [vmem:[#allocation15 + $0xf8] sm:$0xff] %v4666_v35 }
 0x897   :  { %7188 = shalt.err (!%p7185_p1)
}
 0x898   :  { %s7219_s17 = smov 128   ;;  %s7220_s18 = smov 8  }
 0x899   :  { %4710 = dma.vmem_to_hbm [thread:$0]  %s4705_s15, 4096, %s8140_s8, [#allocation9], %s7219_s17, %s7219_s17, %s7220_s18  }
 0x89a   :  { %7209 = dma.done.wait [#allocation9], 4096  }
 0x89b   :  { %7210 = vsyncadd [#allocation9], 4294963200 }
 0x89c   :  { %4714 = vsyncpa [#allocation8], 1 }
 0x89d   :  { %4715 = vsyncpa [#allocation11], 1 }
 0x89e   :  { %4716 = vsyncpa [#allocation14], 1 }
 0x89f   :  { %4717 = vsyncpa [#allocation9], 1 }
 0x8a0   :  { %4718 = vsyncmov [#allocation6] }
 0x8a3   :  { %s4719_s1 = vpop.sfrf %4718 }
 0x8a4   :  { %p5174_p2 = scmp.ne.s32.totalorder %s4719_s1, 0 }
 0x8a6   :  { %4723 = shalt.err (%p5174_p2)  }
 0x8a7   :  { %4725 = vsyncmov [#allocation6 + $0x1] }
 0x8aa   :  { %s4726_s21 = vpop.sfrf %4725 }
 0x8ab   :  { %p5175_p3 = scmp.ne.s32.totalorder %s4726_s21, 0 }
 0x8ad   :  { %4730 = shalt.err (%p5175_p3)  }

</bundles_post_ra>
